<compile_context>
chip_gen: v6e
topology: v6e:2x2x1
jax: 0.10.0
libtpu: 0.0.40
codegen_flags: <defaults>
</compile_context>

<pallas_src>
import math
import functools

import jax
import jax.numpy as jnp
from jax.experimental import pallas as pl
from jax.experimental.pallas import tpu as pltpu

# ---------------- config (scaled down, structurally identical to the module) --
NODE_C = 64        # Node_channels   (384 in reference)
EDGE_C = 32        # Edge_channels   (128 in reference)
IPA_C = 32         # IPA channels    (192 in reference)
GROUPS = 4         # IPA groups      (12 in reference)
QPOINTS = 4        # query points
VPOINTS = 8        # value points
PPG = IPA_C // GROUPS
TORSION_C = 32     # Torsion hidden  (128 in reference)
PLDDT_HID = 64     # Plddt hidden    (128 in reference)
PLDDT_BINS = 50
N_BLOCKS = 2       # structure iterations (8 in reference)
NUM_RESTYPES = 21

WC = math.sqrt(2.0 / 9.0 / QPOINTS)
WL = math.sqrt(1.0 / 3.0)

_ROW_TILE = 512              # row tile for the memory-bound row-wise kernels
EXACT_SOFTMAX_RECIP = False  # True -> exact 1/x for tight numerical parity


# ========================= generic row-tiled pallas caller ====================
def _rowwise_call(kernel, row_inputs, const_inputs, out_cols, max_tile=_ROW_TILE):
    """Run `kernel` tiled over rows.

    row_inputs : list of (m, c_i) arrays, tiled (tm, c_i) per grid step.
    const_inputs: list of 2D arrays loaded whole every step (weights / biases).
    out_cols   : int or tuple of ints -> one (m, c_out) f32 output per entry.
    """
    m = row_inputs[0].shape[0]
    tm = m if m <= max_tile else max_tile
    grid = (pl.cdiv(m, tm),)
    in_specs = [pl.BlockSpec((tm, a.shape[1]), lambda i: (i, 0)) for a in row_inputs]
    in_specs += [pl.BlockSpec(a.shape, lambda i: (0, 0)) for a in const_inputs]
    multi = isinstance(out_cols, (tuple, list))
    cols = tuple(out_cols) if multi else (out_cols,)
    out_shape = tuple(jax.ShapeDtypeStruct((m, c), jnp.float32) for c in cols)
    out_specs = tuple(pl.BlockSpec((tm, c), lambda i: (i, 0)) for c in cols)
    if not multi:
        out_shape, out_specs = out_shape[0], out_specs[0]
    return pl.pallas_call(
        kernel,
        grid=grid,
        out_shape=out_shape,
        in_specs=in_specs,
        out_specs=out_specs,
        compiler_params=pltpu.CompilerParams(dimension_semantics=("parallel",)),
    )(*row_inputs, *const_inputs)


def _wb(params):
    w, b = params
    return w.astype(jnp.bfloat16), b.reshape(1, -1).astype(jnp.float32)


def _lnp(params):
    g, b = params
    return g.reshape(1, -1).astype(jnp.float32), b.reshape(1, -1).astype(jnp.float32)


def _ln(x, g, b):
    mean = jnp.mean(x, axis=-1, keepdims=True)
    xc = x - mean
    var = jnp.mean(xc * xc, axis=-1, keepdims=True)
    return xc * jax.lax.rsqrt(var + 1e-5) * g + b          # PyTorch LayerNorm eps


def _mm(x, w_ref, b_ref):
    return (jnp.dot(x.astype(jnp.bfloat16), w_ref[...],
                    preferred_element_type=jnp.float32) + b_ref[...])


# ============================== fused row kernels =============================
def _linear_kernel(x_ref, w_ref, b_ref, o_ref):
    o_ref[...] = _mm(x_ref[...], w_ref, b_ref)


def _ln_kernel(x_ref, g_ref, b_ref, o_ref):
    o_ref[...] = _ln(x_ref[...], g_ref[...], b_ref[...])


def _ln_linear_kernel(x_ref, g_ref, b_ref, w_ref, wb_ref, xo_ref, yo_ref):
    xln = _ln(x_ref[...], g_ref[...], b_ref[...])
    xo_ref[...] = xln
    yo_ref[...] = _mm(xln, w_ref, wb_ref)


def _plddt_kernel(x_ref, g_ref, b_ref, w1, b1, w2, b2, w3, b3, o_ref):
    xln = _ln(x_ref[...], g_ref[...], b_ref[...])
    h = jnp.maximum(_mm(xln, w1, b1), 0.0)
    h = jnp.maximum(_mm(h, w2, b2), 0.0)
    # TODO(synk): 50-wide output lowers to masked stores; could pad to 128 lanes.
    o_ref[...] = _mm(h, w3, b3)


def _ipa_out_kernel(oe_ref, on_ref, ov_ref, ovn_ref, res_ref,
                    we, wn, wv, wvn, b, o_ref):
    # out = node + [O_Edge | O_Node | O_vec | O_vec_norm] @ W_out + b, without
    # ever materializing the concatenated activation in HBM.
    acc = _mm(oe_ref[...], we, b)
    acc = acc + jnp.dot(on_ref[...].astype(jnp.bfloat16), wn[...],
                        preferred_element_type=jnp.float32)
    acc = acc + jnp.dot(ov_ref[...].astype(jnp.bfloat16), wv[...],
                        preferred_element_type=jnp.float32)
    acc = acc + jnp.dot(ovn_ref[...].astype(jnp.bfloat16), wvn[...],
                        preferred_element_type=jnp.float32)
    o_ref[...] = res_ref[...] + acc


def _node_tail_kernel(x_ref, xraw_ref,
                      tg, tb, tw1, tb1, tw2, tb2, tw3, tb3,
                      ig, ib, sw, sb,
                      w0, c0, w1, c1, wa0, ca0, wa1, ca1,
                      wb0, cb0, wb1, cb1, wo, co,
                      node_ref, s2t_ref, tor_ref):
    """transition (+both residuals) -> ln_itr -> backbone 6-proj + torsion."""
    x = x_ref[...]
    # IPA_transition fused residuals:  Node + (ln(Node) + trans(ln(Node)))
    xln = _ln(x, tg[...], tb[...])
    h = jnp.maximum(_mm(xln, tw1, tb1), 0.0)
    h = jnp.maximum(_mm(h, tw2, tb2), 0.0)
    xt = x + xln + _mm(h, tw3, tb3)
    # ln_itr (drop1/drop2 are identity in eval mode)
    y = _ln(xt, ig[...], ib[...])
    node_ref[...] = y
    # BackboneUpdate projection (quaternion math done on the tiny output in XLA)
    # TODO(synk): pack the 6/14-wide outputs into one lane-dense slab.
    s2t_ref[...] = _mm(y, sw, sb)
    # Torsion network (proj0(node) + proj1(node_raw), two residual blocks, out)
    a = _mm(y, w0, c0) + _mm(xraw_ref[...], w1, c1)
    t = jnp.maximum(a, 0.0)
    t = jnp.maximum(_mm(t, wa0, ca0), 0.0)
    a = a + _mm(t, wa1, ca1)
    t = jnp.maximum(a, 0.0)
    t = jnp.maximum(_mm(t, wb0, cb0), 0.0)
    a = a + _mm(t, wb1, cb1)
    t = jnp.maximum(a, 0.0)
    tor_ref[...] = _mm(t, wo, co)


# ================================ wrappers ====================================
def layernorm(x, params):
    g, b = _lnp(params)
    lead, c = x.shape[:-1], x.shape[-1]
    out = _rowwise_call(_ln_kernel, [x.reshape(-1, c)], [g, b], c)
    return out.reshape(*lead, c)


def ln_linear(x, ln_params, lin_params):
    g, b = _lnp(ln_params)
    w, wb_ = _wb(lin_params)
    lead, c = x.shape[:-1], x.shape[-1]
    k_out = lin_params[0].shape[1]
    xo, yo = _rowwise_call(_ln_linear_kernel, [x.reshape(-1, c)],
                           [g, b, w, wb_], (c, k_out))
    return xo.reshape(*lead, c), yo.reshape(*lead, k_out)


def plddt_forward(p, x):
    lead, c = x.shape[:-1], x.shape[-1]
    g, b = _lnp(p['ln'])
    w1, b1 = _wb(p['d1']); w2, b2 = _wb(p['d2']); w3, b3 = _wb(p['proj'])
    out = _rowwise_call(_plddt_kernel, [x.reshape(-1, c)],
                        [g, b, w1, b1, w2, b2, w3, b3], PLDDT_BINS)
    return out.reshape(*lead, PLDDT_BINS)


def node_tail_forward(prep, node, node_raw):
    n, l, c = node.shape
    m = n * l
    node_out, s2t, tor = _rowwise_call(
        _node_tail_kernel,
        [node.reshape(m, c), node_raw.reshape(m, c)],
        prep['tail_consts'], (c, 6, 14))
    return (node_out.reshape(n, l, c), s2t.reshape(n, l, 6),
            tor.reshape(n, l, 7, 2))


# ============================ IPA attention kernel ============================
def _pick_tile(l, cap=128):
    if l <= cap or l % cap == 0:
        return min(l, cap)
    # TODO(synk): pad L (+ key masking) instead of whole-axis tiles for awkward L.
    return l


def _ipa_attn_kernel(qcat_ref, kcat_ref, vcat_ref, kn_ref, bias_ref, edge_ref,
                     oe_ref, onov_ref, m_sc, l_sc, acc_o, acc_e, *, exact_recip):
    ki = pl.program_id(2)

    @pl.when(ki == 0)
    def _():
        m_sc[...] = jnp.full(m_sc.shape, -jnp.inf, jnp.float32)
        l_sc[...] = jnp.zeros(l_sc.shape, jnp.float32)
        acc_o[...] = jnp.zeros(acc_o.shape, jnp.float32)
        acc_e[...] = jnp.zeros(acc_e.shape, jnp.float32)

    # merged scalar-qk + point-distance contraction on the MXU: (G, TQ, TK).
    # All scale factors (WL/sqrt(ppg), 2*WL, softplus(gamma)*WC/2) are folded
    # into qcat/kcat outside.
    s = jax.lax.dot_general(qcat_ref[0], kcat_ref[0],
                            (((2,), (2,)), ((0,), (0,))),
                            preferred_element_type=jnp.float32)
    # loop-invariant WL-scaled pair bias + per-key point-norm term; the
    # per-query point-norm is constant over keys -> dropped (softmax-invariant).
    s = s + bias_ref[0] - kn_ref[0][:, None, :]

    # online softmax over keys
    m_prev = m_sc[...]
    m_new = jnp.maximum(m_prev, jnp.max(s, axis=-1, keepdims=True))
    alpha = jnp.exp(m_prev - m_new)                       # (G, TQ, 1)
    p = jnp.exp(s - m_new)                                # (G, TQ, TK) f32
    l_sc[...] = alpha * l_sc[...] + jnp.sum(p, axis=-1, keepdims=True)
    m_sc[...] = m_new

    # attn @ [value | value_pts], group-batched: (G, TQ, Dv)
    acc_o[...] = alpha * acc_o[...] + jax.lax.dot_general(
        p.astype(jnp.bfloat16), vcat_ref[0],
        (((2,), (1,)), ((0,), (0,))), preferred_element_type=jnp.float32)

    # attn-weighted edge reduction, query-batched.  One relayout of the small
    # probability tile instead of G masked sublane stores.
    p_t = jnp.transpose(p, (1, 0, 2)).astype(jnp.bfloat16)       # (TQ, G, TK)
    alpha_t = jnp.transpose(alpha[..., 0], (1, 0))[..., None]    # (TQ, G, 1)
    acc_e[...] = alpha_t * acc_e[...] + jax.lax.dot_general(
        p_t, edge_ref[0], (((2,), (1,)), ((0,), (0,))),
        preferred_element_type=jnp.float32)                      # (TQ, G, Ce)

    @pl.when(ki == pl.num_programs(2) - 1)
    def _():
        l_cur = l_sc[...]
        inv_l = (1.0 / l_cur) if exact_recip else pl.reciprocal(l_cur, approx=True)
        inv_l_t = jnp.transpose(inv_l[..., 0], (1, 0))[..., None]
        oe_ref[0] = acc_e[...] * inv_l_t
        # emit O_node / O_points already in (query, group, channel) layout
        onov_ref[0] = jnp.transpose(acc_o[...] * inv_l, (1, 0, 2))


def ipa_attention(qcat, kcat, vcat, kn, bias, edge_bf):
    n, g, l, dk = qcat.shape
    dv = vcat.shape[-1]
    ce = edge_bf.shape[-1]
    tq = _pick_tile(l)
    tk = _pick_tile(l)
    n_q, n_k = l // tq, l // tk

    kernel = functools.partial(_ipa_attn_kernel, exact_recip=EXACT_SOFTMAX_RECIP)
    # query-tile axis is outermost so megacore can shard it even when N is tiny.
    return pl.pallas_call(
        kernel,
        grid=(n_q, n, n_k),
        out_shape=(
            jax.ShapeDtypeStruct((n, l, g, ce), jnp.float32),
            jax.ShapeDtypeStruct((n, l, g, dv), jnp.float32),
        ),
        in_specs=[
            pl.BlockSpec((1, g, tq, dk), lambda qi, b, ki: (b, 0, qi, 0)),
            pl.BlockSpec((1, g, tk, dk), lambda qi, b, ki: (b, 0, ki, 0)),
            pl.BlockSpec((1, g, tk, dv), lambda qi, b, ki: (b, 0, ki, 0)),
            pl.BlockSpec((1, g, tk), lambda qi, b, ki: (b, 0, ki)),
            pl.BlockSpec((1, g, tq, tk), lambda qi, b, ki: (b, 0, qi, ki)),
            pl.BlockSpec((1, tq, tk, ce), lambda qi, b, ki: (b, qi, ki, 0)),
        ],
        out_specs=(
            pl.BlockSpec((1, tq, g, ce), lambda qi, b, ki: (b, qi, 0, 0)),
            pl.BlockSpec((1, tq, g, dv), lambda qi, b, ki: (b, qi, 0, 0)),
        ),
        scratch_shapes=[
            pltpu.VMEM((g, tq, 1), jnp.float32),    # running max
            pltpu.VMEM((g, tq, 1), jnp.float32),    # running denom
            pltpu.VMEM((g, tq, dv), jnp.float32),   # value / value-pt accumulator
            pltpu.VMEM((tq, g, ce), jnp.float32),   # edge accumulator
        ],
        compiler_params=pltpu.CompilerParams(
            dimension_semantics=("parallel", "parallel", "arbitrary"),
            # stay well under v7x's 64 MiB per-TC VMEM (fine on v5e/v6e too)
            vmem_limit_bytes=48 * 1024 * 1024),
    )(qcat, kcat, vcat, kn, bias, edge_bf)


# ============================ Frame (rigid) algebra ============================
def frame_compose(r1, t1, r2, t2):
    r = jnp.matmul(r1, r2)
    t = jnp.squeeze(jnp.matmul(r1, t2[..., None]), -1) + t1
    return r, t


def frame_apply(r, t, pts):
    return jnp.squeeze(jnp.matmul(r, pts[..., None]), -1) + t


def frame_invert_apply(r, t, pts):
    x = pts - t
    return jnp.squeeze(jnp.matmul(jnp.swapaxes(r, -1, -2), x[..., None]), -1)


# =============================== IPA sub-module ===============================
def ipa_precompute(p, edge):
    """Loop-invariant pieces, computed once for all structure iterations."""
    # TODO(synk): at very long L the remaining per-step bias-tile DMA could be
    # removed entirely by computing edge_tile @ w_bias inside the kernel.
    bias_wl = WL * jnp.einsum('nijc,cg->ngij', edge, p['bias'][0])   # (N,G,L,L)
    return dict(bias=bias_wl, edge_bf=edge.astype(jnp.bfloat16))


def prep_structure_params(params):
    """Hoist all loop-resident weight concats / bf16 casts out of the loop."""
    ipa = params['ipa']
    prep = {}
    wcat = jnp.concatenate([ipa['q'][0], ipa['k'][0], ipa['v'][0],
                            ipa['qv'][0], ipa['kv'][0], ipa['vv'][0]], axis=1)
    prep['ipa_proj_w'] = wcat.astype(jnp.bfloat16)
    prep['ipa_proj_b'] = jnp.zeros((1, wcat.shape[1]), jnp.float32)

    w_out, b_out = ipa['out']
    sizes = [EDGE_C * GROUPS, IPA_C, GROUPS * VPOINTS * 3, GROUPS * VPOINTS]
    offs = [0]
    for s in sizes:
        offs.append(offs[-1] + s)
    prep['out_w'] = tuple(w_out[offs[i]:offs[i + 1]].astype(jnp.bfloat16)
                          for i in range(4))
    prep['out_b'] = b_out.reshape(1, -1).astype(jnp.float32)
    prep['gamma_scale'] = jnp.sqrt(jax.nn.softplus(ipa['gamma']) * (WC * 0.5))

    t = params['transition']
    tor = params['torsion']
    consts = []
    consts += list(_lnp(t['ln']))
    for k in ('l1', 'l2', 'l3'):
        consts += list(_wb(t[k]))
    consts += list(_lnp(params['ln_itr']))
    consts += list(_wb(params['s2t']))
    consts += list(_wb(tor['proj0'])) + list(_wb(tor['proj1']))
    consts += list(_wb(tor['block0'][0])) + list(_wb(tor['block0'][1]))
    consts += list(_wb(tor['block1'][0])) + list(_wb(tor['block1'][1]))
    consts += list(_wb(tor['output']))
    prep['tail_consts'] = consts
    return prep


def ipa_forward(prep, node, static, frame):
    bias_wl, edge_bf = static['bias'], static['edge_bf']
    n, l, _ = node.shape
    ce = edge_bf.shape[-1]
    rot, trans = frame
    trans = trans / 10.0

    # --- single fused projection for q, k, v, qv, kv, vv (hoisted bf16 weight) -
    proj = _rowwise_call(_linear_kernel, [node.reshape(-1, NODE_C)],
                         [prep['ipa_proj_w'], prep['ipa_proj_b']],
                         prep['ipa_proj_w'].shape[1]).reshape(n, l, -1)
    c0 = IPA_C
    qp3 = 3 * GROUPS * QPOINTS
    vp3 = 3 * GROUPS * VPOINTS
    q = proj[..., :c0]
    k = proj[..., c0:2 * c0]
    v = proj[..., 2 * c0:3 * c0]
    o = 3 * c0
    qv = proj[..., o:o + qp3]
    kv = proj[..., o + qp3:o + 2 * qp3]
    vv = proj[..., o + 2 * qp3:o + 2 * qp3 + vp3]

    def heads(x, d):                                  # (N,L,G*d) -> (N,G,L,d)
        return jnp.transpose(x.reshape(n, l, GROUPS, d), (0, 2, 1, 3))

    def point_global(x, npts):                        # -> (N,L,G,P,3) global frame
        pts = x.reshape(n, l, GROUPS, npts, 3)
        return frame_apply(rot[:, :, None, None], trans[:, :, None, None], pts)

    # fold softplus(gamma)*WC/2 into the query/key point scaling
    s = prep['gamma_scale']                                     # (G,)
    qvs = point_global(qv, QPOINTS) * s[None, None, :, None, None]
    kvs = point_global(kv, QPOINTS) * s[None, None, :, None, None]
    vvp = point_global(vv, VPOINTS)

    qvs_h = heads(qvs.reshape(n, l, -1), 3 * QPOINTS)           # (N,G,L,3QP)
    kvs_h = heads(kvs.reshape(n, l, -1), 3 * QPOINTS)
    vv_h = heads(vvp.reshape(n, l, -1), 3 * VPOINTS)            # (N,G,L,3VP)

    # merged-contraction operands (1/sqrt(ppg), WL and the 2x cross-term factor
    # folded into the query side); per-key point norm passed separately.
    qcat = jnp.concatenate([heads(q, PPG) * (WL / math.sqrt(PPG)),
                            qvs_h * (2.0 * WL)], axis=-1).astype(jnp.bfloat16)
    kcat = jnp.concatenate([heads(k, PPG), kvs_h], axis=-1).astype(jnp.bfloat16)
    vcat = jnp.concatenate([heads(v, PPG), vv_h], axis=-1).astype(jnp.bfloat16)
    kn = WL * jnp.sum(kvs_h * kvs_h, axis=-1)                   # (N,G,L) f32

    oe, onov = ipa_attention(qcat, kcat, vcat, kn, bias_wl, edge_bf)

    o_edge = oe.reshape(n, l, GROUPS * ce)
    o_node = onov[..., :PPG].reshape(n, l, IPA_C)
    ov = onov[..., PPG:].reshape(n, l, GROUPS, VPOINTS, 3)
    ov = frame_invert_apply(rot[:, :, None, None], trans[:, :, None, None], ov)
    # TODO(synk): exact eps of `safenorm` unknown from source; using sqrt(sum+1e-8).
    ov_norm = jnp.sqrt(jnp.sum(ov * ov, axis=-1) + 1e-8)

    # fused concat + output projection + node residual (no HBM cat tensor)
    m = n * l
    we, wn, wv, wvn = prep['out_w']
    out = _rowwise_call(
        _ipa_out_kernel,
        [o_edge.reshape(m, -1), o_node.reshape(m, -1),
         ov.reshape(m, -1), ov_norm.reshape(m, -1), node.reshape(m, NODE_C)],
        [we, wn, wv, wvn, prep['out_b']],
        NODE_C)
    return out.reshape(n, l, NODE_C)


def backbone_from_6(out):
    n, l, _ = out.shape
    quat = out[..., :3]
    trans = out[..., 3:]
    b, c, d = quat[..., 0], quat[..., 1], quat[..., 2]
    a = 1.0
    r = jnp.stack([
        a * a + b * b - c * c - d * d,
        2 * b * c - 2 * a * d,
        2 * b * d + 2 * a * c,
        2 * b * c + 2 * a * d,
        a * a - b * b + c * c - d * d,
        2 * c * d - 2 * a * b,
        2 * b * d - 2 * a * c,
        2 * c * d + 2 * a * b,
        a * a - b * b - c * c + d * d,
    ], axis=-1)
    r = r / (jnp.sum(quat * quat, axis=-1, keepdims=True) + 1.0)
    return r.reshape(n, l, 3, 3), 10.0 * trans


# ===================== torsion -> frames -> atom14 (JAX glue) =================
def torsion_angles_to_frames(bb_r, bb_t, torsion, aatype, lit_frames):
    n, l = aatype.shape
    lit = lit_frames[aatype]                           # (N, L, 8, 4, 4)
    def_r = lit[..., :3, :3]
    def_t = lit[..., :3, 3]
    bb_rot = jnp.zeros((n, l, 1, 2), jnp.float32).at[..., 1].set(1.0)
    tor = jnp.concatenate([bb_rot, torsion], axis=-2)  # (N, L, 8, 2)
    s = tor[..., 0]
    c = tor[..., 1]
    zeros = jnp.zeros_like(s)
    ones = jnp.ones_like(s)
    rot = jnp.stack([ones, zeros, zeros,
                     zeros, c, -s,
                     zeros, s, c], axis=-1).reshape(n, l, 8, 3, 3)
    all_r = jnp.matmul(def_r, rot)                     # compose with zero-trans rot
    all_t = def_t

    def f(i):
        return all_r[..., i, :, :], all_t[..., i, :]

    chi1_r, chi1_t = f(4)
    chi2_r, chi2_t = frame_compose(chi1_r, chi1_t, *f(5))
    chi3_r, chi3_t = frame_compose(chi2_r, chi2_t, *f(6))
    chi4_r, chi4_t = frame_compose(chi3_r, chi3_t, *f(7))
    out_r = jnp.concatenate([all_r[..., :5, :, :],
                             chi2_r[..., None, :, :],
                             chi3_r[..., None, :, :],
                             chi4_r[..., None, :, :]], axis=-3)
    out_t = jnp.concatenate([all_t[..., :5, :],
                             chi2_t[..., None, :],
                             chi3_t[..., None, :],
                             chi4_t[..., None, :]], axis=-2)
    return frame_compose(bb_r[..., None, :, :], bb_t[..., None, :], out_r, out_t)


def frames_to_atom14(fr, ft, aatype, group_idx, atom14_mask, lit_positions):
    gm = group_idx[aatype]                             # (N, L, 14)
    gm1h = jax.nn.one_hot(gm, 8, dtype=jnp.float32)    # (N, L, 14, 8)
    r_a = jnp.einsum('nlgij,nlag->nlaij', fr, gm1h)
    t_a = jnp.einsum('nlgi,nlag->nlai', ft, gm1h)
    amask = atom14_mask[aatype][..., None]             # (N, L, 14, 1)
    lit = lit_positions[aatype]                        # (N, L, 14, 3)
    pred = frame_apply(r_a, t_a, lit) * amask
    return pred, amask[..., 0]


# ============================= StructureModule ================================
def structure_module_forward(params, tables, node, edge, aatype):
    n, l, _ = node.shape
    prep = prep_structure_params(params)               # hoisted weight casts
    node_raw, node = ln_linear(node, params['ln_s'], params['proj_s'])
    edge = layernorm(edge, params['ln_edge'])
    ipa_static = ipa_precompute(params['ipa'], edge)   # loop-invariant pair bias
    bb_r = jnp.broadcast_to(jnp.eye(3, dtype=jnp.float32), (n, l, 3, 3))
    bb_t = jnp.zeros((n, l, 3), jnp.float32)
    bb_traj, alphas_traj = [], []
    alphas = None
    for _ in range(N_BLOCKS):
        bb_r = jax.lax.stop_gradient(bb_r)             # stop_rot_gradient (fwd no-op)
        node = ipa_forward(prep, node, ipa_static, (bb_r, bb_t))
        # drop1 / drop2: nn.Dropout(p=0.1) in eval mode == identity
        node, s2t6, alphas = node_tail_forward(prep, node, node_raw)
        loc_r, loc_t = backbone_from_6(s2t6)
        bb_r, bb_t = frame_compose(bb_r, bb_t, loc_r, loc_t)
        bb_traj.append((bb_r, bb_t))
        alphas_traj.append(alphas)
    frames_r, frames_t = torsion_angles_to_frames(bb_r, bb_t, alphas, aatype,
                                                  tables['lit_frames'])
    atoms, atom_mask = frames_to_atom14(frames_r, frames_t, aatype,
                                        tables['group_idx'],
                                        tables['atom14_mask'],
                                        tables['lit_positions'])
    plddt = plddt_forward(params['plddt'], node)
    return bb_traj, alphas_traj, (frames_r, frames_t), atoms, atom_mask, plddt


# ============================ parameters / tables =============================
def init_params(seed):
    keys = iter(jax.random.split(jax.random.PRNGKey(seed), 64))

    def lin(din, dout, zero_w=False, use_bias=True):
        bound = 1.0 / math.sqrt(din)
        if zero_w:
            w = jnp.zeros((din, dout), jnp.float32)
        else:
            w = jax.random.uniform(next(keys), (din, dout), jnp.float32, -bound, bound)
        if use_bias:
            b = jax.random.uniform(next(keys), (dout,), jnp.float32, -bound, bound)
        else:
            b = jnp.zeros((dout,), jnp.float32)
        return (w, b)

    def ln(dim):
        return (jnp.ones((dim,), jnp.float32), jnp.zeros((dim,), jnp.float32))

    return {
        'ln_s': ln(NODE_C),
        'ln_edge': ln(EDGE_C),
        'proj_s': lin(NODE_C, NODE_C),
        'ln_itr': ln(NODE_C),
        'ipa': {
            'q': lin(NODE_C, IPA_C, use_bias=False),
            'k': lin(NODE_C, IPA_C, use_bias=False),
            'v': lin(NODE_C, IPA_C, use_bias=False),
            'qv': lin(NODE_C, 3 * GROUPS * QPOINTS, use_bias=False),
            'kv': lin(NODE_C, 3 * GROUPS * QPOINTS, use_bias=False),
            'vv': lin(NODE_C, 3 * GROUPS * VPOINTS, use_bias=False),
            'bias': lin(EDGE_C, GROUPS, use_bias=False),
            'gamma': jnp.zeros((GROUPS,), jnp.float32),
            'out': lin(EDGE_C * GROUPS + IPA_C + GROUPS * VPOINTS * 4, NODE_C),
        },
        'transition': {
            'ln': ln(NODE_C),
            'l1': lin(NODE_C, NODE_C),
            'l2': lin(NODE_C, NODE_C),
            'l3': lin(NODE_C, NODE_C),
        },
        's2t': lin(NODE_C, 6, zero_w=True),            # BackboneUpdate: weight = 0
        'torsion': {
            'proj0': lin(NODE_C, TORSION_C),
            'proj1': lin(NODE_C, TORSION_C),
            'block0': (lin(TORSION_C, TORSION_C), lin(TORSION_C, TORSION_C)),
            'block1': (lin(TORSION_C, TORSION_C), lin(TORSION_C, TORSION_C)),
            'output': lin(TORSION_C, 14),
        },
        'plddt': {
            'ln': ln(NODE_C),
            'd1': lin(NODE_C, PLDDT_HID),
            'd2': lin(PLDDT_HID, PLDDT_HID),
            'proj': lin(PLDDT_HID, PLDDT_BINS),
        },
    }


def init_tables(seed):
    # TODO(synk): synthetic deterministic stand-ins for residue_constants tables
    # (restype_rigid_group_default_frame etc.), not the literature values.
    k1, k2, k3, k4 = jax.random.split(jax.random.PRNGKey(seed), 4)
    trans = jax.random.normal(k1, (NUM_RESTYPES, 8, 3), jnp.float32) * 0.5
    lit_frames = jnp.zeros((NUM_RESTYPES, 8, 4, 4), jnp.float32) + jnp.eye(4)
    lit_frames = lit_frames.at[..., :3, 3].set(trans)
    group_idx = jax.random.randint(k2, (NUM_RESTYPES, 14), 0, 8, dtype=jnp.int32)
    atom14_mask = (jax.random.uniform(k3, (NUM_RESTYPES, 14)) > 0.3).astype(jnp.float32)
    lit_positions = jax.random.normal(k4, (NUM_RESTYPES, 14, 3), jnp.float32)
    return dict(lit_frames=lit_frames, group_idx=group_idx,
                atom14_mask=atom14_mask, lit_positions=lit_positions)


# ==================================== main ====================================
if __name__ == "__main__":
    N, L = 2, 8
    k1, k2, k3 = jax.random.split(jax.random.PRNGKey(0), 3)
    node = jax.random.normal(k1, (N, L, NODE_C), jnp.float32)
    edge = jax.random.normal(k2, (N, L, L, EDGE_C), jnp.float32)
    aatype = jax.random.randint(k3, (N, L), 0, NUM_RESTYPES, dtype=jnp.int32)

    params = init_params(1)
    tables = init_tables(2)

    fwd = jax.jit(structure_module_forward)
    out = fwd(params, tables, node, edge, aatype)
    out = jax.block_until_ready(out)
    bb_traj, alphas_traj, frames, atoms, atom_mask, plddt = out

    assert len(bb_traj) == N_BLOCKS and len(alphas_traj) == N_BLOCKS
    assert bb_traj[-1][0].shape == (N, L, 3, 3)
    assert alphas_traj[-1].shape == (N, L, 7, 2)
    assert frames[0].shape == (N, L, 8, 3, 3) and frames[1].shape == (N, L, 8, 3)
    assert atoms.shape == (N, L, 14, 3)
    assert atom_mask.shape == (N, L, 14)
    assert plddt.shape == (N, L, PLDDT_BINS)
    assert all(bool(jnp.all(jnp.isfinite(x))) for x in (atoms, plddt, alphas_traj[-1]))

    print("KERNEL_OK")
</pallas_src>

<mosaic_0001>
module attributes {stable_mosaic.version = 11 : i64} {
  func.func @_ln_linear_kernel(%arg0: i32, %arg1: memref<16x64xf32, #tpu.memory_space<vmem>>, %arg2: memref<1x64xf32, #tpu.memory_space<vmem>>, %arg3: memref<1x64xf32, #tpu.memory_space<vmem>>, %arg4: memref<64x64xbf16, #tpu.memory_space<vmem>>, %arg5: memref<1x64xf32, #tpu.memory_space<vmem>>, %arg6: memref<16x64xf32, #tpu.memory_space<vmem>>, %arg7: memref<16x64xf32, #tpu.memory_space<vmem>>) attributes {dimension_semantics = [#tpu.dimension_semantics<parallel>], iteration_bounds = array<i64: 1>, scalar_prefetch = 0 : i64, scratch_operands = 0 : i64, tpu.core_type = #tpu.core_type<tc>, window_params = [{transform_indices = @transform_0, window_bounds = array<i64: 16, 64>}, {pipeline_mode = #tpu.pipeline_mode<synchronous>, transform_indices = @transform_1, window_bounds = array<i64: 1, 64>}, {pipeline_mode = #tpu.pipeline_mode<synchronous>, transform_indices = @transform_2, window_bounds = array<i64: 1, 64>}, {pipeline_mode = #tpu.pipeline_mode<synchronous>, transform_indices = @transform_3, window_bounds = array<i64: 64, 64>}, {pipeline_mode = #tpu.pipeline_mode<synchronous>, transform_indices = @transform_4, window_bounds = array<i64: 1, 64>}, {transform_indices = @transform_5, window_bounds = array<i64: 16, 64>}, {transform_indices = @transform_6, window_bounds = array<i64: 16, 64>}]} {
    %c0 = arith.constant 0 : index
    %c0_0 = arith.constant 0 : index
    %0 = vector.load %arg1[%c0, %c0_0] : memref<16x64xf32, #tpu.memory_space<vmem>>, vector<16x64xf32>
    %c0_1 = arith.constant 0 : index
    %c0_2 = arith.constant 0 : index
    %1 = vector.load %arg2[%c0_1, %c0_2] : memref<1x64xf32, #tpu.memory_space<vmem>>, vector<1x64xf32>
    %c0_3 = arith.constant 0 : index
    %c0_4 = arith.constant 0 : index
    %2 = vector.load %arg3[%c0_3, %c0_4] : memref<1x64xf32, #tpu.memory_space<vmem>>, vector<1x64xf32>
    %cst = arith.constant dense<0.000000e+00> : vector<16xf32>
    %3 = vector.multi_reduction <add>, %0, %cst [1] : vector<16x64xf32> to vector<16xf32>
    %4 = vector.shape_cast %3 : vector<16xf32> to vector<16x1xf32>
    %cst_5 = arith.constant 6.400000e+01 : f32
    %5 = vector.broadcast %cst_5 : f32 to vector<16x1xf32>
    %6 = arith.divf %4, %5 : vector<16x1xf32>
    %7 = vector.broadcast %6 : vector<16x1xf32> to vector<16x64xf32>
    %8 = arith.subf %0, %7 : vector<16x64xf32>
    %9 = arith.mulf %8, %8 : vector<16x64xf32>
    %cst_6 = arith.constant dense<0.000000e+00> : vector<16xf32>
    %10 = vector.multi_reduction <add>, %9, %cst_6 [1] : vector<16x64xf32> to vector<16xf32>
    %11 = vector.shape_cast %10 : vector<16xf32> to vector<16x1xf32>
    %cst_7 = arith.constant 6.400000e+01 : f32
    %12 = vector.broadcast %cst_7 : f32 to vector<16x1xf32>
    %13 = arith.divf %11, %12 : vector<16x1xf32>
    %cst_8 = arith.constant 9.99999974E-6 : f32
    %14 = vector.broadcast %cst_8 : f32 to vector<16x1xf32>
    %15 = arith.addf %13, %14 : vector<16x1xf32>
    %16 = math.rsqrt %15 : vector<16x1xf32>
    %17 = vector.broadcast %16 : vector<16x1xf32> to vector<16x64xf32>
    %18 = arith.mulf %8, %17 : vector<16x64xf32>
    %19 = vector.broadcast %1 : vector<1x64xf32> to vector<16x64xf32>
    %20 = arith.mulf %18, %19 : vector<16x64xf32>
    %21 = vector.broadcast %2 : vector<1x64xf32> to vector<16x64xf32>
    %22 = arith.addf %20, %21 : vector<16x64xf32>
    %c0_9 = arith.constant 0 : index
    %c0_10 = arith.constant 0 : index
    %23 = vector.load %arg6[%c0_9, %c0_10] : memref<16x64xf32, #tpu.memory_space<vmem>>, vector<16x64xf32>
    tpu.vector_store %arg6[%c0_9, %c0_10], %22 {strides = array<i32>} : memref<16x64xf32, #tpu.memory_space<vmem>>, vector<16x64xf32>,
    %24 = arith.truncf %22 : vector<16x64xf32> to vector<16x64xbf16>
    %c0_11 = arith.constant 0 : index
    %c0_12 = arith.constant 0 : index
    %25 = vector.load %arg4[%c0_11, %c0_12] : memref<64x64xbf16, #tpu.memory_space<vmem>>, vector<64x64xbf16>
    %cst_13 = arith.constant dense<0.000000e+00> : vector<16x64xf32>
    %26 = tpu.matmul %24, %25, %cst_13 {dimension_numbers = #tpu.dot_dimension_numbers<[1], [0], [0], [1], [0, 0, 1, 1], [], []>} : vector<16x64xbf16>, vector<64x64xbf16>, vector<16x64xf32> -> vector<16x64xf32>
    %c0_14 = arith.constant 0 : index
    %c0_15 = arith.constant 0 : index
    %27 = vector.load %arg5[%c0_14, %c0_15] : memref<1x64xf32, #tpu.memory_space<vmem>>, vector<1x64xf32>
    %28 = vector.broadcast %27 : vector<1x64xf32> to vector<16x64xf32>
    %29 = arith.addf %26, %28 : vector<16x64xf32>
    %c0_16 = arith.constant 0 : index
    %c0_17 = arith.constant 0 : index
    %30 = vector.load %arg7[%c0_16, %c0_17] : memref<16x64xf32, #tpu.memory_space<vmem>>, vector<16x64xf32>
    tpu.vector_store %arg7[%c0_16, %c0_17], %29 {strides = array<i32>} : memref<16x64xf32, #tpu.memory_space<vmem>>, vector<16x64xf32>,
    return
  }
  func.func @transform_0(%arg0: i32) -> (i32, i32) {
    %c0_i32 = arith.constant 0 : i32
    %c0_i32_0 = arith.constant 0 : i32
    return %arg0, %c0_i32 : i32, i32
  }
  func.func @transform_1(%arg0: i32) -> (i32, i32) {
    %c0_i32 = arith.constant 0 : i32
    %c0_i32_0 = arith.constant 0 : i32
    %c0_i32_1 = arith.constant 0 : i32
    return %c0_i32, %c0_i32_0 : i32, i32
  }
  func.func @transform_2(%arg0: i32) -> (i32, i32) {
    %c0_i32 = arith.constant 0 : i32
    %c0_i32_0 = arith.constant 0 : i32
    %c0_i32_1 = arith.constant 0 : i32
    return %c0_i32, %c0_i32_0 : i32, i32
  }
  func.func @transform_3(%arg0: i32) -> (i32, i32) {
    %c0_i32 = arith.constant 0 : i32
    %c0_i32_0 = arith.constant 0 : i32
    %c0_i32_1 = arith.constant 0 : i32
    return %c0_i32, %c0_i32_0 : i32, i32
  }
  func.func @transform_4(%arg0: i32) -> (i32, i32) {
    %c0_i32 = arith.constant 0 : i32
    %c0_i32_0 = arith.constant 0 : i32
    %c0_i32_1 = arith.constant 0 : i32
    return %c0_i32, %c0_i32_0 : i32, i32
  }
  func.func @transform_5(%arg0: i32) -> (i32, i32) {
    %c0_i32 = arith.constant 0 : i32
    %c0_i32_0 = arith.constant 0 : i32
    return %arg0, %c0_i32 : i32, i32
  }
  func.func @transform_6(%arg0: i32) -> (i32, i32) {
    %c0_i32 = arith.constant 0 : i32
    %c0_i32_0 = arith.constant 0 : i32
    return %arg0, %c0_i32 : i32, i32
  }
}

module attributes {stable_mosaic.version = 11 : i64} {
  func.func @_linear_kernel(%arg0: i32, %arg1: memref<16x64xf32, #tpu.memory_space<vmem>>, %arg2: memref<64x288xbf16, #tpu.memory_space<vmem>>, %arg3: memref<1x288xf32, #tpu.memory_space<vmem>>, %arg4: memref<16x288xf32, #tpu.memory_space<vmem>>) attributes {dimension_semantics = [#tpu.dimension_semantics<parallel>], iteration_bounds = array<i64: 1>, scalar_prefetch = 0 : i64, scratch_operands = 0 : i64, tpu.core_type = #tpu.core_type<tc>, window_params = [{transform_indices = @transform_0, window_bounds = array<i64: 16, 64>}, {pipeline_mode = #tpu.pipeline_mode<synchronous>, transform_indices = @transform_1, window_bounds = array<i64: 64, 288>}, {pipeline_mode = #tpu.pipeline_mode<synchronous>, transform_indices = @transform_2, window_bounds = array<i64: 1, 288>}, {transform_indices = @transform_3, window_bounds = array<i64: 16, 288>}]} {
    %c0 = arith.constant 0 : index
    %c0_0 = arith.constant 0 : index
    %0 = vector.load %arg1[%c0, %c0_0] : memref<16x64xf32, #tpu.memory_space<vmem>>, vector<16x64xf32>
    %1 = arith.truncf %0 : vector<16x64xf32> to vector<16x64xbf16>
    %c0_1 = arith.constant 0 : index
    %c0_2 = arith.constant 0 : index
    %2 = vector.load %arg2[%c0_1, %c0_2] : memref<64x288xbf16, #tpu.memory_space<vmem>>, vector<64x288xbf16>
    %cst = arith.constant dense<0.000000e+00> : vector<16x288xf32>
    %3 = tpu.matmul %1, %2, %cst {dimension_numbers = #tpu.dot_dimension_numbers<[1], [0], [0], [1], [0, 0, 1, 1], [], []>} : vector<16x64xbf16>, vector<64x288xbf16>, vector<16x288xf32> -> vector<16x288xf32>
    %c0_3 = arith.constant 0 : index
    %c0_4 = arith.constant 0 : index
    %4 = vector.load %arg3[%c0_3, %c0_4] : memref<1x288xf32, #tpu.memory_space<vmem>>, vector<1x288xf32>
    %5 = vector.broadcast %4 : vector<1x288xf32> to vector<16x288xf32>
    %6 = arith.addf %3, %5 : vector<16x288xf32>
    %c0_5 = arith.constant 0 : index
    %c0_6 = arith.constant 0 : index
    %7 = vector.load %arg4[%c0_5, %c0_6] : memref<16x288xf32, #tpu.memory_space<vmem>>, vector<16x288xf32>
    tpu.vector_store %arg4[%c0_5, %c0_6], %6 {strides = array<i32>} : memref<16x288xf32, #tpu.memory_space<vmem>>, vector<16x288xf32>,
    return
  }
  func.func @transform_0(%arg0: i32) -> (i32, i32) {
    %c0_i32 = arith.constant 0 : i32
    %c0_i32_0 = arith.constant 0 : i32
    return %arg0, %c0_i32 : i32, i32
  }
  func.func @transform_1(%arg0: i32) -> (i32, i32) {
    %c0_i32 = arith.constant 0 : i32
    %c0_i32_0 = arith.constant 0 : i32
    %c0_i32_1 = arith.constant 0 : i32
    return %c0_i32, %c0_i32_0 : i32, i32
  }
  func.func @transform_2(%arg0: i32) -> (i32, i32) {
    %c0_i32 = arith.constant 0 : i32
    %c0_i32_0 = arith.constant 0 : i32
    %c0_i32_1 = arith.constant 0 : i32
    return %c0_i32, %c0_i32_0 : i32, i32
  }
  func.func @transform_3(%arg0: i32) -> (i32, i32) {
    %c0_i32 = arith.constant 0 : i32
    %c0_i32_0 = arith.constant 0 : i32
    return %arg0, %c0_i32 : i32, i32
  }
}

module attributes {stable_mosaic.version = 11 : i64} {
  func.func @_ln_kernel(%arg0: i32, %arg1: memref<128x32xf32, #tpu.memory_space<vmem>>, %arg2: memref<1x32xf32, #tpu.memory_space<vmem>>, %arg3: memref<1x32xf32, #tpu.memory_space<vmem>>, %arg4: memref<128x32xf32, #tpu.memory_space<vmem>>) attributes {dimension_semantics = [#tpu.dimension_semantics<parallel>], iteration_bounds = array<i64: 1>, scalar_prefetch = 0 : i64, scratch_operands = 0 : i64, tpu.core_type = #tpu.core_type<tc>, window_params = [{transform_indices = @transform_0, window_bounds = array<i64: 128, 32>}, {pipeline_mode = #tpu.pipeline_mode<synchronous>, transform_indices = @transform_1, window_bounds = array<i64: 1, 32>}, {pipeline_mode = #tpu.pipeline_mode<synchronous>, transform_indices = @transform_2, window_bounds = array<i64: 1, 32>}, {transform_indices = @transform_3, window_bounds = array<i64: 128, 32>}]} {
    %c0 = arith.constant 0 : index
    %c0_0 = arith.constant 0 : index
    %0 = vector.load %arg1[%c0, %c0_0] : memref<128x32xf32, #tpu.memory_space<vmem>>, vector<128x32xf32>
    %c0_1 = arith.constant 0 : index
    %c0_2 = arith.constant 0 : index
    %1 = vector.load %arg2[%c0_1, %c0_2] : memref<1x32xf32, #tpu.memory_space<vmem>>, vector<1x32xf32>
    %c0_3 = arith.constant 0 : index
    %c0_4 = arith.constant 0 : index
    %2 = vector.load %arg3[%c0_3, %c0_4] : memref<1x32xf32, #tpu.memory_space<vmem>>, vector<1x32xf32>
    %cst = arith.constant dense<0.000000e+00> : vector<128xf32>
    %3 = vector.multi_reduction <add>, %0, %cst [1] : vector<128x32xf32> to vector<128xf32>
    %4 = vector.shape_cast %3 : vector<128xf32> to vector<128x1xf32>
    %cst_5 = arith.constant 3.200000e+01 : f32
    %5 = vector.broadcast %cst_5 : f32 to vector<128x1xf32>
    %6 = arith.divf %4, %5 : vector<128x1xf32>
    %7 = vector.broadcast %6 : vector<128x1xf32> to vector<128x32xf32>
    %8 = arith.subf %0, %7 : vector<128x32xf32>
    %9 = arith.mulf %8, %8 : vector<128x32xf32>
    %cst_6 = arith.constant dense<0.000000e+00> : vector<128xf32>
    %10 = vector.multi_reduction <add>, %9, %cst_6 [1] : vector<128x32xf32> to vector<128xf32>
    %11 = vector.shape_cast %10 : vector<128xf32> to vector<128x1xf32>
    %cst_7 = arith.constant 3.200000e+01 : f32
    %12 = vector.broadcast %cst_7 : f32 to vector<128x1xf32>
    %13 = arith.divf %11, %12 : vector<128x1xf32>
    %cst_8 = arith.constant 9.99999974E-6 : f32
    %14 = vector.broadcast %cst_8 : f32 to vector<128x1xf32>
    %15 = arith.addf %13, %14 : vector<128x1xf32>
    %16 = math.rsqrt %15 : vector<128x1xf32>
    %17 = vector.broadcast %16 : vector<128x1xf32> to vector<128x32xf32>
    %18 = arith.mulf %8, %17 : vector<128x32xf32>
    %19 = vector.broadcast %1 : vector<1x32xf32> to vector<128x32xf32>
    %20 = arith.mulf %18, %19 : vector<128x32xf32>
    %21 = vector.broadcast %2 : vector<1x32xf32> to vector<128x32xf32>
    %22 = arith.addf %20, %21 : vector<128x32xf32>
    %c0_9 = arith.constant 0 : index
    %c0_10 = arith.constant 0 : index
    %23 = vector.load %arg4[%c0_9, %c0_10] : memref<128x32xf32, #tpu.memory_space<vmem>>, vector<128x32xf32>
    tpu.vector_store %arg4[%c0_9, %c0_10], %22 {strides = array<i32>} : memref<128x32xf32, #tpu.memory_space<vmem>>, vector<128x32xf32>,
    return
  }
  func.func @transform_0(%arg0: i32) -> (i32, i32) {
    %c0_i32 = arith.constant 0 : i32
    %c0_i32_0 = arith.constant 0 : i32
    return %arg0, %c0_i32 : i32, i32
  }
  func.func @transform_1(%arg0: i32) -> (i32, i32) {
    %c0_i32 = arith.constant 0 : i32
    %c0_i32_0 = arith.constant 0 : i32
    %c0_i32_1 = arith.constant 0 : i32
    return %c0_i32, %c0_i32_0 : i32, i32
  }
  func.func @transform_2(%arg0: i32) -> (i32, i32) {
    %c0_i32 = arith.constant 0 : i32
    %c0_i32_0 = arith.constant 0 : i32
    %c0_i32_1 = arith.constant 0 : i32
    return %c0_i32, %c0_i32_0 : i32, i32
  }
  func.func @transform_3(%arg0: i32) -> (i32, i32) {
    %c0_i32 = arith.constant 0 : i32
    %c0_i32_0 = arith.constant 0 : i32
    return %arg0, %c0_i32 : i32, i32
  }
}

module attributes {stable_mosaic.version = 11 : i64} {
  func.func @_ipa_attn_kernel(%arg0: i32, %arg1: i32, %arg2: i32, %arg3: memref<1x4x8x20xbf16, #tpu.memory_space<vmem>>, %arg4: memref<1x4x8x20xbf16, #tpu.memory_space<vmem>>, %arg5: memref<1x4x8x32xbf16, #tpu.memory_space<vmem>>, %arg6: memref<1x4x8xf32, #tpu.memory_space<vmem>>, %arg7: memref<1x4x8x8xf32, #tpu.memory_space<vmem>>, %arg8: memref<1x8x8x32xbf16, #tpu.memory_space<vmem>>, %arg9: memref<1x8x4x32xf32, #tpu.memory_space<vmem>>, %arg10: memref<1x8x4x32xf32, #tpu.memory_space<vmem>>, %arg11: memref<4x8x1xf32, #tpu.memory_space<vmem>>, %arg12: memref<4x8x1xf32, #tpu.memory_space<vmem>>, %arg13: memref<4x8x32xf32, #tpu.memory_space<vmem>>, %arg14: memref<8x4x32xf32, #tpu.memory_space<vmem>>) attributes {dimension_semantics = [#tpu.dimension_semantics<parallel>, #tpu.dimension_semantics<parallel>, #tpu.dimension_semantics<arbitrary>], iteration_bounds = array<i64: 1, 2, 1>, scalar_prefetch = 0 : i64, scratch_operands = 4 : i64, tpu.core_type = #tpu.core_type<tc>, window_params = [{transform_indices = @transform_0, window_bounds = array<i64: 1, 4, 8, 20>}, {transform_indices = @transform_1, window_bounds = array<i64: 1, 4, 8, 20>}, {transform_indices = @transform_2, window_bounds = array<i64: 1, 4, 8, 32>}, {transform_indices = @transform_3, window_bounds = array<i64: 1, 4, 8>}, {transform_indices = @transform_4, window_bounds = array<i64: 1, 4, 8, 8>}, {transform_indices = @transform_5, window_bounds = array<i64: 1, 8, 8, 32>}, {transform_indices = @transform_6, window_bounds = array<i64: 1, 8, 4, 32>}, {transform_indices = @transform_7, window_bounds = array<i64: 1, 8, 4, 32>}]} {
    %c0_i32 = arith.constant 0 : i32
    %0 = arith.cmpi eq, %arg2, %c0_i32 : i32
    %1 = arith.extui %0 : i1 to i32
    %c0_i32_0 = arith.constant 0 : i32
    %2 = arith.cmpi ne, %1, %c0_i32_0 : i32
    scf.if %2 {
      %cst_53 = arith.constant 0xFF800000 : f32
      %57 = vector.broadcast %cst_53 : f32 to vector<4x8x1xf32>
      %c0_54 = arith.constant 0 : index
      %c0_55 = arith.constant 0 : index
      %c0_56 = arith.constant 0 : index
      %58 = vector.load %arg11[%c0_54, %c0_55, %c0_56] : memref<4x8x1xf32, #tpu.memory_space<vmem>>, vector<4x8x1xf32>
      tpu.vector_store %arg11[%c0_54, %c0_55, %c0_56], %57 {strides = array<i32>} : memref<4x8x1xf32, #tpu.memory_space<vmem>>, vector<4x8x1xf32>,
      %cst_57 = arith.constant 0.000000e+00 : f32
      %59 = vector.broadcast %cst_57 : f32 to vector<4x8x1xf32>
      %c0_58 = arith.constant 0 : index
      %c0_59 = arith.constant 0 : index
      %c0_60 = arith.constant 0 : index
      %60 = vector.load %arg12[%c0_58, %c0_59, %c0_60] : memref<4x8x1xf32, #tpu.memory_space<vmem>>, vector<4x8x1xf32>
      tpu.vector_store %arg12[%c0_58, %c0_59, %c0_60], %59 {strides = array<i32>} : memref<4x8x1xf32, #tpu.memory_space<vmem>>, vector<4x8x1xf32>,
      %cst_61 = arith.constant 0.000000e+00 : f32
      %61 = vector.broadcast %cst_61 : f32 to vector<4x8x32xf32>
      %c0_62 = arith.constant 0 : index
      %c0_63 = arith.constant 0 : index
      %c0_64 = arith.constant 0 : index
      %62 = vector.load %arg13[%c0_62, %c0_63, %c0_64] : memref<4x8x32xf32, #tpu.memory_space<vmem>>, vector<4x8x32xf32>
      tpu.vector_store %arg13[%c0_62, %c0_63, %c0_64], %61 {strides = array<i32>} : memref<4x8x32xf32, #tpu.memory_space<vmem>>, vector<4x8x32xf32>,
      %cst_65 = arith.constant 0.000000e+00 : f32
      %63 = vector.broadcast %cst_65 : f32 to vector<8x4x32xf32>
      %c0_66 = arith.constant 0 : index
      %c0_67 = arith.constant 0 : index
      %c0_68 = arith.constant 0 : index
      %64 = vector.load %arg14[%c0_66, %c0_67, %c0_68] : memref<8x4x32xf32, #tpu.memory_space<vmem>>, vector<8x4x32xf32>
      tpu.vector_store %arg14[%c0_66, %c0_67, %c0_68], %63 {strides = array<i32>} : memref<8x4x32xf32, #tpu.memory_space<vmem>>, vector<8x4x32xf32>,
    } else {
    }
    %c0 = arith.constant 0 : index
    %c0_1 = arith.constant 0 : index
    %c0_2 = arith.constant 0 : index
    %c0_3 = arith.constant 0 : index
    %3 = vector.load %arg3[%c0, %c0_1, %c0_2, %c0_3] : memref<1x4x8x20xbf16, #tpu.memory_space<vmem>>, vector<1x4x8x20xbf16>
    %4 = vector.shape_cast %3 : vector<1x4x8x20xbf16> to vector<4x8x20xbf16>
    %c0_4 = arith.constant 0 : index
    %c0_5 = arith.constant 0 : index
    %c0_6 = arith.constant 0 : index
    %c0_7 = arith.constant 0 : index
    %5 = vector.load %arg4[%c0_4, %c0_5, %c0_6, %c0_7] : memref<1x4x8x20xbf16, #tpu.memory_space<vmem>>, vector<1x4x8x20xbf16>
    %6 = vector.shape_cast %5 : vector<1x4x8x20xbf16> to vector<4x8x20xbf16>
    %cst = arith.constant dense<0.000000e+00> : vector<4x8x8xf32>
    %7 = tpu.matmul %4, %6, %cst {dimension_numbers = #tpu.dot_dimension_numbers<[2], [2], [1], [1], [0, 0, 0, 1, 1, 1], [0], [0]>} : vector<4x8x20xbf16>, vector<4x8x20xbf16>, vector<4x8x8xf32> -> vector<4x8x8xf32>
    %c0_8 = arith.constant 0 : index
    %c0_9 = arith.constant 0 : index
    %c0_10 = arith.constant 0 : index
    %c0_11 = arith.constant 0 : index
    %8 = vector.load %arg7[%c0_8, %c0_9, %c0_10, %c0_11] : memref<1x4x8x8xf32, #tpu.memory_space<vmem>>, vector<1x4x8x8xf32>
    %9 = vector.shape_cast %8 : vector<1x4x8x8xf32> to vector<4x8x8xf32>
    %10 = arith.addf %7, %9 : vector<4x8x8xf32>
    %c0_12 = arith.constant 0 : index
    %c0_13 = arith.constant 0 : index
    %c0_14 = arith.constant 0 : index
    %11 = vector.load %arg6[%c0_12, %c0_13, %c0_14] : memref<1x4x8xf32, #tpu.memory_space<vmem>>, vector<1x4x8xf32>
    %12 = vector.shape_cast %11 : vector<1x4x8xf32> to vector<4x8xf32>
    %13 = vector.shape_cast %12 : vector<4x8xf32> to vector<4x1x8xf32>
    %14 = vector.broadcast %13 : vector<4x1x8xf32> to vector<4x8x8xf32>
    %15 = arith.subf %10, %14 : vector<4x8x8xf32>
    %c0_15 = arith.constant 0 : index
    %c0_16 = arith.constant 0 : index
    %c0_17 = arith.constant 0 : index
    %16 = vector.load %arg11[%c0_15, %c0_16, %c0_17] : memref<4x8x1xf32, #tpu.memory_space<vmem>>, vector<4x8x1xf32>
    %cst_18 = arith.constant dense<0xFF800000> : vector<4x8xf32>
    %17 = vector.multi_reduction <maximumf>, %15, %cst_18 [2] : vector<4x8x8xf32> to vector<4x8xf32>
    %18 = vector.shape_cast %17 : vector<4x8xf32> to vector<4x8x1xf32>
    %19 = arith.maximumf %16, %18 : vector<4x8x1xf32>
    %20 = arith.subf %16, %19 : vector<4x8x1xf32>
    %21 = math.exp %20 : vector<4x8x1xf32>
    %22 = vector.broadcast %19 : vector<4x8x1xf32> to vector<4x8x8xf32>
    %23 = arith.subf %15, %22 : vector<4x8x8xf32>
    %24 = math.exp %23 : vector<4x8x8xf32>
    %c0_19 = arith.constant 0 : index
    %c0_20 = arith.constant 0 : index
    %c0_21 = arith.constant 0 : index
    %25 = vector.load %arg12[%c0_19, %c0_20, %c0_21] : memref<4x8x1xf32, #tpu.memory_space<vmem>>, vector<4x8x1xf32>
    %26 = arith.mulf %21, %25 : vector<4x8x1xf32>
    %cst_22 = arith.constant dense<0.000000e+00> : vector<4x8xf32>
    %27 = vector.multi_reduction <add>, %24, %cst_22 [2] : vector<4x8x8xf32> to vector<4x8xf32>
    %28 = vector.shape_cast %27 : vector<4x8xf32> to vector<4x8x1xf32>
    %29 = arith.addf %26, %28 : vector<4x8x1xf32>
    %c0_23 = arith.constant 0 : index
    %c0_24 = arith.constant 0 : index
    %c0_25 = arith.constant 0 : index
    %30 = vector.load %arg12[%c0_23, %c0_24, %c0_25] : memref<4x8x1xf32, #tpu.memory_space<vmem>>, vector<4x8x1xf32>
    tpu.vector_store %arg12[%c0_23, %c0_24, %c0_25], %29 {strides = array<i32>} : memref<4x8x1xf32, #tpu.memory_space<vmem>>, vector<4x8x1xf32>,
    %c0_26 = arith.constant 0 : index
    %c0_27 = arith.constant 0 : index
    %c0_28 = arith.constant 0 : index
    %31 = vector.load %arg11[%c0_26, %c0_27, %c0_28] : memref<4x8x1xf32, #tpu.memory_space<vmem>>, vector<4x8x1xf32>
    tpu.vector_store %arg11[%c0_26, %c0_27, %c0_28], %19 {strides = array<i32>} : memref<4x8x1xf32, #tpu.memory_space<vmem>>, vector<4x8x1xf32>,
    %c0_29 = arith.constant 0 : index
    %c0_30 = arith.constant 0 : index
    %c0_31 = arith.constant 0 : index
    %32 = vector.load %arg13[%c0_29, %c0_30, %c0_31] : memref<4x8x32xf32, #tpu.memory_space<vmem>>, vector<4x8x32xf32>
    %33 = vector.broadcast %21 : vector<4x8x1xf32> to vector<4x8x32xf32>
    %34 = arith.mulf %33, %32 : vector<4x8x32xf32>
    %35 = arith.truncf %24 : vector<4x8x8xf32> to vector<4x8x8xbf16>
    %c0_32 = arith.constant 0 : index
    %c0_33 = arith.constant 0 : index
    %c0_34 = arith.constant 0 : index
    %c0_35 = arith.constant 0 : index
    %36 = vector.load %arg5[%c0_32, %c0_33, %c0_34, %c0_35] : memref<1x4x8x32xbf16, #tpu.memory_space<vmem>>, vector<1x4x8x32xbf16>
    %37 = vector.shape_cast %36 : vector<1x4x8x32xbf16> to vector<4x8x32xbf16>
    %cst_36 = arith.constant dense<0.000000e+00> : vector<4x8x32xf32>
    %38 = tpu.matmul %35, %37, %cst_36 {dimension_numbers = #tpu.dot_dimension_numbers<[2], [1], [1], [2], [0, 0, 0, 1, 1, 2], [0], [0]>} : vector<4x8x8xbf16>, vector<4x8x32xbf16>, vector<4x8x32xf32> -> vector<4x8x32xf32>
    %39 = arith.addf %34, %38 : vector<4x8x32xf32>
    %c0_37 = arith.constant 0 : index
    %c0_38 = arith.constant 0 : index
    %c0_39 = arith.constant 0 : index
    %40 = vector.load %arg13[%c0_37, %c0_38, %c0_39] : memref<4x8x32xf32, #tpu.memory_space<vmem>>, vector<4x8x32xf32>
    tpu.vector_store %arg13[%c0_37, %c0_38, %c0_39], %39 {strides = array<i32>} : memref<4x8x32xf32, #tpu.memory_space<vmem>>, vector<4x8x32xf32>,
    %41 = tpu.transpose %24, [1, 0, 2] : vector<4x8x8xf32> -> vector<8x4x8xf32>
    %42 = arith.truncf %41 : vector<8x4x8xf32> to vector<8x4x8xbf16>
    %43 = vector.shape_cast %21 : vector<4x8x1xf32> to vector<4x8xf32>
    %44 = tpu.transpose %43, [1, 0] : vector<4x8xf32> -> vector<8x4xf32>
    %45 = vector.shape_cast %44 : vector<8x4xf32> to vector<8x4x1xf32>
    %c0_40 = arith.constant 0 : index
    %c0_41 = arith.constant 0 : index
    %c0_42 = arith.constant 0 : index
    %46 = vector.load %arg14[%c0_40, %c0_41, %c0_42] : memref<8x4x32xf32, #tpu.memory_space<vmem>>, vector<8x4x32xf32>
    %47 = vector.broadcast %45 : vector<8x4x1xf32> to vector<8x4x32xf32>
    %48 = arith.mulf %47, %46 : vector<8x4x32xf32>
    %c0_43 = arith.constant 0 : index
    %c0_44 = arith.constant 0 : index
    %c0_45 = arith.constant 0 : index
    %c0_46 = arith.constant 0 : index
    %49 = vector.load %arg8[%c0_43, %c0_44, %c0_45, %c0_46] : memref<1x8x8x32xbf16, #tpu.memory_space<vmem>>, vector<1x8x8x32xbf16>
    %50 = vector.shape_cast %49 : vector<1x8x8x32xbf16> to vector<8x8x32xbf16>
    %cst_47 = arith.constant dense<0.000000e+00> : vector<8x4x32xf32>
    %51 = tpu.matmul %42, %50, %cst_47 {dimension_numbers = #tpu.dot_dimension_numbers<[2], [1], [1], [2], [0, 0, 0, 1, 1, 2], [0], [0]>} : vector<8x4x8xbf16>, vector<8x8x32xbf16>, vector<8x4x32xf32> -> vector<8x4x32xf32>
    %52 = arith.addf %48, %51 : vector<8x4x32xf32>
    %c0_48 = arith.constant 0 : index
    %c0_49 = arith.constant 0 : index
    %c0_50 = arith.constant 0 : index
    %53 = vector.load %arg14[%c0_48, %c0_49, %c0_50] : memref<8x4x32xf32, #tpu.memory_space<vmem>>, vector<8x4x32xf32>
    tpu.vector_store %arg14[%c0_48, %c0_49, %c0_50], %52 {strides = array<i32>} : memref<8x4x32xf32, #tpu.memory_space<vmem>>, vector<8x4x32xf32>,
    %c0_i32_51 = arith.constant 0 : i32
    %54 = arith.cmpi eq, %arg2, %c0_i32_51 : i32
    %55 = arith.extui %54 : i1 to i32
    %c0_i32_52 = arith.constant 0 : i32
    %56 = arith.cmpi ne, %55, %c0_i32_52 : i32
    scf.if %56 {
      %c0_53 = arith.constant 0 : index
      %c0_54 = arith.constant 0 : index
      %c0_55 = arith.constant 0 : index
      %57 = vector.load %arg12[%c0_53, %c0_54, %c0_55] : memref<4x8x1xf32, #tpu.memory_space<vmem>>, vector<4x8x1xf32>
      %58 = tpu.reciprocal %57 {approx = true} : vector<4x8x1xf32> -> vector<4x8x1xf32>
      %59 = vector.shape_cast %58 : vector<4x8x1xf32> to vector<4x8xf32>
      %60 = tpu.transpose %59, [1, 0] : vector<4x8xf32> -> vector<8x4xf32>
      %61 = vector.shape_cast %60 : vector<8x4xf32> to vector<8x4x1xf32>
      %c0_56 = arith.constant 0 : index
      %c0_57 = arith.constant 0 : index
      %c0_58 = arith.constant 0 : index
      %62 = vector.load %arg14[%c0_56, %c0_57, %c0_58] : memref<8x4x32xf32, #tpu.memory_space<vmem>>, vector<8x4x32xf32>
      %63 = vector.broadcast %61 : vector<8x4x1xf32> to vector<8x4x32xf32>
      %64 = arith.mulf %62, %63 : vector<8x4x32xf32>
      %c0_59 = arith.constant 0 : index
      %c0_60 = arith.constant 0 : index
      %c0_61 = arith.constant 0 : index
      %c0_62 = arith.constant 0 : index
      %65 = vector.load %arg9[%c0_59, %c0_60, %c0_61, %c0_62] : memref<1x8x4x32xf32, #tpu.memory_space<vmem>>, vector<1x8x4x32xf32>
      %66 = vector.shape_cast %65 : vector<1x8x4x32xf32> to vector<8x4x32xf32>
      %67 = vector.shape_cast %64 : vector<8x4x32xf32> to vector<1x8x4x32xf32>
      tpu.vector_store %arg9[%c0_59, %c0_60, %c0_61, %c0_62], %67 {strides = array<i32>} : memref<1x8x4x32xf32, #tpu.memory_space<vmem>>, vector<1x8x4x32xf32>,
      %c0_63 = arith.constant 0 : index
      %c0_64 = arith.constant 0 : index
      %c0_65 = arith.constant 0 : index
      %68 = vector.load %arg13[%c0_63, %c0_64, %c0_65] : memref<4x8x32xf32, #tpu.memory_space<vmem>>, vector<4x8x32xf32>
      %69 = vector.broadcast %58 : vector<4x8x1xf32> to vector<4x8x32xf32>
      %70 = arith.mulf %68, %69 : vector<4x8x32xf32>
      %71 = tpu.transpose %70, [1, 0, 2] : vector<4x8x32xf32> -> vector<8x4x32xf32>
      %c0_66 = arith.constant 0 : index
      %c0_67 = arith.constant 0 : index
      %c0_68 = arith.constant 0 : index
      %c0_69 = arith.constant 0 : index
      %72 = vector.load %arg10[%c0_66, %c0_67, %c0_68, %c0_69] : memref<1x8x4x32xf32, #tpu.memory_space<vmem>>, vector<1x8x4x32xf32>
      %73 = vector.shape_cast %72 : vector<1x8x4x32xf32> to vector<8x4x32xf32>
      %74 = vector.shape_cast %71 : vector<8x4x32xf32> to vector<1x8x4x32xf32>
      tpu.vector_store %arg10[%c0_66, %c0_67, %c0_68, %c0_69], %74 {strides = array<i32>} : memref<1x8x4x32xf32, #tpu.memory_space<vmem>>, vector<1x8x4x32xf32>,
    } else {
    }
    return
  }
  func.func @transform_0(%arg0: i32, %arg1: i32, %arg2: i32) -> (i32, i32, i32, i32) {
    %c0_i32 = arith.constant 0 : i32
    %c0_i32_0 = arith.constant 0 : i32
    %c0_i32_1 = arith.constant 0 : i32
    return %arg1, %c0_i32, %arg0, %c0_i32_0 : i32, i32, i32, i32
  }
  func.func @transform_1(%arg0: i32, %arg1: i32, %arg2: i32) -> (i32, i32, i32, i32) {
    %c0_i32 = arith.constant 0 : i32
    %c0_i32_0 = arith.constant 0 : i32
    %c0_i32_1 = arith.constant 0 : i32
    return %arg1, %c0_i32, %arg2, %c0_i32_0 : i32, i32, i32, i32
  }
  func.func @transform_2(%arg0: i32, %arg1: i32, %arg2: i32) -> (i32, i32, i32, i32) {
    %c0_i32 = arith.constant 0 : i32
    %c0_i32_0 = arith.constant 0 : i32
    %c0_i32_1 = arith.constant 0 : i32
    return %arg1, %c0_i32, %arg2, %c0_i32_0 : i32, i32, i32, i32
  }
  func.func @transform_3(%arg0: i32, %arg1: i32, %arg2: i32) -> (i32, i32, i32) {
    %c0_i32 = arith.constant 0 : i32
    %c0_i32_0 = arith.constant 0 : i32
    return %arg1, %c0_i32, %arg2 : i32, i32, i32
  }
  func.func @transform_4(%arg0: i32, %arg1: i32, %arg2: i32) -> (i32, i32, i32, i32) {
    %c0_i32 = arith.constant 0 : i32
    %c0_i32_0 = arith.constant 0 : i32
    return %arg1, %c0_i32, %arg0, %arg2 : i32, i32, i32, i32
  }
  func.func @transform_5(%arg0: i32, %arg1: i32, %arg2: i32) -> (i32, i32, i32, i32) {
    %c0_i32 = arith.constant 0 : i32
    %c0_i32_0 = arith.constant 0 : i32
    return %arg1, %arg0, %arg2, %c0_i32 : i32, i32, i32, i32
  }
  func.func @transform_6(%arg0: i32, %arg1: i32, %arg2: i32) -> (i32, i32, i32, i32) {
    %c0_i32 = arith.constant 0 : i32
    %c0_i32_0 = arith.constant 0 : i32
    %c0_i32_1 = arith.constant 0 : i32
    return %arg1, %arg0, %c0_i32, %c0_i32_0 : i32, i32, i32, i32
  }
  func.func @transform_7(%arg0: i32, %arg1: i32, %arg2: i32) -> (i32, i32, i32, i32) {
    %c0_i32 = arith.constant 0 : i32
    %c0_i32_0 = arith.constant 0 : i32
    %c0_i32_1 = arith.constant 0 : i32
    return %arg1, %arg0, %c0_i32, %c0_i32_0 : i32, i32, i32, i32
  }
}

module attributes {stable_mosaic.version = 11 : i64} {
  func.func @_ipa_out_kernel(%arg0: i32, %arg1: memref<16x128xf32, #tpu.memory_space<vmem>>, %arg2: memref<16x32xf32, #tpu.memory_space<vmem>>, %arg3: memref<16x96xf32, #tpu.memory_space<vmem>>, %arg4: memref<16x32xf32, #tpu.memory_space<vmem>>, %arg5: memref<16x64xf32, #tpu.memory_space<vmem>>, %arg6: memref<128x64xbf16, #tpu.memory_space<vmem>>, %arg7: memref<32x64xbf16, #tpu.memory_space<vmem>>, %arg8: memref<96x64xbf16, #tpu.memory_space<vmem>>, %arg9: memref<32x64xbf16, #tpu.memory_space<vmem>>, %arg10: memref<1x64xf32, #tpu.memory_space<vmem>>, %arg11: memref<16x64xf32, #tpu.memory_space<vmem>>) attributes {dimension_semantics = [#tpu.dimension_semantics<parallel>], iteration_bounds = array<i64: 1>, scalar_prefetch = 0 : i64, scratch_operands = 0 : i64, tpu.core_type = #tpu.core_type<tc>, window_params = [{transform_indices = @transform_0, window_bounds = array<i64: 16, 128>}, {transform_indices = @transform_1, window_bounds = array<i64: 16, 32>}, {transform_indices = @transform_2, window_bounds = array<i64: 16, 96>}, {transform_indices = @transform_3, window_bounds = array<i64: 16, 32>}, {transform_indices = @transform_4, window_bounds = array<i64: 16, 64>}, {pipeline_mode = #tpu.pipeline_mode<synchronous>, transform_indices = @transform_5, window_bounds = array<i64: 128, 64>}, {pipeline_mode = #tpu.pipeline_mode<synchronous>, transform_indices = @transform_6, window_bounds = array<i64: 32, 64>}, {pipeline_mode = #tpu.pipeline_mode<synchronous>, transform_indices = @transform_7, window_bounds = array<i64: 96, 64>}, {pipeline_mode = #tpu.pipeline_mode<synchronous>, transform_indices = @transform_8, window_bounds = array<i64: 32, 64>}, {pipeline_mode = #tpu.pipeline_mode<synchronous>, transform_indices = @transform_9, window_bounds = array<i64: 1, 64>}, {transform_indices = @transform_10, window_bounds = array<i64: 16, 64>}]} {
    %c0 = arith.constant 0 : index
    %c0_0 = arith.constant 0 : index
    %0 = vector.load %arg1[%c0, %c0_0] : memref<16x128xf32, #tpu.memory_space<vmem>>, vector<16x128xf32>
    %1 = arith.truncf %0 : vector<16x128xf32> to vector<16x128xbf16>
    %c0_1 = arith.constant 0 : index
    %c0_2 = arith.constant 0 : index
    %2 = vector.load %arg6[%c0_1, %c0_2] : memref<128x64xbf16, #tpu.memory_space<vmem>>, vector<128x64xbf16>
    %cst = arith.constant dense<0.000000e+00> : vector<16x64xf32>
    %3 = tpu.matmul %1, %2, %cst {dimension_numbers = #tpu.dot_dimension_numbers<[1], [0], [0], [1], [0, 0, 1, 1], [], []>} : vector<16x128xbf16>, vector<128x64xbf16>, vector<16x64xf32> -> vector<16x64xf32>
    %c0_3 = arith.constant 0 : index
    %c0_4 = arith.constant 0 : index
    %4 = vector.load %arg10[%c0_3, %c0_4] : memref<1x64xf32, #tpu.memory_space<vmem>>, vector<1x64xf32>
    %5 = vector.broadcast %4 : vector<1x64xf32> to vector<16x64xf32>
    %6 = arith.addf %3, %5 : vector<16x64xf32>
    %c0_5 = arith.constant 0 : index
    %c0_6 = arith.constant 0 : index
    %7 = vector.load %arg2[%c0_5, %c0_6] : memref<16x32xf32, #tpu.memory_space<vmem>>, vector<16x32xf32>
    %8 = arith.truncf %7 : vector<16x32xf32> to vector<16x32xbf16>
    %c0_7 = arith.constant 0 : index
    %c0_8 = arith.constant 0 : index
    %9 = vector.load %arg7[%c0_7, %c0_8] : memref<32x64xbf16, #tpu.memory_space<vmem>>, vector<32x64xbf16>
    %cst_9 = arith.constant dense<0.000000e+00> : vector<16x64xf32>
    %10 = tpu.matmul %8, %9, %cst_9 {dimension_numbers = #tpu.dot_dimension_numbers<[1], [0], [0], [1], [0, 0, 1, 1], [], []>} : vector<16x32xbf16>, vector<32x64xbf16>, vector<16x64xf32> -> vector<16x64xf32>
    %11 = arith.addf %6, %10 : vector<16x64xf32>
    %c0_10 = arith.constant 0 : index
    %c0_11 = arith.constant 0 : index
    %12 = vector.load %arg3[%c0_10, %c0_11] : memref<16x96xf32, #tpu.memory_space<vmem>>, vector<16x96xf32>
    %13 = arith.truncf %12 : vector<16x96xf32> to vector<16x96xbf16>
    %c0_12 = arith.constant 0 : index
    %c0_13 = arith.constant 0 : index
    %14 = vector.load %arg8[%c0_12, %c0_13] : memref<96x64xbf16, #tpu.memory_space<vmem>>, vector<96x64xbf16>
    %cst_14 = arith.constant dense<0.000000e+00> : vector<16x64xf32>
    %15 = tpu.matmul %13, %14, %cst_14 {dimension_numbers = #tpu.dot_dimension_numbers<[1], [0], [0], [1], [0, 0, 1, 1], [], []>} : vector<16x96xbf16>, vector<96x64xbf16>, vector<16x64xf32> -> vector<16x64xf32>
    %16 = arith.addf %11, %15 : vector<16x64xf32>
    %c0_15 = arith.constant 0 : index
    %c0_16 = arith.constant 0 : index
    %17 = vector.load %arg4[%c0_15, %c0_16] : memref<16x32xf32, #tpu.memory_space<vmem>>, vector<16x32xf32>
    %18 = arith.truncf %17 : vector<16x32xf32> to vector<16x32xbf16>
    %c0_17 = arith.constant 0 : index
    %c0_18 = arith.constant 0 : index
    %19 = vector.load %arg9[%c0_17, %c0_18] : memref<32x64xbf16, #tpu.memory_space<vmem>>, vector<32x64xbf16>
    %cst_19 = arith.constant dense<0.000000e+00> : vector<16x64xf32>
    %20 = tpu.matmul %18, %19, %cst_19 {dimension_numbers = #tpu.dot_dimension_numbers<[1], [0], [0], [1], [0, 0, 1, 1], [], []>} : vector<16x32xbf16>, vector<32x64xbf16>, vector<16x64xf32> -> vector<16x64xf32>
    %21 = arith.addf %16, %20 : vector<16x64xf32>
    %c0_20 = arith.constant 0 : index
    %c0_21 = arith.constant 0 : index
    %22 = vector.load %arg5[%c0_20, %c0_21] : memref<16x64xf32, #tpu.memory_space<vmem>>, vector<16x64xf32>
    %23 = arith.addf %22, %21 : vector<16x64xf32>
    %c0_22 = arith.constant 0 : index
    %c0_23 = arith.constant 0 : index
    %24 = vector.load %arg11[%c0_22, %c0_23] : memref<16x64xf32, #tpu.memory_space<vmem>>, vector<16x64xf32>
    tpu.vector_store %arg11[%c0_22, %c0_23], %23 {strides = array<i32>} : memref<16x64xf32, #tpu.memory_space<vmem>>, vector<16x64xf32>,
    return
  }
  func.func @transform_0(%arg0: i32) -> (i32, i32) {
    %c0_i32 = arith.constant 0 : i32
    %c0_i32_0 = arith.constant 0 : i32
    return %arg0, %c0_i32 : i32, i32
  }
  func.func @transform_1(%arg0: i32) -> (i32, i32) {
    %c0_i32 = arith.constant 0 : i32
    %c0_i32_0 = arith.constant 0 : i32
    return %arg0, %c0_i32 : i32, i32
  }
  func.func @transform_2(%arg0: i32) -> (i32, i32) {
    %c0_i32 = arith.constant 0 : i32
    %c0_i32_0 = arith.constant 0 : i32
    return %arg0, %c0_i32 : i32, i32
  }
  func.func @transform_3(%arg0: i32) -> (i32, i32) {
    %c0_i32 = arith.constant 0 : i32
    %c0_i32_0 = arith.constant 0 : i32
    return %arg0, %c0_i32 : i32, i32
  }
  func.func @transform_4(%arg0: i32) -> (i32, i32) {
    %c0_i32 = arith.constant 0 : i32
    %c0_i32_0 = arith.constant 0 : i32
    return %arg0, %c0_i32 : i32, i32
  }
  func.func @transform_5(%arg0: i32) -> (i32, i32) {
    %c0_i32 = arith.constant 0 : i32
    %c0_i32_0 = arith.constant 0 : i32
    %c0_i32_1 = arith.constant 0 : i32
    return %c0_i32, %c0_i32_0 : i32, i32
  }
  func.func @transform_6(%arg0: i32) -> (i32, i32) {
    %c0_i32 = arith.constant 0 : i32
    %c0_i32_0 = arith.constant 0 : i32
    %c0_i32_1 = arith.constant 0 : i32
    return %c0_i32, %c0_i32_0 : i32, i32
  }
  func.func @transform_7(%arg0: i32) -> (i32, i32) {
    %c0_i32 = arith.constant 0 : i32
    %c0_i32_0 = arith.constant 0 : i32
    %c0_i32_1 = arith.constant 0 : i32
    return %c0_i32, %c0_i32_0 : i32, i32
  }
  func.func @transform_8(%arg0: i32) -> (i32, i32) {
    %c0_i32 = arith.constant 0 : i32
    %c0_i32_0 = arith.constant 0 : i32
    %c0_i32_1 = arith.constant 0 : i32
    return %c0_i32, %c0_i32_0 : i32, i32
  }
  func.func @transform_9(%arg0: i32) -> (i32, i32) {
    %c0_i32 = arith.constant 0 : i32
    %c0_i32_0 = arith.constant 0 : i32
    %c0_i32_1 = arith.constant 0 : i32
    return %c0_i32, %c0_i32_0 : i32, i32
  }
  func.func @transform_10(%arg0: i32) -> (i32, i32) {
    %c0_i32 = arith.constant 0 : i32
    %c0_i32_0 = arith.constant 0 : i32
    return %arg0, %c0_i32 : i32, i32
  }
}

module attributes {stable_mosaic.version = 11 : i64} {
  func.func @_node_tail_kernel(%arg0: i32, %arg1: memref<16x64xf32, #tpu.memory_space<vmem>>, %arg2: memref<16x64xf32, #tpu.memory_space<vmem>>, %arg3: memref<1x64xf32, #tpu.memory_space<vmem>>, %arg4: memref<1x64xf32, #tpu.memory_space<vmem>>, %arg5: memref<64x64xbf16, #tpu.memory_space<vmem>>, %arg6: memref<1x64xf32, #tpu.memory_space<vmem>>, %arg7: memref<64x64xbf16, #tpu.memory_space<vmem>>, %arg8: memref<1x64xf32, #tpu.memory_space<vmem>>, %arg9: memref<64x64xbf16, #tpu.memory_space<vmem>>, %arg10: memref<1x64xf32, #tpu.memory_space<vmem>>, %arg11: memref<1x64xf32, #tpu.memory_space<vmem>>, %arg12: memref<1x64xf32, #tpu.memory_space<vmem>>, %arg13: memref<64x6xbf16, #tpu.memory_space<vmem>>, %arg14: memref<1x6xf32, #tpu.memory_space<vmem>>, %arg15: memref<64x32xbf16, #tpu.memory_space<vmem>>, %arg16: memref<1x32xf32, #tpu.memory_space<vmem>>, %arg17: memref<64x32xbf16, #tpu.memory_space<vmem>>, %arg18: memref<1x32xf32, #tpu.memory_space<vmem>>, %arg19: memref<32x32xbf16, #tpu.memory_space<vmem>>, %arg20: memref<1x32xf32, #tpu.memory_space<vmem>>, %arg21: memref<32x32xbf16, #tpu.memory_space<vmem>>, %arg22: memref<1x32xf32, #tpu.memory_space<vmem>>, %arg23: memref<32x32xbf16, #tpu.memory_space<vmem>>, %arg24: memref<1x32xf32, #tpu.memory_space<vmem>>, %arg25: memref<32x32xbf16, #tpu.memory_space<vmem>>, %arg26: memref<1x32xf32, #tpu.memory_space<vmem>>, %arg27: memref<32x14xbf16, #tpu.memory_space<vmem>>, %arg28: memref<1x14xf32, #tpu.memory_space<vmem>>, %arg29: memref<16x64xf32, #tpu.memory_space<vmem>>, %arg30: memref<16x6xf32, #tpu.memory_space<vmem>>, %arg31: memref<16x14xf32, #tpu.memory_space<vmem>>) attributes {dimension_semantics = [#tpu.dimension_semantics<parallel>], iteration_bounds = array<i64: 1>, scalar_prefetch = 0 : i64, scratch_operands = 0 : i64, tpu.core_type = #tpu.core_type<tc>, window_params = [{transform_indices = @transform_0, window_bounds = array<i64: 16, 64>}, {transform_indices = @transform_1, window_bounds = array<i64: 16, 64>}, {pipeline_mode = #tpu.pipeline_mode<synchronous>, transform_indices = @transform_2, window_bounds = array<i64: 1, 64>}, {pipeline_mode = #tpu.pipeline_mode<synchronous>, transform_indices = @transform_3, window_bounds = array<i64: 1, 64>}, {pipeline_mode = #tpu.pipeline_mode<synchronous>, transform_indices = @transform_4, window_bounds = array<i64: 64, 64>}, {pipeline_mode = #tpu.pipeline_mode<synchronous>, transform_indices = @transform_5, window_bounds = array<i64: 1, 64>}, {pipeline_mode = #tpu.pipeline_mode<synchronous>, transform_indices = @transform_6, window_bounds = array<i64: 64, 64>}, {pipeline_mode = #tpu.pipeline_mode<synchronous>, transform_indices = @transform_7, window_bounds = array<i64: 1, 64>}, {pipeline_mode = #tpu.pipeline_mode<synchronous>, transform_indices = @transform_8, window_bounds = array<i64: 64, 64>}, {pipeline_mode = #tpu.pipeline_mode<synchronous>, transform_indices = @transform_9, window_bounds = array<i64: 1, 64>}, {pipeline_mode = #tpu.pipeline_mode<synchronous>, transform_indices = @transform_10, window_bounds = array<i64: 1, 64>}, {pipeline_mode = #tpu.pipeline_mode<synchronous>, transform_indices = @transform_11, window_bounds = array<i64: 1, 64>}, {pipeline_mode = #tpu.pipeline_mode<synchronous>, transform_indices = @transform_12, window_bounds = array<i64: 64, 6>}, {pipeline_mode = #tpu.pipeline_mode<synchronous>, transform_indices = @transform_13, window_bounds = array<i64: 1, 6>}, {pipeline_mode = #tpu.pipeline_mode<synchronous>, transform_indices = @transform_14, window_bounds = array<i64: 64, 32>}, {pipeline_mode = #tpu.pipeline_mode<synchronous>, transform_indices = @transform_15, window_bounds = array<i64: 1, 32>}, {pipeline_mode = #tpu.pipeline_mode<synchronous>, transform_indices = @transform_16, window_bounds = array<i64: 64, 32>}, {pipeline_mode = #tpu.pipeline_mode<synchronous>, transform_indices = @transform_17, window_bounds = array<i64: 1, 32>}, {pipeline_mode = #tpu.pipeline_mode<synchronous>, transform_indices = @transform_18, window_bounds = array<i64: 32, 32>}, {pipeline_mode = #tpu.pipeline_mode<synchronous>, transform_indices = @transform_19, window_bounds = array<i64: 1, 32>}, {pipeline_mode = #tpu.pipeline_mode<synchronous>, transform_indices = @transform_20, window_bounds = array<i64: 32, 32>}, {pipeline_mode = #tpu.pipeline_mode<synchronous>, transform_indices = @transform_21, window_bounds = array<i64: 1, 32>}, {pipeline_mode = #tpu.pipeline_mode<synchronous>, transform_indices = @transform_22, window_bounds = array<i64: 32, 32>}, {pipeline_mode = #tpu.pipeline_mode<synchronous>, transform_indices = @transform_23, window_bounds = array<i64: 1, 32>}, {pipeline_mode = #tpu.pipeline_mode<synchronous>, transform_indices = @transform_24, window_bounds = array<i64: 32, 32>}, {pipeline_mode = #tpu.pipeline_mode<synchronous>, transform_indices = @transform_25, window_bounds = array<i64: 1, 32>}, {pipeline_mode = #tpu.pipeline_mode<synchronous>, transform_indices = @transform_26, window_bounds = array<i64: 32, 14>}, {pipeline_mode = #tpu.pipeline_mode<synchronous>, transform_indices = @transform_27, window_bounds = array<i64: 1, 14>}, {transform_indices = @transform_28, window_bounds = array<i64: 16, 64>}, {transform_indices = @transform_29, window_bounds = array<i64: 16, 6>}, {transform_indices = @transform_30, window_bounds = array<i64: 16, 14>}]} {
    %c0 = arith.constant 0 : index
    %c0_0 = arith.constant 0 : index
    %0 = vector.load %arg1[%c0, %c0_0] : memref<16x64xf32, #tpu.memory_space<vmem>>, vector<16x64xf32>
    %c0_1 = arith.constant 0 : index
    %c0_2 = arith.constant 0 : index
    %1 = vector.load %arg3[%c0_1, %c0_2] : memref<1x64xf32, #tpu.memory_space<vmem>>, vector<1x64xf32>
    %c0_3 = arith.constant 0 : index
    %c0_4 = arith.constant 0 : index
    %2 = vector.load %arg4[%c0_3, %c0_4] : memref<1x64xf32, #tpu.memory_space<vmem>>, vector<1x64xf32>
    %cst = arith.constant dense<0.000000e+00> : vector<16xf32>
    %3 = vector.multi_reduction <add>, %0, %cst [1] : vector<16x64xf32> to vector<16xf32>
    %4 = vector.shape_cast %3 : vector<16xf32> to vector<16x1xf32>
    %cst_5 = arith.constant 6.400000e+01 : f32
    %5 = vector.broadcast %cst_5 : f32 to vector<16x1xf32>
    %6 = arith.divf %4, %5 : vector<16x1xf32>
    %7 = vector.broadcast %6 : vector<16x1xf32> to vector<16x64xf32>
    %8 = arith.subf %0, %7 : vector<16x64xf32>
    %9 = arith.mulf %8, %8 : vector<16x64xf32>
    %cst_6 = arith.constant dense<0.000000e+00> : vector<16xf32>
    %10 = vector.multi_reduction <add>, %9, %cst_6 [1] : vector<16x64xf32> to vector<16xf32>
    %11 = vector.shape_cast %10 : vector<16xf32> to vector<16x1xf32>
    %cst_7 = arith.constant 6.400000e+01 : f32
    %12 = vector.broadcast %cst_7 : f32 to vector<16x1xf32>
    %13 = arith.divf %11, %12 : vector<16x1xf32>
    %cst_8 = arith.constant 9.99999974E-6 : f32
    %14 = vector.broadcast %cst_8 : f32 to vector<16x1xf32>
    %15 = arith.addf %13, %14 : vector<16x1xf32>
    %16 = math.rsqrt %15 : vector<16x1xf32>
    %17 = vector.broadcast %16 : vector<16x1xf32> to vector<16x64xf32>
    %18 = arith.mulf %8, %17 : vector<16x64xf32>
    %19 = vector.broadcast %1 : vector<1x64xf32> to vector<16x64xf32>
    %20 = arith.mulf %18, %19 : vector<16x64xf32>
    %21 = vector.broadcast %2 : vector<1x64xf32> to vector<16x64xf32>
    %22 = arith.addf %20, %21 : vector<16x64xf32>
    %23 = arith.truncf %22 : vector<16x64xf32> to vector<16x64xbf16>
    %c0_9 = arith.constant 0 : index
    %c0_10 = arith.constant 0 : index
    %24 = vector.load %arg5[%c0_9, %c0_10] : memref<64x64xbf16, #tpu.memory_space<vmem>>, vector<64x64xbf16>
    %cst_11 = arith.constant dense<0.000000e+00> : vector<16x64xf32>
    %25 = tpu.matmul %23, %24, %cst_11 {dimension_numbers = #tpu.dot_dimension_numbers<[1], [0], [0], [1], [0, 0, 1, 1], [], []>} : vector<16x64xbf16>, vector<64x64xbf16>, vector<16x64xf32> -> vector<16x64xf32>
    %c0_12 = arith.constant 0 : index
    %c0_13 = arith.constant 0 : index
    %26 = vector.load %arg6[%c0_12, %c0_13] : memref<1x64xf32, #tpu.memory_space<vmem>>, vector<1x64xf32>
    %27 = vector.broadcast %26 : vector<1x64xf32> to vector<16x64xf32>
    %28 = arith.addf %25, %27 : vector<16x64xf32>
    %cst_14 = arith.constant 0.000000e+00 : f32
    %29 = vector.broadcast %cst_14 : f32 to vector<16x64xf32>
    %30 = arith.maximumf %28, %29 : vector<16x64xf32>
    %31 = arith.truncf %30 : vector<16x64xf32> to vector<16x64xbf16>
    %c0_15 = arith.constant 0 : index
    %c0_16 = arith.constant 0 : index
    %32 = vector.load %arg7[%c0_15, %c0_16] : memref<64x64xbf16, #tpu.memory_space<vmem>>, vector<64x64xbf16>
    %cst_17 = arith.constant dense<0.000000e+00> : vector<16x64xf32>
    %33 = tpu.matmul %31, %32, %cst_17 {dimension_numbers = #tpu.dot_dimension_numbers<[1], [0], [0], [1], [0, 0, 1, 1], [], []>} : vector<16x64xbf16>, vector<64x64xbf16>, vector<16x64xf32> -> vector<16x64xf32>
    %c0_18 = arith.constant 0 : index
    %c0_19 = arith.constant 0 : index
    %34 = vector.load %arg8[%c0_18, %c0_19] : memref<1x64xf32, #tpu.memory_space<vmem>>, vector<1x64xf32>
    %35 = vector.broadcast %34 : vector<1x64xf32> to vector<16x64xf32>
    %36 = arith.addf %33, %35 : vector<16x64xf32>
    %cst_20 = arith.constant 0.000000e+00 : f32
    %37 = vector.broadcast %cst_20 : f32 to vector<16x64xf32>
    %38 = arith.maximumf %36, %37 : vector<16x64xf32>
    %39 = arith.addf %0, %22 : vector<16x64xf32>
    %40 = arith.truncf %38 : vector<16x64xf32> to vector<16x64xbf16>
    %c0_21 = arith.constant 0 : index
    %c0_22 = arith.constant 0 : index
    %41 = vector.load %arg9[%c0_21, %c0_22] : memref<64x64xbf16, #tpu.memory_space<vmem>>, vector<64x64xbf16>
    %cst_23 = arith.constant dense<0.000000e+00> : vector<16x64xf32>
    %42 = tpu.matmul %40, %41, %cst_23 {dimension_numbers = #tpu.dot_dimension_numbers<[1], [0], [0], [1], [0, 0, 1, 1], [], []>} : vector<16x64xbf16>, vector<64x64xbf16>, vector<16x64xf32> -> vector<16x64xf32>
    %c0_24 = arith.constant 0 : index
    %c0_25 = arith.constant 0 : index
    %43 = vector.load %arg10[%c0_24, %c0_25] : memref<1x64xf32, #tpu.memory_space<vmem>>, vector<1x64xf32>
    %44 = vector.broadcast %43 : vector<1x64xf32> to vector<16x64xf32>
    %45 = arith.addf %42, %44 : vector<16x64xf32>
    %46 = arith.addf %39, %45 : vector<16x64xf32>
    %c0_26 = arith.constant 0 : index
    %c0_27 = arith.constant 0 : index
    %47 = vector.load %arg11[%c0_26, %c0_27] : memref<1x64xf32, #tpu.memory_space<vmem>>, vector<1x64xf32>
    %c0_28 = arith.constant 0 : index
    %c0_29 = arith.constant 0 : index
    %48 = vector.load %arg12[%c0_28, %c0_29] : memref<1x64xf32, #tpu.memory_space<vmem>>, vector<1x64xf32>
    %cst_30 = arith.constant dense<0.000000e+00> : vector<16xf32>
    %49 = vector.multi_reduction <add>, %46, %cst_30 [1] : vector<16x64xf32> to vector<16xf32>
    %50 = vector.shape_cast %49 : vector<16xf32> to vector<16x1xf32>
    %cst_31 = arith.constant 6.400000e+01 : f32
    %51 = vector.broadcast %cst_31 : f32 to vector<16x1xf32>
    %52 = arith.divf %50, %51 : vector<16x1xf32>
    %53 = vector.broadcast %52 : vector<16x1xf32> to vector<16x64xf32>
    %54 = arith.subf %46, %53 : vector<16x64xf32>
    %55 = arith.mulf %54, %54 : vector<16x64xf32>
    %cst_32 = arith.constant dense<0.000000e+00> : vector<16xf32>
    %56 = vector.multi_reduction <add>, %55, %cst_32 [1] : vector<16x64xf32> to vector<16xf32>
    %57 = vector.shape_cast %56 : vector<16xf32> to vector<16x1xf32>
    %cst_33 = arith.constant 6.400000e+01 : f32
    %58 = vector.broadcast %cst_33 : f32 to vector<16x1xf32>
    %59 = arith.divf %57, %58 : vector<16x1xf32>
    %cst_34 = arith.constant 9.99999974E-6 : f32
    %60 = vector.broadcast %cst_34 : f32 to vector<16x1xf32>
    %61 = arith.addf %59, %60 : vector<16x1xf32>
    %62 = math.rsqrt %61 : vector<16x1xf32>
    %63 = vector.broadcast %62 : vector<16x1xf32> to vector<16x64xf32>
    %64 = arith.mulf %54, %63 : vector<16x64xf32>
    %65 = vector.broadcast %47 : vector<1x64xf32> to vector<16x64xf32>
    %66 = arith.mulf %64, %65 : vector<16x64xf32>
    %67 = vector.broadcast %48 : vector<1x64xf32> to vector<16x64xf32>
    %68 = arith.addf %66, %67 : vector<16x64xf32>
    %c0_35 = arith.constant 0 : index
    %c0_36 = arith.constant 0 : index
    %69 = vector.load %arg29[%c0_35, %c0_36] : memref<16x64xf32, #tpu.memory_space<vmem>>, vector<16x64xf32>
    tpu.vector_store %arg29[%c0_35, %c0_36], %68 {strides = array<i32>} : memref<16x64xf32, #tpu.memory_space<vmem>>, vector<16x64xf32>,
    %70 = arith.truncf %68 : vector<16x64xf32> to vector<16x64xbf16>
    %c0_37 = arith.constant 0 : index
    %c0_38 = arith.constant 0 : index
    %71 = vector.load %arg13[%c0_37, %c0_38] : memref<64x6xbf16, #tpu.memory_space<vmem>>, vector<64x6xbf16>
    %cst_39 = arith.constant dense<0.000000e+00> : vector<16x6xf32>
    %72 = tpu.matmul %70, %71, %cst_39 {dimension_numbers = #tpu.dot_dimension_numbers<[1], [0], [0], [1], [0, 0, 1, 1], [], []>} : vector<16x64xbf16>, vector<64x6xbf16>, vector<16x6xf32> -> vector<16x6xf32>
    %c0_40 = arith.constant 0 : index
    %c0_41 = arith.constant 0 : index
    %73 = vector.load %arg14[%c0_40, %c0_41] : memref<1x6xf32, #tpu.memory_space<vmem>>, vector<1x6xf32>
    %74 = vector.broadcast %73 : vector<1x6xf32> to vector<16x6xf32>
    %75 = arith.addf %72, %74 : vector<16x6xf32>
    %c0_42 = arith.constant 0 : index
    %c0_43 = arith.constant 0 : index
    %76 = vector.load %arg30[%c0_42, %c0_43] : memref<16x6xf32, #tpu.memory_space<vmem>>, vector<16x6xf32>
    tpu.vector_store %arg30[%c0_42, %c0_43], %75 {strides = array<i32>} : memref<16x6xf32, #tpu.memory_space<vmem>>, vector<16x6xf32>,
    %77 = arith.truncf %68 : vector<16x64xf32> to vector<16x64xbf16>
    %c0_44 = arith.constant 0 : index
    %c0_45 = arith.constant 0 : index
    %78 = vector.load %arg15[%c0_44, %c0_45] : memref<64x32xbf16, #tpu.memory_space<vmem>>, vector<64x32xbf16>
    %cst_46 = arith.constant dense<0.000000e+00> : vector<16x32xf32>
    %79 = tpu.matmul %77, %78, %cst_46 {dimension_numbers = #tpu.dot_dimension_numbers<[1], [0], [0], [1], [0, 0, 1, 1], [], []>} : vector<16x64xbf16>, vector<64x32xbf16>, vector<16x32xf32> -> vector<16x32xf32>
    %c0_47 = arith.constant 0 : index
    %c0_48 = arith.constant 0 : index
    %80 = vector.load %arg16[%c0_47, %c0_48] : memref<1x32xf32, #tpu.memory_space<vmem>>, vector<1x32xf32>
    %81 = vector.broadcast %80 : vector<1x32xf32> to vector<16x32xf32>
    %82 = arith.addf %79, %81 : vector<16x32xf32>
    %c0_49 = arith.constant 0 : index
    %c0_50 = arith.constant 0 : index
    %83 = vector.load %arg2[%c0_49, %c0_50] : memref<16x64xf32, #tpu.memory_space<vmem>>, vector<16x64xf32>
    %84 = arith.truncf %83 : vector<16x64xf32> to vector<16x64xbf16>
    %c0_51 = arith.constant 0 : index
    %c0_52 = arith.constant 0 : index
    %85 = vector.load %arg17[%c0_51, %c0_52] : memref<64x32xbf16, #tpu.memory_space<vmem>>, vector<64x32xbf16>
    %cst_53 = arith.constant dense<0.000000e+00> : vector<16x32xf32>
    %86 = tpu.matmul %84, %85, %cst_53 {dimension_numbers = #tpu.dot_dimension_numbers<[1], [0], [0], [1], [0, 0, 1, 1], [], []>} : vector<16x64xbf16>, vector<64x32xbf16>, vector<16x32xf32> -> vector<16x32xf32>
    %c0_54 = arith.constant 0 : index
    %c0_55 = arith.constant 0 : index
    %87 = vector.load %arg18[%c0_54, %c0_55] : memref<1x32xf32, #tpu.memory_space<vmem>>, vector<1x32xf32>
    %88 = vector.broadcast %87 : vector<1x32xf32> to vector<16x32xf32>
    %89 = arith.addf %86, %88 : vector<16x32xf32>
    %90 = arith.addf %82, %89 : vector<16x32xf32>
    %cst_56 = arith.constant 0.000000e+00 : f32
    %91 = vector.broadcast %cst_56 : f32 to vector<16x32xf32>
    %92 = arith.maximumf %90, %91 : vector<16x32xf32>
    %93 = arith.truncf %92 : vector<16x32xf32> to vector<16x32xbf16>
    %c0_57 = arith.constant 0 : index
    %c0_58 = arith.constant 0 : index
    %94 = vector.load %arg19[%c0_57, %c0_58] : memref<32x32xbf16, #tpu.memory_space<vmem>>, vector<32x32xbf16>
    %cst_59 = arith.constant dense<0.000000e+00> : vector<16x32xf32>
    %95 = tpu.matmul %93, %94, %cst_59 {dimension_numbers = #tpu.dot_dimension_numbers<[1], [0], [0], [1], [0, 0, 1, 1], [], []>} : vector<16x32xbf16>, vector<32x32xbf16>, vector<16x32xf32> -> vector<16x32xf32>
    %c0_60 = arith.constant 0 : index
    %c0_61 = arith.constant 0 : index
    %96 = vector.load %arg20[%c0_60, %c0_61] : memref<1x32xf32, #tpu.memory_space<vmem>>, vector<1x32xf32>
    %97 = vector.broadcast %96 : vector<1x32xf32> to vector<16x32xf32>
    %98 = arith.addf %95, %97 : vector<16x32xf32>
    %cst_62 = arith.constant 0.000000e+00 : f32
    %99 = vector.broadcast %cst_62 : f32 to vector<16x32xf32>
    %100 = arith.maximumf %98, %99 : vector<16x32xf32>
    %101 = arith.truncf %100 : vector<16x32xf32> to vector<16x32xbf16>
    %c0_63 = arith.constant 0 : index
    %c0_64 = arith.constant 0 : index
    %102 = vector.load %arg21[%c0_63, %c0_64] : memref<32x32xbf16, #tpu.memory_space<vmem>>, vector<32x32xbf16>
    %cst_65 = arith.constant dense<0.000000e+00> : vector<16x32xf32>
    %103 = tpu.matmul %101, %102, %cst_65 {dimension_numbers = #tpu.dot_dimension_numbers<[1], [0], [0], [1], [0, 0, 1, 1], [], []>} : vector<16x32xbf16>, vector<32x32xbf16>, vector<16x32xf32> -> vector<16x32xf32>
    %c0_66 = arith.constant 0 : index
    %c0_67 = arith.constant 0 : index
    %104 = vector.load %arg22[%c0_66, %c0_67] : memref<1x32xf32, #tpu.memory_space<vmem>>, vector<1x32xf32>
    %105 = vector.broadcast %104 : vector<1x32xf32> to vector<16x32xf32>
    %106 = arith.addf %103, %105 : vector<16x32xf32>
    %107 = arith.addf %90, %106 : vector<16x32xf32>
    %cst_68 = arith.constant 0.000000e+00 : f32
    %108 = vector.broadcast %cst_68 : f32 to vector<16x32xf32>
    %109 = arith.maximumf %107, %108 : vector<16x32xf32>
    %110 = arith.truncf %109 : vector<16x32xf32> to vector<16x32xbf16>
    %c0_69 = arith.constant 0 : index
    %c0_70 = arith.constant 0 : index
    %111 = vector.load %arg23[%c0_69, %c0_70] : memref<32x32xbf16, #tpu.memory_space<vmem>>, vector<32x32xbf16>
    %cst_71 = arith.constant dense<0.000000e+00> : vector<16x32xf32>
    %112 = tpu.matmul %110, %111, %cst_71 {dimension_numbers = #tpu.dot_dimension_numbers<[1], [0], [0], [1], [0, 0, 1, 1], [], []>} : vector<16x32xbf16>, vector<32x32xbf16>, vector<16x32xf32> -> vector<16x32xf32>
    %c0_72 = arith.constant 0 : index
    %c0_73 = arith.constant 0 : index
    %113 = vector.load %arg24[%c0_72, %c0_73] : memref<1x32xf32, #tpu.memory_space<vmem>>, vector<1x32xf32>
    %114 = vector.broadcast %113 : vector<1x32xf32> to vector<16x32xf32>
    %115 = arith.addf %112, %114 : vector<16x32xf32>
    %cst_74 = arith.constant 0.000000e+00 : f32
    %116 = vector.broadcast %cst_74 : f32 to vector<16x32xf32>
    %117 = arith.maximumf %115, %116 : vector<16x32xf32>
    %118 = arith.truncf %117 : vector<16x32xf32> to vector<16x32xbf16>
    %c0_75 = arith.constant 0 : index
    %c0_76 = arith.constant 0 : index
    %119 = vector.load %arg25[%c0_75, %c0_76] : memref<32x32xbf16, #tpu.memory_space<vmem>>, vector<32x32xbf16>
    %cst_77 = arith.constant dense<0.000000e+00> : vector<16x32xf32>
    %120 = tpu.matmul %118, %119, %cst_77 {dimension_numbers = #tpu.dot_dimension_numbers<[1], [0], [0], [1], [0, 0, 1, 1], [], []>} : vector<16x32xbf16>, vector<32x32xbf16>, vector<16x32xf32> -> vector<16x32xf32>
    %c0_78 = arith.constant 0 : index
    %c0_79 = arith.constant 0 : index
    %121 = vector.load %arg26[%c0_78, %c0_79] : memref<1x32xf32, #tpu.memory_space<vmem>>, vector<1x32xf32>
    %122 = vector.broadcast %121 : vector<1x32xf32> to vector<16x32xf32>
    %123 = arith.addf %120, %122 : vector<16x32xf32>
    %124 = arith.addf %107, %123 : vector<16x32xf32>
    %cst_80 = arith.constant 0.000000e+00 : f32
    %125 = vector.broadcast %cst_80 : f32 to vector<16x32xf32>
    %126 = arith.maximumf %124, %125 : vector<16x32xf32>
    %127 = arith.truncf %126 : vector<16x32xf32> to vector<16x32xbf16>
    %c0_81 = arith.constant 0 : index
    %c0_82 = arith.constant 0 : index
    %128 = vector.load %arg27[%c0_81, %c0_82] : memref<32x14xbf16, #tpu.memory_space<vmem>>, vector<32x14xbf16>
    %cst_83 = arith.constant dense<0.000000e+00> : vector<16x14xf32>
    %129 = tpu.matmul %127, %128, %cst_83 {dimension_numbers = #tpu.dot_dimension_numbers<[1], [0], [0], [1], [0, 0, 1, 1], [], []>} : vector<16x32xbf16>, vector<32x14xbf16>, vector<16x14xf32> -> vector<16x14xf32>
    %c0_84 = arith.constant 0 : index
    %c0_85 = arith.constant 0 : index
    %130 = vector.load %arg28[%c0_84, %c0_85] : memref<1x14xf32, #tpu.memory_space<vmem>>, vector<1x14xf32>
    %131 = vector.broadcast %130 : vector<1x14xf32> to vector<16x14xf32>
    %132 = arith.addf %129, %131 : vector<16x14xf32>
    %c0_86 = arith.constant 0 : index
    %c0_87 = arith.constant 0 : index
    %133 = vector.load %arg31[%c0_86, %c0_87] : memref<16x14xf32, #tpu.memory_space<vmem>>, vector<16x14xf32>
    tpu.vector_store %arg31[%c0_86, %c0_87], %132 {strides = array<i32>} : memref<16x14xf32, #tpu.memory_space<vmem>>, vector<16x14xf32>,
    return
  }
  func.func @transform_0(%arg0: i32) -> (i32, i32) {
    %c0_i32 = arith.constant 0 : i32
    %c0_i32_0 = arith.constant 0 : i32
    return %arg0, %c0_i32 : i32, i32
  }
  func.func @transform_1(%arg0: i32) -> (i32, i32) {
    %c0_i32 = arith.constant 0 : i32
    %c0_i32_0 = arith.constant 0 : i32
    return %arg0, %c0_i32 : i32, i32
  }
  func.func @transform_2(%arg0: i32) -> (i32, i32) {
    %c0_i32 = arith.constant 0 : i32
    %c0_i32_0 = arith.constant 0 : i32
    %c0_i32_1 = arith.constant 0 : i32
    return %c0_i32, %c0_i32_0 : i32, i32
  }
  func.func @transform_3(%arg0: i32) -> (i32, i32) {
    %c0_i32 = arith.constant 0 : i32
    %c0_i32_0 = arith.constant 0 : i32
    %c0_i32_1 = arith.constant 0 : i32
    return %c0_i32, %c0_i32_0 : i32, i32
  }
  func.func @transform_4(%arg0: i32) -> (i32, i32) {
    %c0_i32 = arith.constant 0 : i32
    %c0_i32_0 = arith.constant 0 : i32
    %c0_i32_1 = arith.constant 0 : i32
    return %c0_i32, %c0_i32_0 : i32, i32
  }
  func.func @transform_5(%arg0: i32) -> (i32, i32) {
    %c0_i32 = arith.constant 0 : i32
    %c0_i32_0 = arith.constant 0 : i32
    %c0_i32_1 = arith.constant 0 : i32
    return %c0_i32, %c0_i32_0 : i32, i32
  }
  func.func @transform_6(%arg0: i32) -> (i32, i32) {
    %c0_i32 = arith.constant 0 : i32
    %c0_i32_0 = arith.constant 0 : i32
    %c0_i32_1 = arith.constant 0 : i32
    return %c0_i32, %c0_i32_0 : i32, i32
  }
  func.func @transform_7(%arg0: i32) -> (i32, i32) {
    %c0_i32 = arith.constant 0 : i32
    %c0_i32_0 = arith.constant 0 : i32
    %c0_i32_1 = arith.constant 0 : i32
    return %c0_i32, %c0_i32_0 : i32, i32
  }
  func.func @transform_8(%arg0: i32) -> (i32, i32) {
    %c0_i32 = arith.constant 0 : i32
    %c0_i32_0 = arith.constant 0 : i32
    %c0_i32_1 = arith.constant 0 : i32
    return %c0_i32, %c0_i32_0 : i32, i32
  }
  func.func @transform_9(%arg0: i32) -> (i32, i32) {
    %c0_i32 = arith.constant 0 : i32
    %c0_i32_0 = arith.constant 0 : i32
    %c0_i32_1 = arith.constant 0 : i32
    return %c0_i32, %c0_i32_0 : i32, i32
  }
  func.func @transform_10(%arg0: i32) -> (i32, i32) {
    %c0_i32 = arith.constant 0 : i32
    %c0_i32_0 = arith.constant 0 : i32
    %c0_i32_1 = arith.constant 0 : i32
    return %c0_i32, %c0_i32_0 : i32, i32
  }
  func.func @transform_11(%arg0: i32) -> (i32, i32) {
    %c0_i32 = arith.constant 0 : i32
    %c0_i32_0 = arith.constant 0 : i32
    %c0_i32_1 = arith.constant 0 : i32
    return %c0_i32, %c0_i32_0 : i32, i32
  }
  func.func @transform_12(%arg0: i32) -> (i32, i32) {
    %c0_i32 = arith.constant 0 : i32
    %c0_i32_0 = arith.constant 0 : i32
    %c0_i32_1 = arith.constant 0 : i32
    return %c0_i32, %c0_i32_0 : i32, i32
  }
  func.func @transform_13(%arg0: i32) -> (i32, i32) {
    %c0_i32 = arith.constant 0 : i32
    %c0_i32_0 = arith.constant 0 : i32
    %c0_i32_1 = arith.constant 0 : i32
    return %c0_i32, %c0_i32_0 : i32, i32
  }
  func.func @transform_14(%arg0: i32) -> (i32, i32) {
    %c0_i32 = arith.constant 0 : i32
    %c0_i32_0 = arith.constant 0 : i32
    %c0_i32_1 = arith.constant 0 : i32
    return %c0_i32, %c0_i32_0 : i32, i32
  }
  func.func @transform_15(%arg0: i32) -> (i32, i32) {
    %c0_i32 = arith.constant 0 : i32
    %c0_i32_0 = arith.constant 0 : i32
    %c0_i32_1 = arith.constant 0 : i32
    return %c0_i32, %c0_i32_0 : i32, i32
  }
  func.func @transform_16(%arg0: i32) -> (i32, i32) {
    %c0_i32 = arith.constant 0 : i32
    %c0_i32_0 = arith.constant 0 : i32
    %c0_i32_1 = arith.constant 0 : i32
    return %c0_i32, %c0_i32_0 : i32, i32
  }
  func.func @transform_17(%arg0: i32) -> (i32, i32) {
    %c0_i32 = arith.constant 0 : i32
    %c0_i32_0 = arith.constant 0 : i32
    %c0_i32_1 = arith.constant 0 : i32
    return %c0_i32, %c0_i32_0 : i32, i32
  }
  func.func @transform_18(%arg0: i32) -> (i32, i32) {
    %c0_i32 = arith.constant 0 : i32
    %c0_i32_0 = arith.constant 0 : i32
    %c0_i32_1 = arith.constant 0 : i32
    return %c0_i32, %c0_i32_0 : i32, i32
  }
  func.func @transform_19(%arg0: i32) -> (i32, i32) {
    %c0_i32 = arith.constant 0 : i32
    %c0_i32_0 = arith.constant 0 : i32
    %c0_i32_1 = arith.constant 0 : i32
    return %c0_i32, %c0_i32_0 : i32, i32
  }
  func.func @transform_20(%arg0: i32) -> (i32, i32) {
    %c0_i32 = arith.constant 0 : i32
    %c0_i32_0 = arith.constant 0 : i32
    %c0_i32_1 = arith.constant 0 : i32
    return %c0_i32, %c0_i32_0 : i32, i32
  }
  func.func @transform_21(%arg0: i32) -> (i32, i32) {
    %c0_i32 = arith.constant 0 : i32
    %c0_i32_0 = arith.constant 0 : i32
    %c0_i32_1 = arith.constant 0 : i32
    return %c0_i32, %c0_i32_0 : i32, i32
  }
  func.func @transform_22(%arg0: i32) -> (i32, i32) {
    %c0_i32 = arith.constant 0 : i32
    %c0_i32_0 = arith.constant 0 : i32
    %c0_i32_1 = arith.constant 0 : i32
    return %c0_i32, %c0_i32_0 : i32, i32
  }
  func.func @transform_23(%arg0: i32) -> (i32, i32) {
    %c0_i32 = arith.constant 0 : i32
    %c0_i32_0 = arith.constant 0 : i32
    %c0_i32_1 = arith.constant 0 : i32
    return %c0_i32, %c0_i32_0 : i32, i32
  }
  func.func @transform_24(%arg0: i32) -> (i32, i32) {
    %c0_i32 = arith.constant 0 : i32
    %c0_i32_0 = arith.constant 0 : i32
    %c0_i32_1 = arith.constant 0 : i32
    return %c0_i32, %c0_i32_0 : i32, i32
  }
  func.func @transform_25(%arg0: i32) -> (i32, i32) {
    %c0_i32 = arith.constant 0 : i32
    %c0_i32_0 = arith.constant 0 : i32
    %c0_i32_1 = arith.constant 0 : i32
    return %c0_i32, %c0_i32_0 : i32, i32
  }
  func.func @transform_26(%arg0: i32) -> (i32, i32) {
    %c0_i32 = arith.constant 0 : i32
    %c0_i32_0 = arith.constant 0 : i32
    %c0_i32_1 = arith.constant 0 : i32
    return %c0_i32, %c0_i32_0 : i32, i32
  }
  func.func @transform_27(%arg0: i32) -> (i32, i32) {
    %c0_i32 = arith.constant 0 : i32
    %c0_i32_0 = arith.constant 0 : i32
    %c0_i32_1 = arith.constant 0 : i32
    return %c0_i32, %c0_i32_0 : i32, i32
  }
  func.func @transform_28(%arg0: i32) -> (i32, i32) {
    %c0_i32 = arith.constant 0 : i32
    %c0_i32_0 = arith.constant 0 : i32
    return %arg0, %c0_i32 : i32, i32
  }
  func.func @transform_29(%arg0: i32) -> (i32, i32) {
    %c0_i32 = arith.constant 0 : i32
    %c0_i32_0 = arith.constant 0 : i32
    return %arg0, %c0_i32 : i32, i32
  }
  func.func @transform_30(%arg0: i32) -> (i32, i32) {
    %c0_i32 = arith.constant 0 : i32
    %c0_i32_0 = arith.constant 0 : i32
    return %arg0, %c0_i32 : i32, i32
  }
}

module attributes {stable_mosaic.version = 11 : i64} {
  func.func @_plddt_kernel(%arg0: i32, %arg1: memref<16x64xf32, #tpu.memory_space<vmem>>, %arg2: memref<1x64xf32, #tpu.memory_space<vmem>>, %arg3: memref<1x64xf32, #tpu.memory_space<vmem>>, %arg4: memref<64x64xbf16, #tpu.memory_space<vmem>>, %arg5: memref<1x64xf32, #tpu.memory_space<vmem>>, %arg6: memref<64x64xbf16, #tpu.memory_space<vmem>>, %arg7: memref<1x64xf32, #tpu.memory_space<vmem>>, %arg8: memref<64x50xbf16, #tpu.memory_space<vmem>>, %arg9: memref<1x50xf32, #tpu.memory_space<vmem>>, %arg10: memref<16x50xf32, #tpu.memory_space<vmem>>) attributes {dimension_semantics = [#tpu.dimension_semantics<parallel>], iteration_bounds = array<i64: 1>, scalar_prefetch = 0 : i64, scratch_operands = 0 : i64, tpu.core_type = #tpu.core_type<tc>, window_params = [{transform_indices = @transform_0, window_bounds = array<i64: 16, 64>}, {pipeline_mode = #tpu.pipeline_mode<synchronous>, transform_indices = @transform_1, window_bounds = array<i64: 1, 64>}, {pipeline_mode = #tpu.pipeline_mode<synchronous>, transform_indices = @transform_2, window_bounds = array<i64: 1, 64>}, {pipeline_mode = #tpu.pipeline_mode<synchronous>, transform_indices = @transform_3, window_bounds = array<i64: 64, 64>}, {pipeline_mode = #tpu.pipeline_mode<synchronous>, transform_indices = @transform_4, window_bounds = array<i64: 1, 64>}, {pipeline_mode = #tpu.pipeline_mode<synchronous>, transform_indices = @transform_5, window_bounds = array<i64: 64, 64>}, {pipeline_mode = #tpu.pipeline_mode<synchronous>, transform_indices = @transform_6, window_bounds = array<i64: 1, 64>}, {pipeline_mode = #tpu.pipeline_mode<synchronous>, transform_indices = @transform_7, window_bounds = array<i64: 64, 50>}, {pipeline_mode = #tpu.pipeline_mode<synchronous>, transform_indices = @transform_8, window_bounds = array<i64: 1, 50>}, {transform_indices = @transform_9, window_bounds = array<i64: 16, 50>}]} {
    %c0 = arith.constant 0 : index
    %c0_0 = arith.constant 0 : index
    %0 = vector.load %arg1[%c0, %c0_0] : memref<16x64xf32, #tpu.memory_space<vmem>>, vector<16x64xf32>
    %c0_1 = arith.constant 0 : index
    %c0_2 = arith.constant 0 : index
    %1 = vector.load %arg2[%c0_1, %c0_2] : memref<1x64xf32, #tpu.memory_space<vmem>>, vector<1x64xf32>
    %c0_3 = arith.constant 0 : index
    %c0_4 = arith.constant 0 : index
    %2 = vector.load %arg3[%c0_3, %c0_4] : memref<1x64xf32, #tpu.memory_space<vmem>>, vector<1x64xf32>
    %cst = arith.constant dense<0.000000e+00> : vector<16xf32>
    %3 = vector.multi_reduction <add>, %0, %cst [1] : vector<16x64xf32> to vector<16xf32>
    %4 = vector.shape_cast %3 : vector<16xf32> to vector<16x1xf32>
    %cst_5 = arith.constant 6.400000e+01 : f32
    %5 = vector.broadcast %cst_5 : f32 to vector<16x1xf32>
    %6 = arith.divf %4, %5 : vector<16x1xf32>
    %7 = vector.broadcast %6 : vector<16x1xf32> to vector<16x64xf32>
    %8 = arith.subf %0, %7 : vector<16x64xf32>
    %9 = arith.mulf %8, %8 : vector<16x64xf32>
    %cst_6 = arith.constant dense<0.000000e+00> : vector<16xf32>
    %10 = vector.multi_reduction <add>, %9, %cst_6 [1] : vector<16x64xf32> to vector<16xf32>
    %11 = vector.shape_cast %10 : vector<16xf32> to vector<16x1xf32>
    %cst_7 = arith.constant 6.400000e+01 : f32
    %12 = vector.broadcast %cst_7 : f32 to vector<16x1xf32>
    %13 = arith.divf %11, %12 : vector<16x1xf32>
    %cst_8 = arith.constant 9.99999974E-6 : f32
    %14 = vector.broadcast %cst_8 : f32 to vector<16x1xf32>
    %15 = arith.addf %13, %14 : vector<16x1xf32>
    %16 = math.rsqrt %15 : vector<16x1xf32>
    %17 = vector.broadcast %16 : vector<16x1xf32> to vector<16x64xf32>
    %18 = arith.mulf %8, %17 : vector<16x64xf32>
    %19 = vector.broadcast %1 : vector<1x64xf32> to vector<16x64xf32>
    %20 = arith.mulf %18, %19 : vector<16x64xf32>
    %21 = vector.broadcast %2 : vector<1x64xf32> to vector<16x64xf32>
    %22 = arith.addf %20, %21 : vector<16x64xf32>
    %23 = arith.truncf %22 : vector<16x64xf32> to vector<16x64xbf16>
    %c0_9 = arith.constant 0 : index
    %c0_10 = arith.constant 0 : index
    %24 = vector.load %arg4[%c0_9, %c0_10] : memref<64x64xbf16, #tpu.memory_space<vmem>>, vector<64x64xbf16>
    %cst_11 = arith.constant dense<0.000000e+00> : vector<16x64xf32>
    %25 = tpu.matmul %23, %24, %cst_11 {dimension_numbers = #tpu.dot_dimension_numbers<[1], [0], [0], [1], [0, 0, 1, 1], [], []>} : vector<16x64xbf16>, vector<64x64xbf16>, vector<16x64xf32> -> vector<16x64xf32>
    %c0_12 = arith.constant 0 : index
    %c0_13 = arith.constant 0 : index
    %26 = vector.load %arg5[%c0_12, %c0_13] : memref<1x64xf32, #tpu.memory_space<vmem>>, vector<1x64xf32>
    %27 = vector.broadcast %26 : vector<1x64xf32> to vector<16x64xf32>
    %28 = arith.addf %25, %27 : vector<16x64xf32>
    %cst_14 = arith.constant 0.000000e+00 : f32
    %29 = vector.broadcast %cst_14 : f32 to vector<16x64xf32>
    %30 = arith.maximumf %28, %29 : vector<16x64xf32>
    %31 = arith.truncf %30 : vector<16x64xf32> to vector<16x64xbf16>
    %c0_15 = arith.constant 0 : index
    %c0_16 = arith.constant 0 : index
    %32 = vector.load %arg6[%c0_15, %c0_16] : memref<64x64xbf16, #tpu.memory_space<vmem>>, vector<64x64xbf16>
    %cst_17 = arith.constant dense<0.000000e+00> : vector<16x64xf32>
    %33 = tpu.matmul %31, %32, %cst_17 {dimension_numbers = #tpu.dot_dimension_numbers<[1], [0], [0], [1], [0, 0, 1, 1], [], []>} : vector<16x64xbf16>, vector<64x64xbf16>, vector<16x64xf32> -> vector<16x64xf32>
    %c0_18 = arith.constant 0 : index
    %c0_19 = arith.constant 0 : index
    %34 = vector.load %arg7[%c0_18, %c0_19] : memref<1x64xf32, #tpu.memory_space<vmem>>, vector<1x64xf32>
    %35 = vector.broadcast %34 : vector<1x64xf32> to vector<16x64xf32>
    %36 = arith.addf %33, %35 : vector<16x64xf32>
    %cst_20 = arith.constant 0.000000e+00 : f32
    %37 = vector.broadcast %cst_20 : f32 to vector<16x64xf32>
    %38 = arith.maximumf %36, %37 : vector<16x64xf32>
    %39 = arith.truncf %38 : vector<16x64xf32> to vector<16x64xbf16>
    %c0_21 = arith.constant 0 : index
    %c0_22 = arith.constant 0 : index
    %40 = vector.load %arg8[%c0_21, %c0_22] : memref<64x50xbf16, #tpu.memory_space<vmem>>, vector<64x50xbf16>
    %cst_23 = arith.constant dense<0.000000e+00> : vector<16x50xf32>
    %41 = tpu.matmul %39, %40, %cst_23 {dimension_numbers = #tpu.dot_dimension_numbers<[1], [0], [0], [1], [0, 0, 1, 1], [], []>} : vector<16x64xbf16>, vector<64x50xbf16>, vector<16x50xf32> -> vector<16x50xf32>
    %c0_24 = arith.constant 0 : index
    %c0_25 = arith.constant 0 : index
    %42 = vector.load %arg9[%c0_24, %c0_25] : memref<1x50xf32, #tpu.memory_space<vmem>>, vector<1x50xf32>
    %43 = vector.broadcast %42 : vector<1x50xf32> to vector<16x50xf32>
    %44 = arith.addf %41, %43 : vector<16x50xf32>
    %c0_26 = arith.constant 0 : index
    %c0_27 = arith.constant 0 : index
    %45 = vector.load %arg10[%c0_26, %c0_27] : memref<16x50xf32, #tpu.memory_space<vmem>>, vector<16x50xf32>
    tpu.vector_store %arg10[%c0_26, %c0_27], %44 {strides = array<i32>} : memref<16x50xf32, #tpu.memory_space<vmem>>, vector<16x50xf32>,
    return
  }
  func.func @transform_0(%arg0: i32) -> (i32, i32) {
    %c0_i32 = arith.constant 0 : i32
    %c0_i32_0 = arith.constant 0 : i32
    return %arg0, %c0_i32 : i32, i32
  }
  func.func @transform_1(%arg0: i32) -> (i32, i32) {
    %c0_i32 = arith.constant 0 : i32
    %c0_i32_0 = arith.constant 0 : i32
    %c0_i32_1 = arith.constant 0 : i32
    return %c0_i32, %c0_i32_0 : i32, i32
  }
  func.func @transform_2(%arg0: i32) -> (i32, i32) {
    %c0_i32 = arith.constant 0 : i32
    %c0_i32_0 = arith.constant 0 : i32
    %c0_i32_1 = arith.constant 0 : i32
    return %c0_i32, %c0_i32_0 : i32, i32
  }
  func.func @transform_3(%arg0: i32) -> (i32, i32) {
    %c0_i32 = arith.constant 0 : i32
    %c0_i32_0 = arith.constant 0 : i32
    %c0_i32_1 = arith.constant 0 : i32
    return %c0_i32, %c0_i32_0 : i32, i32
  }
  func.func @transform_4(%arg0: i32) -> (i32, i32) {
    %c0_i32 = arith.constant 0 : i32
    %c0_i32_0 = arith.constant 0 : i32
    %c0_i32_1 = arith.constant 0 : i32
    return %c0_i32, %c0_i32_0 : i32, i32
  }
  func.func @transform_5(%arg0: i32) -> (i32, i32) {
    %c0_i32 = arith.constant 0 : i32
    %c0_i32_0 = arith.constant 0 : i32
    %c0_i32_1 = arith.constant 0 : i32
    return %c0_i32, %c0_i32_0 : i32, i32
  }
  func.func @transform_6(%arg0: i32) -> (i32, i32) {
    %c0_i32 = arith.constant 0 : i32
    %c0_i32_0 = arith.constant 0 : i32
    %c0_i32_1 = arith.constant 0 : i32
    return %c0_i32, %c0_i32_0 : i32, i32
  }
  func.func @transform_7(%arg0: i32) -> (i32, i32) {
    %c0_i32 = arith.constant 0 : i32
    %c0_i32_0 = arith.constant 0 : i32
    %c0_i32_1 = arith.constant 0 : i32
    return %c0_i32, %c0_i32_0 : i32, i32
  }
  func.func @transform_8(%arg0: i32) -> (i32, i32) {
    %c0_i32 = arith.constant 0 : i32
    %c0_i32_0 = arith.constant 0 : i32
    %c0_i32_1 = arith.constant 0 : i32
    return %c0_i32, %c0_i32_0 : i32, i32
  }
  func.func @transform_9(%arg0: i32) -> (i32, i32) {
    %c0_i32 = arith.constant 0 : i32
    %c0_i32_0 = arith.constant 0 : i32
    return %arg0, %c0_i32 : i32, i32
  }
}

</mosaic_0001>

<bundles_post_ra>
// kernel: structure_module_forward.13
= control target key start
LH: loop header
LB: loop body
LE: loop exit
PB: predicated region body
PF: predicated region fallthrough
CT: control target
= control target key end

     0   :  { %v264_v0 = vmov 0.0   ;;  %vm265_vm0 = vmmov 0   ;;  %v266_v3 = vmov 0   ;;  %vm115_vm1 = vcmask 523264   ;;  %s352_s1 = inlined_call_operand.vmem [shape: bf16[64,288], index: 1, kind: input, shape index: {}]   ;;  %s353_s0 = inlined_call_operand.vmem [shape: f32[16,64], index: 0, kind: input, shape index: {}]   ;;  %s354_s2 = inlined_call_operand.vmem [shape: f32[1,288], index: 2, kind: input, shape index: {}]   ;;  %s355_s3 = inlined_call_operand.vmem [shape: f32[16,288], index: 3, kind: output, shape index: {}]  }
   0x1   :  { %233 = vmatprep.subr.bf16.mxu1 %v264_v0  ;;  %v248_v1 = vld [vmem:[%s352_s1 + $0x4c] ss:$12 sps:$4 sm:$0xff]   ;;  %241 = vmatprep.mubr.msk.bf16.mxu1 %vm265_vm0, %v264_v0  ;;  %v250_v2 = vld [vmem:[%s352_s1 + $0x50] ss:$12 sps:$4 sm:$0xff]   ;;  %v251_v4 = vld [vmem:[%s352_s1 + $0x48] ss:$12 sps:$4 sm:$0xff]   ;;  %v36_v17 = vlaneseq }
   0x2   :  { %151 = vmatprep.mubr.bf16.mxu0 %v266_v3  ;;  %127 = vmatprep.subr.bf16.mxu0 %v248_v1  ;;  %v252_v5 = vld [vmem:[%s352_s1 + $0x34] ss:$12 sps:$4 sm:$0xff]   ;;  %v254_v6 = vld [vmem:[%s352_s1 + $0x38] ss:$12 sps:$4 sm:$0xff]   ;;  %v255_v7 = vld [vmem:[%s352_s1 + $0x30] ss:$12 sps:$4 sm:$0xff]  }
   0x3   :  { %234 = vmatpush3.bf16.msra.mxu1 %v250_v2  ;;  %128 = vmatpush1.bf16.msra.mxu0 %v251_v4  ;;  %v256_v8 = vld [vmem:[%s352_s1 + $0x1c] ss:$12 sps:$4 sm:$0xff]   ;;  %v258_v9 = vld [vmem:[%s352_s1 + $0x20] ss:$12 sps:$4 sm:$0xff]   ;;  %v259_v10 = vld [vmem:[%s352_s1 + $0x18] ss:$12 sps:$4 sm:$0xff]  }
   0x4   :  { %235 = vmatprep.subr.bf16.mxu1 %v264_v0  ;;  %129 = vmatprep.subr.bf16.mxu0 %v252_v5  ;;  %v260_v11 = vld [vmem:[%s352_s1 + $0x4] ss:$12 sps:$4 sm:$0xff]   ;;  %v262_v12 = vld [vmem:[%s352_s1 + $0x8] ss:$12 sps:$4 sm:$0xff]   ;;  %v263_v15 = vld [vmem:[%s352_s1] ss:$12 sps:$4 sm:$0xff]  }
   0x5   :  { %v15_v13 = vld [vmem:[%s353_s0] sm:$0xff]  ;;  %v16_v14 = vld [vmem:[%s353_s0 + $0x8] sm:$0xff]  ;;  %v37_v18 = vshrl.u32 %v36_v17, 7  ;;  %vm205_vm2 = vcmask 261120  }
   0x6   :  { %v17_v16 = vpack.c.bf16 %v16_v14, %v15_v13  ;;  %v34_v21 = vld [vmem:[%s354_s2] sm:$0x7] }
   0x7   :  { %236 = vmatpush3.bf16.msra.mxu1 %v254_v6  ;;  %130 = vmatpush1.bf16.msra.mxu0 %v255_v7  ;;  %v46_v19 = vsub.s32 2, %v37_v18  ;;  %v38_v20 = vsub.s32 0, %v37_v18  ;;  %v42_v22 = vsub.s32 1, %v37_v18 }
   0x8   :  { %237 = vmatprep.subr.bf16.mxu1 %v264_v0  ;;  %131 = vmatprep.subr.bf16.mxu0 %v256_v8 }
   0x9   :  { %v47_v23 = vrot.slane %v34_v21, %v46_v19  ;;  %v39_v24 = vrot.slane %v34_v21, %v38_v20  ;;  %v43_v26 = vrot.slane %v34_v21, %v42_v22 }
   0xb   :  { %238 = vmatpush3.bf16.msra.mxu1 %v258_v9  ;;  %132 = vmatpush1.bf16.msra.mxu0 %v259_v10 }
   0xc   :  { %239 = vmatprep.subr.bf16.mxu1 %v264_v0  ;;  %133 = vmatprep.subr.bf16.mxu0 %v260_v11 }
   0xf   :  { %240 = vmatpush3.bf16.msra.mxu1 %v262_v12  ;;  %134 = vmatpush1.bf16.msra.mxu0 %v263_v15 }
  0x12   :  { %242 = vmatmul.mubr.msk.bf16.vlgmr.msra.gmra.mxu1 %vm115_vm1, %v17_v16  ;;  %226 = vmatmul.mubr.msk.bf16.vlgmr.msra.gmra.mxu0 %vm115_vm1, %v17_v16 }
  0xd2   :  { %v196_v25 = vpop.f32.mrf.mxu1  ;;  %v153_v28 = vpop.f32.mrf.mxu0 }
  0xd3   :  { %v197_v27 = vadd.f32 %v196_v25, %v47_v23  ;;  %v154_v29 = vadd.f32 %v153_v28, %v39_v24 }
  0xd4   :  { %v243_v30 = vpop.f32.mrf.mxu1  ;;  %v155_v31 = vpop.f32.mrf.mxu0 }
  0xd5   :  { %206 = vst.msk [vmem:[%s355_s3 + $0x10] sm:$0xff] %vm205_vm2, %v197_v27  ;;  %203 = vst [vmem:[%s355_s3] sm:$0xff] %v154_v29  ;;  %v156_v32 = vadd.f32 %v155_v31, %v43_v26 }
  0xd6   :  { %v199_v33 = vpop.f32.mrf.mxu1  ;;  %v157_v35 = vpop.f32.mrf.mxu0 }
  0xd7   :  { %v200_v34 = vadd.f32 %v199_v33, %v47_v23  ;;  %204 = vst [vmem:[%s355_s3 + $0x8] sm:$0xff] %v156_v32  ;;  %v158_v36 = vadd.f32 %v157_v35, %v39_v24 }
  0xd8   :  { %v244_v37 = vpop.f32.mrf.mxu1  ;;  %v159_v38 = vpop.f32.mrf.mxu0 }
  0xd9   :  { %209 = vst.msk [vmem:[%s355_s3 + $0x28] sm:$0xff] %vm205_vm2, %v200_v34  ;;  %207 = vst [vmem:[%s355_s3 + $0x18] sm:$0xff] %v158_v36  ;;  %v160_v39 = vadd.f32 %v159_v38, %v43_v26 }
  0xdb   :  { %208 = vst [vmem:[%s355_s3 + $0x20] sm:$0xff] %v160_v39 }

// kernel: structure_module_forward.11
= control target key start
LH: loop header
LB: loop body
LE: loop exit
PB: predicated region body
PF: predicated region fallthrough
CT: control target
= control target key end

     0   :  { %vm27_vm0 = vcmask 523264   ;;  %v202_v14 = vmov 0.0   ;;  %vm203_vm1 = vmmov 0   ;;  %s287_s0 = inlined_call_operand.vmem [shape: f32[16,64], index: 0, kind: input, shape index: {}]   ;;  %s288_s3 = inlined_call_operand.vmem [shape: bf16[64,64], index: 3, kind: input, shape index: {}]   ;;  %s289_s1 = inlined_call_operand.vmem [shape: f32[1,64], index: 1, kind: input, shape index: {}]   ;;  %s290_s2 = inlined_call_operand.vmem [shape: f32[1,64], index: 2, kind: input, shape index: {}]   ;;  %s291_s5 = inlined_call_operand.vmem [shape: f32[16,64], index: 5, kind: output, shape index: {0}]   ;;  %s292_s4 = inlined_call_operand.vmem [shape: f32[1,64], index: 4, kind: input, shape index: {}]   ;;  %s293_s6 = inlined_call_operand.vmem [shape: f32[16,64], index: 6, kind: output, shape index: {1}]  }
   0x1   :  { %v23_v0 = vld [vmem:[%s287_s0] sm:$0xff]  ;;  %v24_v1 = vld [vmem:[%s287_s0 + $0x8] sm:$0xff]  ;;  %180 = vmatprep.subr.bf16.mxu0 %v202_v14  ;;  %v194_v15 = vld [vmem:[%s288_s3 + $0x18] sm:$0xff]   ;;  %188 = vmatprep.mubr.msk.bf16.mxu0 %vm203_vm1, %v202_v14 }
   0x2   :  { %v28_v2 = vsel %vm27_vm0, %v23_v0, 0.0  ;;  %v31_v3 = vsel %vm27_vm0, %v24_v1, 0.0  ;;  %181 = vmatpush3.bf16.msra.mxu0 %v194_v15  ;;  %v195_v16 = vld [vmem:[%s288_s3 + $0x10] sm:$0xff]   ;;  %v196_v17 = vld [vmem:[%s288_s3 + $0x8] sm:$0xff]   ;;  %v197_v18 = vld [vmem:[%s288_s3] sm:$0xff]  }
   0x3   :  { %29 = vadd.xlane.f32.xlu0 %v28_v2  ;;  %182 = vmatprep.subr.bf16.mxu0 %v202_v14  ;;  %v167_v26 = vld [vmem:[%s289_s1] ss:$0 sm:$0xff] }
   0x4   :  { %v168_v28 = vld [vmem:[%s290_s2] ss:$0 sm:$0xff] }
   0x5   :  { %v169_v36 = vld [vmem:[%s292_s4] ss:$0 sm:$0xff] }
   0x6   :  { %183 = vmatpush3.bf16.msra.mxu0 %v195_v16 }
   0x7   :  { %32 = vadd.xlane.f32.xlu0 %v31_v3  ;;  %184 = vmatprep.subr.bf16.mxu0 %v202_v14 }
   0xa   :  { %185 = vmatpush3.bf16.msra.mxu0 %v196_v17 }
   0xb   :  { %186 = vmatprep.subr.bf16.mxu0 %v202_v14 }
   0xe   :  { %187 = vmatpush3.bf16.msra.mxu0 %v197_v18 }
  0x8c   :  { %v30_v4 = vpop.xlane.xlu0 %29 }
  0x8d   :  { %v35_v5 = vmul.f32 0.015625, %v30_v4 }
  0x8f   :  { %v37_v6 = vsub.f32 %v23_v0, %v35_v5 }
  0x90   :  { %v33_v7 = vpop.xlane.xlu0 %32 }
  0x91   :  { %v36_v8 = vmul.f32 0.015625, %v33_v7  ;;  %v39_v9 = vmul.f32 %v37_v6, %v37_v6 }
  0x93   :  { %v38_v10 = vsub.f32 %v24_v1, %v36_v8  ;;  %v41_v11 = vsel %vm27_vm0, %v39_v9, 0.0 }
  0x94   :  { %42 = vadd.xlane.f32.xlu1 %v41_v11 }
  0x95   :  { %v40_v12 = vmul.f32 %v38_v10, %v38_v10 }
  0x97   :  { %v44_v13 = vsel %vm27_vm0, %v40_v12, 0.0 }
  0x98   :  { %45 = vadd.xlane.f32.xlu1 %v44_v13 }
 0x11d   :  { %v43_v19 = vpop.xlane.xlu1 %42 }
 0x11e   :  { %v47_v20 = vmul.f32 0.015625, %v43_v19 }
 0x120   :  { %v49_v21 = vadd.f32 1e-05, %v47_v20 }
 0x121   :  { %v46_v22 = vpop.xlane.xlu1 %45 }
 0x122   :  { %198 = vrsqrt.f32 %v49_v21  ;;  %v48_v23 = vmul.f32 0.015625, %v46_v22 }
 0x124   :  { %v50_v24 = vadd.f32 1e-05, %v48_v23 }
 0x126   :  { %200 = vrsqrt.f32 %v50_v24 }
 0x12f   :  { %v199_v25 = vpop.eup %198 }
 0x130   :  { %v53_v27 = vmul.f32 %v199_v25, %v37_v6 }
 0x132   :  { %v61_v29 = vmul.f32 %v167_v26, %v53_v27 }
 0x133   :  { %v201_v30 = vpop.eup %200 }
 0x134   :  { %v54_v31 = vmul.f32 %v201_v30, %v38_v10  ;;  %v69_v32 = vadd.f32 %v168_v28, %v61_v29 }
 0x136   :  { %v62_v33 = vmul.f32 %v167_v26, %v54_v31  ;;  %71 = vst.msk [vmem:[%s291_s5] sm:$0xff] %vm27_vm0, %v69_v32 }
 0x138   :  { %v70_v34 = vadd.f32 %v168_v28, %v62_v33 }
 0x13a   :  { %72 = vst.msk [vmem:[%s291_s5 + $0x8] sm:$0xff] %vm27_vm0, %v70_v34  ;;  %v73_v35 = vpack.c.bf16 %v70_v34, %v69_v32 }
 0x13c   :  { %189 = vmatmul.mubr.msk.bf16.vlgmr.msra.gmra.mxu0 %vm27_vm0, %v73_v35 }
 0x1fc   :  { %v150_v37 = vpop.f32.mrf.mxu0 }
 0x1fd   :  { %v151_v38 = vadd.f32 %v169_v36, %v150_v37 }
 0x1fe   :  { %v190_v39 = vpop.f32.mrf.mxu0 }
 0x1ff   :  { %157 = vst.msk [vmem:[%s293_s6] sm:$0xff] %vm27_vm0, %v151_v38 }
 0x200   :  { %v153_v40 = vpop.f32.mrf.mxu0 }
 0x201   :  { %v154_v41 = vadd.f32 %v169_v36, %v153_v40 }
 0x202   :  { %v191_v42 = vpop.f32.mrf.mxu0 }
 0x203   :  { %158 = vst.msk [vmem:[%s293_s6 + $0x8] sm:$0xff] %vm27_vm0, %v154_v41 }

// kernel: structure_module_forward.12
= control target key start
LH: loop header
LB: loop body
LE: loop exit
PB: predicated region body
PF: predicated region fallthrough
CT: control target
= control target key end

     0   :  { %vm32_vm0 = vcmask 261120   ;;  %s666_s0 = inlined_call_operand.vmem [shape: f32[128,32], index: 0, kind: input, shape index: {}]   ;;  %s667_s1 = inlined_call_operand.vmem [shape: f32[1,32], index: 1, kind: input, shape index: {}]   ;;  %s668_s2 = inlined_call_operand.vmem [shape: f32[1,32], index: 2, kind: input, shape index: {}]   ;;  %s669_s3 = inlined_call_operand.vmem [shape: f32[128,32], index: 3, kind: output, shape index: {}]  }
   0x1   :  { %v14_v0 = vld [vmem:[%s666_s0] sm:$0xff]  ;;  %v16_v1 = vld [vmem:[%s666_s0 + $0x10] sm:$0xff]  ;;  %v15_v2 = vld [vmem:[%s666_s0 + $0x8] sm:$0xff] }
   0x2   :  { %v33_v3 = vsel %vm32_vm0, %v14_v0, 0.0  ;;  %v39_v4 = vsel %vm32_vm0, %v16_v1, 0.0  ;;  %v17_v5 = vld [vmem:[%s666_s0 + $0x18] sm:$0xff]  ;;  %v36_v6 = vsel %vm32_vm0, %v15_v2, 0.0  ;;  %v18_v8 = vld [vmem:[%s666_s0 + $0x20] sm:$0xff]  ;;  %v19_v9 = vld [vmem:[%s666_s0 + $0x28] sm:$0xff] }
   0x3   :  { %34 = vadd.xlane.f32.xlu0 %v33_v3  ;;  %40 = vadd.xlane.f32.xlu1 %v39_v4  ;;  %v42_v7 = vsel %vm32_vm0, %v17_v5, 0.0  ;;  %v45_v10 = vsel %vm32_vm0, %v18_v8, 0.0  ;;  %v48_v11 = vsel %vm32_vm0, %v19_v9, 0.0  ;;  %v387_v12 = vld [vmem:[%s666_s0 + $0x30] sm:$0xff]  ;;  %v392_v13 = vld [vmem:[%s666_s0 + $0x38] sm:$0xff]  ;;  %v401_v16 = vld [vmem:[%s666_s0 + $0x40] sm:$0xff] }
   0x4   :  { %v51_v14 = vsel %vm32_vm0, %v387_v12, 0.0  ;;  %v54_v15 = vsel %vm32_vm0, %v392_v13, 0.0  ;;  %v406_v17 = vld [vmem:[%s666_s0 + $0x48] sm:$0xff]  ;;  %v57_v18 = vsel %vm32_vm0, %v401_v16, 0.0  ;;  %v415_v20 = vld [vmem:[%s666_s0 + $0x50] sm:$0xff]  ;;  %v420_v21 = vld [vmem:[%s666_s0 + $0x58] sm:$0xff] }
   0x5   :  { %v60_v19 = vsel %vm32_vm0, %v406_v17, 0.0  ;;  %v63_v22 = vsel %vm32_vm0, %v415_v20, 0.0  ;;  %v66_v23 = vsel %vm32_vm0, %v420_v21, 0.0  ;;  %v429_v24 = vld [vmem:[%s666_s0 + $0x60] sm:$0xff]  ;;  %v434_v25 = vld [vmem:[%s666_s0 + $0x68] sm:$0xff]  ;;  %v443_v28 = vld [vmem:[%s666_s0 + $0x70] sm:$0xff] }
   0x6   :  { %v69_v26 = vsel %vm32_vm0, %v429_v24, 0.0  ;;  %v72_v27 = vsel %vm32_vm0, %v434_v25, 0.0  ;;  %v448_v29 = vld [vmem:[%s666_s0 + $0x78] sm:$0xff]  ;;  %v75_v30 = vsel %vm32_vm0, %v443_v28, 0.0 }
   0x7   :  { %37 = vadd.xlane.f32.xlu0 %v36_v6  ;;  %43 = vadd.xlane.f32.xlu1 %v42_v7  ;;  %v78_v31 = vsel %vm32_vm0, %v448_v29, 0.0 }
   0xb   :  { %46 = vadd.xlane.f32.xlu0 %v45_v10  ;;  %49 = vadd.xlane.f32.xlu1 %v48_v11 }
   0xf   :  { %52 = vadd.xlane.f32.xlu0 %v51_v14  ;;  %55 = vadd.xlane.f32.xlu1 %v54_v15 }
  0x13   :  { %58 = vadd.xlane.f32.xlu0 %v57_v18  ;;  %61 = vadd.xlane.f32.xlu1 %v60_v19 }
  0x17   :  { %64 = vadd.xlane.f32.xlu0 %v63_v22  ;;  %67 = vadd.xlane.f32.xlu1 %v66_v23 }
  0x1b   :  { %70 = vadd.xlane.f32.xlu0 %v69_v26  ;;  %73 = vadd.xlane.f32.xlu1 %v72_v27 }
  0x1f   :  { %76 = vadd.xlane.f32.xlu0 %v75_v30  ;;  %79 = vadd.xlane.f32.xlu1 %v78_v31 }
  0x8c   :  { %v35_v32 = vpop.xlane.xlu0 %34  ;;  %v41_v33 = vpop.xlane.xlu1 %40 }
  0x8d   :  { %v82_v34 = vmul.f32 0.03125, %v35_v32  ;;  %v84_v35 = vmul.f32 0.03125, %v41_v33 }
  0x8f   :  { %v454_v36 = vsub.f32 %v14_v0, %v82_v34  ;;  %v456_v37 = vsub.f32 %v16_v1, %v84_v35 }
  0x90   :  { %v38_v38 = vpop.xlane.xlu0 %37  ;;  %v44_v39 = vpop.xlane.xlu1 %43 }
  0x91   :  { %v83_v40 = vmul.f32 0.03125, %v38_v38  ;;  %v85_v41 = vmul.f32 0.03125, %v44_v39  ;;  %v114_v42 = vmul.f32 %v454_v36, %v454_v36  ;;  %v116_v43 = vmul.f32 %v456_v37, %v456_v37 }
  0x93   :  { %v462_v44 = vsub.f32 %v15_v2, %v83_v40  ;;  %v464_v45 = vsub.f32 %v17_v5, %v85_v41  ;;  %v130_v46 = vsel %vm32_vm0, %v114_v42, 0.0  ;;  %v136_v49 = vsel %vm32_vm0, %v116_v43, 0.0 }
  0x94   :  { %131 = vadd.xlane.f32.xlu0 %v130_v46  ;;  %v47_v47 = vpop.xlane.xlu0 %46  ;;  %v50_v48 = vpop.xlane.xlu1 %49 }
  0x95   :  { %v86_v50 = vmul.f32 0.03125, %v47_v47  ;;  %v87_v51 = vmul.f32 0.03125, %v50_v48  ;;  %v115_v52 = vmul.f32 %v462_v44, %v462_v44  ;;  %v117_v53 = vmul.f32 %v464_v45, %v464_v45 }
  0x97   :  { %v472_v54 = vsub.f32 %v18_v8, %v86_v50  ;;  %v474_v55 = vsub.f32 %v19_v9, %v87_v51  ;;  %v133_v56 = vsel %vm32_vm0, %v115_v52, 0.0  ;;  %v139_v59 = vsel %vm32_vm0, %v117_v53, 0.0 }
  0x98   :  { %137 = vadd.xlane.f32.xlu0 %v136_v49  ;;  %134 = vadd.xlane.f32.xlu1 %v133_v56  ;;  %v53_v57 = vpop.xlane.xlu0 %52  ;;  %v56_v58 = vpop.xlane.xlu1 %55 }
  0x99   :  { %v88_v60 = vmul.f32 0.03125, %v53_v57  ;;  %v89_v61 = vmul.f32 0.03125, %v56_v58  ;;  %v118_v62 = vmul.f32 %v472_v54, %v472_v54  ;;  %v119_v63 = vmul.f32 %v474_v55, %v474_v55 }
  0x9b   :  { %v483_v0 = vsub.f32 %v387_v12, %v88_v60  ;;  %v486_v1 = vsub.f32 %v392_v13, %v89_v61  ;;  %v142_v2 = vsel %vm32_vm0, %v118_v62, 0.0  ;;  %v145_v5 = vsel %vm32_vm0, %v119_v63, 0.0 }
  0x9c   :  { %140 = vadd.xlane.f32.xlu1 %v139_v59  ;;  %143 = vadd.xlane.f32.xlu0 %v142_v2  ;;  %v59_v3 = vpop.xlane.xlu0 %58  ;;  %v62_v4 = vpop.xlane.xlu1 %61 }
  0x9d   :  { %v90_v6 = vmul.f32 0.03125, %v59_v3  ;;  %v91_v7 = vmul.f32 0.03125, %v62_v4  ;;  %v120_v8 = vmul.f32 %v483_v0, %v483_v0  ;;  %v121_v9 = vmul.f32 %v486_v1, %v486_v1 }
  0x9f   :  { %v495_v10 = vsub.f32 %v401_v16, %v90_v6  ;;  %v498_v11 = vsub.f32 %v406_v17, %v91_v7  ;;  %v148_v12 = vsel %vm32_vm0, %v120_v8, 0.0  ;;  %v151_v15 = vsel %vm32_vm0, %v121_v9, 0.0 }
  0xa0   :  { %146 = vadd.xlane.f32.xlu1 %v145_v5  ;;  %149 = vadd.xlane.f32.xlu0 %v148_v12  ;;  %v65_v13 = vpop.xlane.xlu0 %64  ;;  %v68_v14 = vpop.xlane.xlu1 %67 }
  0xa1   :  { %v92_v18 = vmul.f32 0.03125, %v65_v13  ;;  %v93_v19 = vmul.f32 0.03125, %v68_v14  ;;  %v122_v22 = vmul.f32 %v495_v10, %v495_v10  ;;  %v123_v16 = vmul.f32 %v498_v11, %v498_v11 }
  0xa3   :  { %v507_v23 = vsub.f32 %v415_v20, %v92_v18  ;;  %v510_v17 = vsub.f32 %v420_v21, %v93_v19  ;;  %v154_v26 = vsel %vm32_vm0, %v122_v22, 0.0  ;;  %v157_v31 = vsel %vm32_vm0, %v123_v16, 0.0 }
  0xa4   :  { %152 = vadd.xlane.f32.xlu1 %v151_v15  ;;  %155 = vadd.xlane.f32.xlu0 %v154_v26  ;;  %v71_v27 = vpop.xlane.xlu0 %70  ;;  %v74_v30 = vpop.xlane.xlu1 %73  ;;  %v547_v26 = vld [vmem:[%s667_s1] ss:$0 sm:$0xff] }
  0xa5   :  { %v94_v32 = vmul.f32 0.03125, %v71_v27  ;;  %v95_v33 = vmul.f32 0.03125, %v74_v30  ;;  %v124_v34 = vmul.f32 %v507_v23, %v507_v23  ;;  %v125_v20 = vmul.f32 %v510_v17, %v510_v17 }
  0xa7   :  { %v519_v35 = vsub.f32 %v429_v24, %v94_v32  ;;  %v522_v21 = vsub.f32 %v434_v25, %v95_v33  ;;  %v160_v38 = vsel %vm32_vm0, %v124_v34, 0.0  ;;  %v163_v41 = vsel %vm32_vm0, %v125_v20, 0.0  ;;  %v553_v32 = vld [vmem:[%s668_s2] ss:$0 sm:$0xff] }
  0xa8   :  { %158 = vadd.xlane.f32.xlu1 %v157_v31  ;;  %161 = vadd.xlane.f32.xlu0 %v160_v38  ;;  %v77_v39 = vpop.xlane.xlu0 %76  ;;  %v80_v40 = vpop.xlane.xlu1 %79 }
  0xa9   :  { %v96_v42 = vmul.f32 0.03125, %v77_v39  ;;  %v97_v43 = vmul.f32 0.03125, %v80_v40  ;;  %v126_v46 = vmul.f32 %v519_v35, %v519_v35  ;;  %v127_v24 = vmul.f32 %v522_v21, %v522_v21 }
  0xab   :  { %v531_v47 = vsub.f32 %v443_v28, %v96_v42  ;;  %v534_v25 = vsub.f32 %v448_v29, %v97_v43  ;;  %v166_v48 = vsel %vm32_vm0, %v126_v46, 0.0  ;;  %v169_v49 = vsel %vm32_vm0, %v127_v24, 0.0 }
  0xac   :  { %164 = vadd.xlane.f32.xlu1 %v163_v41  ;;  %167 = vadd.xlane.f32.xlu0 %v166_v48 }
  0xad   :  { %v128_v50 = vmul.f32 %v531_v47, %v531_v47  ;;  %v129_v51 = vmul.f32 %v534_v25, %v534_v25 }
  0xaf   :  { %v172_v52 = vsel %vm32_vm0, %v128_v50, 0.0  ;;  %v175_v28 = vsel %vm32_vm0, %v129_v51, 0.0 }
  0xb0   :  { %170 = vadd.xlane.f32.xlu1 %v169_v49  ;;  %173 = vadd.xlane.f32.xlu0 %v172_v52 }
  0xb4   :  { %176 = vadd.xlane.f32.xlu1 %v175_v28 }
 0x11d   :  { %v132_v29 = vpop.xlane.xlu0 %131 }
 0x11e   :  { %v178_v53 = vmul.f32 0.03125, %v132_v29 }
 0x120   :  { %v194_v56 = vadd.f32 1e-05, %v178_v53 }
 0x121   :  { %v135_v57 = vpop.xlane.xlu1 %134  ;;  %v138_v58 = vpop.xlane.xlu0 %137 }
 0x122   :  { %308 = vrsqrt.f32 %v194_v56  ;;  %v179_v59 = vmul.f32 0.03125, %v135_v57  ;;  %v180_v60 = vmul.f32 0.03125, %v138_v58 }
 0x124   :  { %v195_v61 = vadd.f32 1e-05, %v179_v59  ;;  %v196_v62 = vadd.f32 1e-05, %v180_v60 }
 0x125   :  { %v141_v63 = vpop.xlane.xlu1 %140  ;;  %v144_v2 = vpop.xlane.xlu0 %143 }
 0x126   :  { %310 = vrsqrt.f32 %v195_v61  ;;  %v181_v3 = vmul.f32 0.03125, %v141_v63  ;;  %v182_v4 = vmul.f32 0.03125, %v144_v2 }
 0x127   :  { %312 = vrsqrt.f32 %v196_v62 }
 0x128   :  { %v197_v5 = vadd.f32 1e-05, %v181_v3  ;;  %v198_v6 = vadd.f32 1e-05, %v182_v4 }
 0x129   :  { %v147_v7 = vpop.xlane.xlu1 %146  ;;  %v150_v8 = vpop.xlane.xlu0 %149 }
 0x12a   :  { %314 = vrsqrt.f32 %v197_v5  ;;  %v183_v9 = vmul.f32 0.03125, %v147_v7  ;;  %v184_v12 = vmul.f32 0.03125, %v150_v8 }
 0x12b   :  { %316 = vrsqrt.f32 %v198_v6 }
 0x12c   :  { %v199_v13 = vadd.f32 1e-05, %v183_v9  ;;  %v200_v14 = vadd.f32 1e-05, %v184_v12 }
 0x12d   :  { %v153_v15 = vpop.xlane.xlu1 %152  ;;  %v156_v18 = vpop.xlane.xlu0 %155 }
 0x12e   :  { %318 = vrsqrt.f32 %v199_v13  ;;  %v185_v19 = vmul.f32 0.03125, %v153_v15  ;;  %v186_v22 = vmul.f32 0.03125, %v156_v18 }
 0x12f   :  { %v309_v16 = vpop.eup %308  ;;  %320 = vrsqrt.f32 %v200_v14 }
 0x130   :  { %v226_v27 = vmul.f32 %v309_v16, %v454_v36  ;;  %v201_v30 = vadd.f32 1e-05, %v185_v19  ;;  %v202_v31 = vadd.f32 1e-05, %v186_v22 }
 0x131   :  { %v159_v33 = vpop.xlane.xlu1 %158  ;;  %v162_v34 = vpop.xlane.xlu0 %161 }
 0x132   :  { %v248_v20 = vmul.f32 %v547_v26, %v226_v27  ;;  %322 = vrsqrt.f32 %v201_v30  ;;  %v187_v38 = vmul.f32 0.03125, %v159_v33  ;;  %v188_v39 = vmul.f32 0.03125, %v162_v34 }
 0x133   :  { %v311_v40 = vpop.eup %310  ;;  %324 = vrsqrt.f32 %v202_v31 }
 0x134   :  { %v313_v41 = vpop.eup %312  ;;  %v270_v42 = vadd.f32 %v553_v32, %v248_v20  ;;  %v227_v36 = vmul.f32 %v311_v40, %v462_v44  ;;  %v203_v43 = vadd.f32 1e-05, %v187_v38  ;;  %v204_v46 = vadd.f32 1e-05, %v188_v39 }
 0x135   :  { %v228_v24 = vmul.f32 %v313_v41, %v456_v37  ;;  %v165_v48 = vpop.xlane.xlu1 %164  ;;  %v168_v49 = vpop.xlane.xlu0 %167 }
 0x136   :  { %286 = vst.msk [vmem:[%s669_s3] sm:$0xff] %vm32_vm0, %v270_v42  ;;  %v249_v50 = vmul.f32 %v547_v26, %v227_v36  ;;  %326 = vrsqrt.f32 %v203_v43  ;;  %v189_v51 = vmul.f32 0.03125, %v165_v48  ;;  %v190_v52 = vmul.f32 0.03125, %v168_v49 }
 0x137   :  { %v315_v28 = vpop.eup %314  ;;  %v250_v29 = vmul.f32 %v547_v26, %v228_v24  ;;  %328 = vrsqrt.f32 %v204_v46 }
 0x138   :  { %v317_v44 = vpop.eup %316  ;;  %v271_v53 = vadd.f32 %v553_v32, %v249_v50  ;;  %v229_v37 = vmul.f32 %v315_v28, %v464_v45  ;;  %v205_v56 = vadd.f32 1e-05, %v189_v51  ;;  %v206_v57 = vadd.f32 1e-05, %v190_v52 }
 0x139   :  { %v272_v58 = vadd.f32 %v553_v32, %v250_v29  ;;  %v230_v59 = vmul.f32 %v317_v44, %v472_v54  ;;  %v171_v60 = vpop.xlane.xlu1 %170  ;;  %v174_v61 = vpop.xlane.xlu0 %173 }
 0x13a   :  { %287 = vst.msk [vmem:[%s669_s3 + $0x8] sm:$0xff] %vm32_vm0, %v271_v53  ;;  %v251_v62 = vmul.f32 %v547_v26, %v229_v37  ;;  %330 = vrsqrt.f32 %v205_v56  ;;  %v191_v63 = vmul.f32 0.03125, %v171_v60  ;;  %v192_v2 = vmul.f32 0.03125, %v174_v61 }
 0x13b   :  { %v319_v3 = vpop.eup %318  ;;  %288 = vst.msk [vmem:[%s669_s3 + $0x10] sm:$0xff] %vm32_vm0, %v272_v58  ;;  %v252_v45 = vmul.f32 %v547_v26, %v230_v59  ;;  %332 = vrsqrt.f32 %v206_v57 }
 0x13c   :  { %v321_v54 = vpop.eup %320  ;;  %v273_v4 = vadd.f32 %v553_v32, %v251_v62  ;;  %v231_v5 = vmul.f32 %v319_v3, %v474_v55  ;;  %v207_v6 = vadd.f32 1e-05, %v191_v63  ;;  %v208_v7 = vadd.f32 1e-05, %v192_v2 }
 0x13d   :  { %v274_v8 = vadd.f32 %v553_v32, %v252_v45  ;;  %v232_v9 = vmul.f32 %v321_v54, %v483_v0  ;;  %v177_v12 = vpop.xlane.xlu1 %176 }
 0x13e   :  { %289 = vst.msk [vmem:[%s669_s3 + $0x18] sm:$0xff] %vm32_vm0, %v273_v4  ;;  %v253_v13 = vmul.f32 %v547_v26, %v231_v5  ;;  %334 = vrsqrt.f32 %v207_v6  ;;  %v193_v14 = vmul.f32 0.03125, %v177_v12 }
 0x13f   :  { %v323_v15 = vpop.eup %322  ;;  %290 = vst.msk [vmem:[%s669_s3 + $0x20] sm:$0xff] %vm32_vm0, %v274_v8  ;;  %v254_v55 = vmul.f32 %v547_v26, %v232_v9  ;;  %336 = vrsqrt.f32 %v208_v7 }
 0x140   :  { %v325_v0 = vpop.eup %324  ;;  %v275_v18 = vadd.f32 %v553_v32, %v253_v13  ;;  %v233_v19 = vmul.f32 %v323_v15, %v486_v1  ;;  %v209_v22 = vadd.f32 1e-05, %v193_v14 }
 0x141   :  { %v276_v16 = vadd.f32 %v553_v32, %v254_v55  ;;  %v234_v27 = vmul.f32 %v325_v0, %v495_v10 }
 0x142   :  { %291 = vst.msk [vmem:[%s669_s3 + $0x28] sm:$0xff] %vm32_vm0, %v275_v18  ;;  %v255_v30 = vmul.f32 %v547_v26, %v233_v19  ;;  %338 = vrsqrt.f32 %v209_v22 }
 0x143   :  { %v327_v31 = vpop.eup %326  ;;  %292 = vst.msk [vmem:[%s669_s3 + $0x30] sm:$0xff] %vm32_vm0, %v276_v16  ;;  %v256_v1 = vmul.f32 %v547_v26, %v234_v27 }
 0x144   :  { %v329_v33 = vpop.eup %328  ;;  %v277_v34 = vadd.f32 %v553_v32, %v255_v30  ;;  %v235_v10 = vmul.f32 %v327_v31, %v498_v11 }
 0x145   :  { %v278_v20 = vadd.f32 %v553_v32, %v256_v1  ;;  %v236_v38 = vmul.f32 %v329_v33, %v507_v23 }
 0x146   :  { %293 = vst.msk [vmem:[%s669_s3 + $0x38] sm:$0xff] %vm32_vm0, %v277_v34  ;;  %v257_v39 = vmul.f32 %v547_v26, %v235_v10 }
 0x147   :  { %v331_v40 = vpop.eup %330  ;;  %294 = vst.msk [vmem:[%s669_s3 + $0x40] sm:$0xff] %vm32_vm0, %v278_v20  ;;  %v258_v41 = vmul.f32 %v547_v26, %v236_v38 }
 0x148   :  { %v333_v11 = vpop.eup %332  ;;  %v279_v42 = vadd.f32 %v553_v32, %v257_v39  ;;  %v237_v23 = vmul.f32 %v331_v40, %v510_v17 }
 0x149   :  { %v280_v36 = vadd.f32 %v553_v32, %v258_v41  ;;  %v238_v43 = vmul.f32 %v333_v11, %v519_v35 }
 0x14a   :  { %295 = vst.msk [vmem:[%s669_s3 + $0x48] sm:$0xff] %vm32_vm0, %v279_v42  ;;  %v259_v46 = vmul.f32 %v547_v26, %v237_v23 }
 0x14b   :  { %v335_v24 = vpop.eup %334  ;;  %296 = vst.msk [vmem:[%s669_s3 + $0x50] sm:$0xff] %vm32_vm0, %v280_v36  ;;  %v260_v48 = vmul.f32 %v547_v26, %v238_v43 }
 0x14c   :  { %v337_v17 = vpop.eup %336  ;;  %v281_v49 = vadd.f32 %v553_v32, %v259_v46  ;;  %v239_v35 = vmul.f32 %v335_v24, %v522_v21 }
 0x14d   :  { %v282_v50 = vadd.f32 %v553_v32, %v260_v48  ;;  %v240_v51 = vmul.f32 %v337_v17, %v531_v47 }
 0x14e   :  { %297 = vst.msk [vmem:[%s669_s3 + $0x58] sm:$0xff] %vm32_vm0, %v281_v49  ;;  %v261_v52 = vmul.f32 %v547_v26, %v239_v35 }
 0x14f   :  { %v339_v28 = vpop.eup %338  ;;  %298 = vst.msk [vmem:[%s669_s3 + $0x60] sm:$0xff] %vm32_vm0, %v282_v50  ;;  %v262_v29 = vmul.f32 %v547_v26, %v240_v51 }
 0x150   :  { %v283_v21 = vadd.f32 %v553_v32, %v261_v52  ;;  %v241_v44 = vmul.f32 %v339_v28, %v534_v25 }
 0x151   :  { %v284_v47 = vadd.f32 %v553_v32, %v262_v29 }
 0x152   :  { %299 = vst.msk [vmem:[%s669_s3 + $0x68] sm:$0xff] %vm32_vm0, %v283_v21  ;;  %v263_v53 = vmul.f32 %v547_v26, %v241_v44 }
 0x153   :  { %300 = vst.msk [vmem:[%s669_s3 + $0x70] sm:$0xff] %vm32_vm0, %v284_v47 }
 0x154   :  { %v285_v37 = vadd.f32 %v553_v32, %v263_v53 }
 0x156   :  { %301 = vst.msk [vmem:[%s669_s3 + $0x78] sm:$0xff] %vm32_vm0, %v285_v37 }

// kernel: squeeze.46
= control target key start
LH: loop header
LB: loop body
LE: loop exit
PB: predicated region body
PF: predicated region fallthrough
CT: control target
= control target key end

     0   :  { %vm483_vm0 = vcmask 1047556   ;;  %s929_s10 = smov 8   ;;  %vm485_vm1 = vcmask 64512   ;;  %vm594_vm2 = vcmask 130112   ;;  %s1360_s0 = inlined_call_operand.vmem [shape: f32[2,8,4,8,3,1], index: 0, kind: input, shape index: {}]   ;;  %s1361_s1 = inlined_call_operand.vmem [shape: f32[16,96], index: 1, kind: output, shape index: {}]  }
   0x1   :  { %v899_v0 = vld [vmem:[%s1360_s0 + $0xe] sm:$0x3]  ;;  %v900_v1 = vld [vmem:[%s1360_s0 + $0xc] sm:$0x3]  ;;  %v901_v2 = vld [vmem:[%s1360_s0 + $0xa] sm:$0x3] }
   0x2   :  { %449 = vst [vmem:[#allocation0 + $0x38] sm:$0x3] %v899_v0  ;;  %454 = vst [vmem:[#allocation0 + $0x30] sm:$0x3] %v900_v1  ;;  %v902_v3 = vld [vmem:[%s1360_s0 + $0x8] sm:$0x3] }
   0x3   :  { %459 = vst [vmem:[#allocation0 + $0x28] sm:$0x3] %v901_v2  ;;  %v903_v4 = vld [vmem:[%s1360_s0 + $0x6] sm:$0x3]  ;;  %v904_v5 = vld [vmem:[%s1360_s0 + $0x4] sm:$0x3] }
   0x4   :  { %464 = vst [vmem:[#allocation0 + $0x20] sm:$0x3] %v902_v3  ;;  %469 = vst [vmem:[#allocation0 + $0x18] sm:$0x3] %v903_v4  ;;  %v905_v6 = vld [vmem:[%s1360_s0 + $0x2] sm:$0x3] }
   0x5   :  { %474 = vst [vmem:[#allocation0 + $0x10] sm:$0x3] %v904_v5  ;;  %v479_v7 = vld [vmem:[%s1360_s0] sm:$0x3]  ;;  %478 = vst [vmem:[#allocation0 + $0x8] sm:$0x3] %v905_v6 }
   0x6   :  { %480 = vst [vmem:[#allocation0] sm:$0x3] %v479_v7  ;;  %v835_v8 = vld [vmem:[%s1360_s0 + $0x8e] sm:$0x3]  ;;  %v836_v9 = vld [vmem:[%s1360_s0 + $0x8c] sm:$0x3] }
   0x7   :  { %v837_v10 = vld [vmem:[%s1360_s0 + $0x8a] sm:$0x3]  ;;  %129 = vst [vmem:[#allocation0 + $0x238] sm:$0x3] %v835_v8  ;;  %134 = vst [vmem:[#allocation0 + $0x230] sm:$0x3] %v836_v9 }
   0x8   :  { %139 = vst [vmem:[#allocation0 + $0x228] sm:$0x3] %v837_v10  ;;  %v838_v11 = vld [vmem:[%s1360_s0 + $0x88] sm:$0x3]  ;;  %v839_v12 = vld [vmem:[%s1360_s0 + $0x86] sm:$0x3] }
   0x9   :  { %v840_v13 = vld [vmem:[%s1360_s0 + $0x84] sm:$0x3]  ;;  %144 = vst [vmem:[#allocation0 + $0x220] sm:$0x3] %v838_v11  ;;  %149 = vst [vmem:[#allocation0 + $0x218] sm:$0x3] %v839_v12 }
   0xa   :  { %154 = vst [vmem:[#allocation0 + $0x210] sm:$0x3] %v840_v13  ;;  %v841_v14 = vld [vmem:[%s1360_s0 + $0x82] sm:$0x3]  ;;  %v842_v15 = vld [vmem:[%s1360_s0 + $0x80] sm:$0x3] }
   0xb   :  { %v867_v16 = vld [vmem:[%s1360_s0 + $0x4e] sm:$0x3]  ;;  %159 = vst [vmem:[#allocation0 + $0x208] sm:$0x3] %v841_v14  ;;  %164 = vst [vmem:[#allocation0 + $0x200] sm:$0x3] %v842_v15 }
   0xc   :  { %289 = vst [vmem:[#allocation0 + $0x138] sm:$0x3] %v867_v16  ;;  %v868_v17 = vld [vmem:[%s1360_s0 + $0x4c] sm:$0x3]  ;;  %v869_v18 = vld [vmem:[%s1360_s0 + $0x4a] sm:$0x3] }
   0xd   :  { %v870_v19 = vld [vmem:[%s1360_s0 + $0x48] sm:$0x3]  ;;  %294 = vst [vmem:[#allocation0 + $0x130] sm:$0x3] %v868_v17  ;;  %299 = vst [vmem:[#allocation0 + $0x128] sm:$0x3] %v869_v18 }
   0xe   :  { %304 = vst [vmem:[#allocation0 + $0x120] sm:$0x3] %v870_v19  ;;  %v871_v20 = vld [vmem:[%s1360_s0 + $0x46] sm:$0x3]  ;;  %v872_v21 = vld [vmem:[%s1360_s0 + $0x44] sm:$0x3] }
   0xf   :  { %v873_v22 = vld [vmem:[%s1360_s0 + $0x42] sm:$0x3]  ;;  %309 = vst [vmem:[#allocation0 + $0x118] sm:$0x3] %v871_v20  ;;  %314 = vst [vmem:[#allocation0 + $0x110] sm:$0x3] %v872_v21 }
  0x10   :  { %319 = vst [vmem:[#allocation0 + $0x108] sm:$0x3] %v873_v22  ;;  %v874_v23 = vld [vmem:[%s1360_s0 + $0x40] sm:$0x3]  ;;  %v891_v24 = vld [vmem:[%s1360_s0 + $0x1e] sm:$0x3] }
  0x11   :  { %v892_v25 = vld [vmem:[%s1360_s0 + $0x1c] sm:$0x3]  ;;  %v589_v26 = vld [vmem:[#allocation0 + $0x1] ss:$8 sm:$0xf0]  }
  0x12   :  { %324 = vst [vmem:[#allocation0 + $0x100] sm:$0x3] %v874_v23  ;;  %409 = vst [vmem:[#allocation0 + $0x78] sm:$0x3] %v891_v24  ;;  %v893_v27 = vld [vmem:[%s1360_s0 + $0x1a] sm:$0x3] }
  0x13   :  { %414 = vst [vmem:[#allocation0 + $0x70] sm:$0x3] %v892_v25  ;;  %v587_v28 = vld [vmem:[#allocation0 + $0x1] ss:$8 sm:$0xf]  }
  0x14   :  { %419 = vst [vmem:[#allocation0 + $0x68] sm:$0x3] %v893_v27  ;;  %v894_v29 = vld [vmem:[%s1360_s0 + $0x18] sm:$0x3]  ;;  %v591_v30 = vsel %vm483_vm0, %v589_v26, %v587_v28  ;;  %v895_v31 = vld [vmem:[%s1360_s0 + $0x16] sm:$0x3] }
  0x15   :  { %424 = vst [vmem:[#allocation0 + $0x60] sm:$0x3] %v894_v29  ;;  %v896_v32 = vld [vmem:[%s1360_s0 + $0x14] sm:$0x3]  ;;  %v897_v33 = vld [vmem:[%s1360_s0 + $0x12] sm:$0x3]  ;;  %592 = vrot.lane.b32.xlu0 %v591_v30, %s929_s10 }
  0x16   :  { %v610_v34 = vld [vmem:[#allocation0 + $0x201] ss:$8 sm:$0xf0]   ;;  %429 = vst [vmem:[#allocation0 + $0x58] sm:$0x3] %v895_v31 }
  0x17   :  { %434 = vst [vmem:[#allocation0 + $0x50] sm:$0x3] %v896_v32  ;;  %439 = vst [vmem:[#allocation0 + $0x48] sm:$0x3] %v897_v33  ;;  %v898_v35 = vld [vmem:[%s1360_s0 + $0x10] sm:$0x3] }
  0x18   :  { %v608_v36 = vld [vmem:[#allocation0 + $0x201] ss:$8 sm:$0xf]   ;;  %444 = vst [vmem:[#allocation0 + $0x40] sm:$0x3] %v898_v35 }
  0x19   :  { %v859_v37 = vld [vmem:[%s1360_s0 + $0x5e] sm:$0x3]  ;;  %v612_v38 = vsel %vm483_vm0, %v610_v34, %v608_v36  ;;  %v599_v39 = vld [vmem:[#allocation0 + $0x101] ss:$8 sm:$0xf0]  }
  0x1a   :  { %249 = vst [vmem:[#allocation0 + $0x178] sm:$0x3] %v859_v37  ;;  %v860_v40 = vld [vmem:[%s1360_s0 + $0x5c] sm:$0x3]  ;;  %613 = vrot.lane.b32.xlu1 %v612_v38, %s929_s10  ;;  %v861_v41 = vld [vmem:[%s1360_s0 + $0x5a] sm:$0x3] }
  0x1b   :  { %254 = vst [vmem:[#allocation0 + $0x170] sm:$0x3] %v860_v40  ;;  %v862_v42 = vld [vmem:[%s1360_s0 + $0x58] sm:$0x3]  ;;  %v863_v43 = vld [vmem:[%s1360_s0 + $0x56] sm:$0x3] }
  0x1c   :  { %v597_v44 = vld [vmem:[#allocation0 + $0x101] ss:$8 sm:$0xf]   ;;  %259 = vst [vmem:[#allocation0 + $0x168] sm:$0x3] %v861_v41 }
  0x1d   :  { %264 = vst [vmem:[#allocation0 + $0x160] sm:$0x3] %v862_v42  ;;  %269 = vst [vmem:[#allocation0 + $0x158] sm:$0x3] %v863_v43  ;;  %v864_v45 = vld [vmem:[%s1360_s0 + $0x54] sm:$0x3]  ;;  %v601_v46 = vsel %vm483_vm0, %v599_v39, %v597_v44 }
  0x1e   :  { %274 = vst [vmem:[#allocation0 + $0x150] sm:$0x3] %v864_v45  ;;  %v865_v47 = vld [vmem:[%s1360_s0 + $0x52] sm:$0x3]  ;;  %v866_v48 = vld [vmem:[%s1360_s0 + $0x50] sm:$0x3]  ;;  %602 = vrot.lane.b32.xlu0 %v601_v46, %s929_s10 }
  0x1f   :  { %v827_v49 = vld [vmem:[%s1360_s0 + $0x9e] sm:$0x3]  ;;  %v621_v50 = vld [vmem:[#allocation0 + $0x41] ss:$8 sm:$0xf0]  }
  0x20   :  { %279 = vst [vmem:[#allocation0 + $0x148] sm:$0x3] %v865_v47  ;;  %284 = vst [vmem:[#allocation0 + $0x140] sm:$0x3] %v866_v48  ;;  %v828_v51 = vld [vmem:[%s1360_s0 + $0x9c] sm:$0x3] }
  0x21   :  { %89 = vst [vmem:[#allocation0 + $0x278] sm:$0x3] %v827_v49  ;;  %94 = vst [vmem:[#allocation0 + $0x270] sm:$0x3] %v828_v51  ;;  %v829_v52 = vld [vmem:[%s1360_s0 + $0x9a] sm:$0x3] }
  0x22   :  { %v830_v53 = vld [vmem:[%s1360_s0 + $0x98] sm:$0x3]  ;;  %v831_v54 = vld [vmem:[%s1360_s0 + $0x96] sm:$0x3]  ;;  %99 = vst [vmem:[#allocation0 + $0x268] sm:$0x3] %v829_v52 }
  0x23   :  { %v619_v55 = vld [vmem:[#allocation0 + $0x41] ss:$8 sm:$0xf]   ;;  %104 = vst [vmem:[#allocation0 + $0x260] sm:$0x3] %v830_v53 }
  0x24   :  { %109 = vst [vmem:[#allocation0 + $0x258] sm:$0x3] %v831_v54  ;;  %v832_v56 = vld [vmem:[%s1360_s0 + $0x94] sm:$0x3]  ;;  %v623_v57 = vsel %vm483_vm0, %v621_v50, %v619_v55  ;;  %v833_v58 = vld [vmem:[%s1360_s0 + $0x92] sm:$0x3] }
  0x25   :  { %114 = vst [vmem:[#allocation0 + $0x250] sm:$0x3] %v832_v56  ;;  %v834_v59 = vld [vmem:[%s1360_s0 + $0x90] sm:$0x3]  ;;  %v883_v60 = vld [vmem:[%s1360_s0 + $0x2e] sm:$0x3]  ;;  %624 = vrot.lane.b32.xlu1 %v623_v57, %s929_s10 }
  0x26   :  { %119 = vst [vmem:[#allocation0 + $0x248] sm:$0x3] %v833_v58  ;;  %124 = vst [vmem:[#allocation0 + $0x240] sm:$0x3] %v834_v59  ;;  %v884_v61 = vld [vmem:[%s1360_s0 + $0x2c] sm:$0x3] }
  0x27   :  { %369 = vst [vmem:[#allocation0 + $0xb8] sm:$0x3] %v883_v60  ;;  %v885_v62 = vld [vmem:[%s1360_s0 + $0x2a] sm:$0x3]  ;;  %v886_v63 = vld [vmem:[%s1360_s0 + $0x28] sm:$0x3] }
  0x28   :  { %v632_v0 = vld [vmem:[#allocation0 + $0x141] ss:$8 sm:$0xf0]   ;;  %374 = vst [vmem:[#allocation0 + $0xb0] sm:$0x3] %v884_v61 }
  0x29   :  { %379 = vst [vmem:[#allocation0 + $0xa8] sm:$0x3] %v885_v62  ;;  %384 = vst [vmem:[#allocation0 + $0xa0] sm:$0x3] %v886_v63  ;;  %v887_v1 = vld [vmem:[%s1360_s0 + $0x26] sm:$0x3] }
  0x2a   :  { %389 = vst [vmem:[#allocation0 + $0x98] sm:$0x3] %v887_v1  ;;  %v888_v2 = vld [vmem:[%s1360_s0 + $0x24] sm:$0x3]  ;;  %v889_v3 = vld [vmem:[%s1360_s0 + $0x22] sm:$0x3] }
  0x2b   :  { %v890_v4 = vld [vmem:[%s1360_s0 + $0x20] sm:$0x3]  ;;  %394 = vst [vmem:[#allocation0 + $0x90] sm:$0x3] %v888_v2  ;;  %399 = vst [vmem:[#allocation0 + $0x88] sm:$0x3] %v889_v3 }
  0x2c   :  { %v630_v5 = vld [vmem:[#allocation0 + $0x141] ss:$8 sm:$0xf]   ;;  %404 = vst [vmem:[#allocation0 + $0x80] sm:$0x3] %v890_v4 }
  0x2d   :  { %v851_v6 = vld [vmem:[%s1360_s0 + $0x6e] sm:$0x3]  ;;  %v634_v7 = vsel %vm483_vm0, %v632_v0, %v630_v5  ;;  %v852_v8 = vld [vmem:[%s1360_s0 + $0x6c] sm:$0x3]  ;;  %v853_v9 = vld [vmem:[%s1360_s0 + $0x6a] sm:$0x3] }
  0x2e   :  { %209 = vst [vmem:[#allocation0 + $0x1b8] sm:$0x3] %v851_v6  ;;  %v854_v10 = vld [vmem:[%s1360_s0 + $0x68] sm:$0x3]  ;;  %635 = vrot.lane.b32.xlu0 %v634_v7, %s929_s10  ;;  %214 = vst [vmem:[#allocation0 + $0x1b0] sm:$0x3] %v852_v8 }
  0x2f   :  { %v643_v11 = vld [vmem:[#allocation0 + $0x241] ss:$8 sm:$0xf0]   ;;  %219 = vst [vmem:[#allocation0 + $0x1a8] sm:$0x3] %v853_v9 }
  0x30   :  { %224 = vst [vmem:[#allocation0 + $0x1a0] sm:$0x3] %v854_v10  ;;  %v855_v12 = vld [vmem:[%s1360_s0 + $0x66] sm:$0x3]  ;;  %v856_v13 = vld [vmem:[%s1360_s0 + $0x64] sm:$0x3] }
  0x31   :  { %229 = vst [vmem:[#allocation0 + $0x198] sm:$0x3] %v855_v12  ;;  %v857_v14 = vld [vmem:[%s1360_s0 + $0x62] sm:$0x3]  ;;  %v858_v15 = vld [vmem:[%s1360_s0 + $0x60] sm:$0x3] }
  0x32   :  { %v641_v16 = vld [vmem:[#allocation0 + $0x241] ss:$8 sm:$0xf]   ;;  %234 = vst [vmem:[#allocation0 + $0x190] sm:$0x3] %v856_v13 }
  0x33   :  { %239 = vst [vmem:[#allocation0 + $0x188] sm:$0x3] %v857_v14  ;;  %244 = vst [vmem:[#allocation0 + $0x180] sm:$0x3] %v858_v15  ;;  %v875_v17 = vld [vmem:[%s1360_s0 + $0x3e] sm:$0x3]  ;;  %v645_v18 = vsel %vm483_vm0, %v643_v11, %v641_v16 }
  0x34   :  { %v654_v19 = vld [vmem:[#allocation0 + $0x81] ss:$8 sm:$0xf0]   ;;  %329 = vst [vmem:[#allocation0 + $0xf8] sm:$0x3] %v875_v17  ;;  %646 = vrot.lane.b32.xlu1 %v645_v18, %s929_s10 }
  0x35   :  { %v876_v20 = vld [vmem:[%s1360_s0 + $0x3c] sm:$0x3]  ;;  %v877_v21 = vld [vmem:[%s1360_s0 + $0x3a] sm:$0x3]  ;;  %v878_v22 = vld [vmem:[%s1360_s0 + $0x38] sm:$0x3] }
  0x36   :  { %334 = vst [vmem:[#allocation0 + $0xf0] sm:$0x3] %v876_v20  ;;  %v879_v23 = vld [vmem:[%s1360_s0 + $0x36] sm:$0x3]  ;;  %339 = vst [vmem:[#allocation0 + $0xe8] sm:$0x3] %v877_v21 }
  0x37   :  { %v652_v24 = vld [vmem:[#allocation0 + $0x81] ss:$8 sm:$0xf]   ;;  %344 = vst [vmem:[#allocation0 + $0xe0] sm:$0x3] %v878_v22 }
  0x38   :  { %349 = vst [vmem:[#allocation0 + $0xd8] sm:$0x3] %v879_v23  ;;  %v880_v25 = vld [vmem:[%s1360_s0 + $0x34] sm:$0x3]  ;;  %v656_v26 = vsel %vm483_vm0, %v654_v19, %v652_v24  ;;  %v881_v27 = vld [vmem:[%s1360_s0 + $0x32] sm:$0x3] }
  0x39   :  { %354 = vst [vmem:[#allocation0 + $0xd0] sm:$0x3] %v880_v25  ;;  %v882_v28 = vld [vmem:[%s1360_s0 + $0x30] sm:$0x3]  ;;  %v819_v29 = vld [vmem:[%s1360_s0 + $0xae] sm:$0x3]  ;;  %657 = vrot.lane.b32.xlu0 %v656_v26, %s929_s10 }
  0x3a   :  { %v665_v30 = vld [vmem:[#allocation0 + $0x181] ss:$8 sm:$0xf0]   ;;  %359 = vst [vmem:[#allocation0 + $0xc8] sm:$0x3] %v881_v27 }
  0x3b   :  { %364 = vst [vmem:[#allocation0 + $0xc0] sm:$0x3] %v882_v28  ;;  %49 = vst [vmem:[#allocation0 + $0x2b8] sm:$0x3] %v819_v29  ;;  %v820_v31 = vld [vmem:[%s1360_s0 + $0xac] sm:$0x3] }
  0x3c   :  { %54 = vst [vmem:[#allocation0 + $0x2b0] sm:$0x3] %v820_v31  ;;  %v821_v32 = vld [vmem:[%s1360_s0 + $0xaa] sm:$0x3]  ;;  %v822_v33 = vld [vmem:[%s1360_s0 + $0xa8] sm:$0x3] }
  0x3d   :  { %v823_v34 = vld [vmem:[%s1360_s0 + $0xa6] sm:$0x3]  ;;  %v663_v35 = vld [vmem:[#allocation0 + $0x181] ss:$8 sm:$0xf]  }
  0x3e   :  { %59 = vst [vmem:[#allocation0 + $0x2a8] sm:$0x3] %v821_v32  ;;  %64 = vst [vmem:[#allocation0 + $0x2a0] sm:$0x3] %v822_v33  ;;  %v824_v36 = vld [vmem:[%s1360_s0 + $0xa4] sm:$0x3]  ;;  %v667_v37 = vsel %vm483_vm0, %v665_v30, %v663_v35 }
  0x3f   :  { %69 = vst [vmem:[#allocation0 + $0x298] sm:$0x3] %v823_v34  ;;  %74 = vst [vmem:[#allocation0 + $0x290] sm:$0x3] %v824_v36  ;;  %v825_v38 = vld [vmem:[%s1360_s0 + $0xa2] sm:$0x3]  ;;  %668 = vrot.lane.b32.xlu1 %v667_v37, %s929_s10 }
  0x40   :  { %v826_v39 = vld [vmem:[%s1360_s0 + $0xa0] sm:$0x3]  ;;  %v843_v40 = vld [vmem:[%s1360_s0 + $0x7e] sm:$0x3]  ;;  %79 = vst [vmem:[#allocation0 + $0x288] sm:$0x3] %v825_v38 }
  0x41   :  { %84 = vst [vmem:[#allocation0 + $0x280] sm:$0x3] %v826_v39  ;;  %169 = vst [vmem:[#allocation0 + $0x1f8] sm:$0x3] %v843_v40  ;;  %v844_v41 = vld [vmem:[%s1360_s0 + $0x7c] sm:$0x3] }
  0x42   :  { %v845_v42 = vld [vmem:[%s1360_s0 + $0x7a] sm:$0x3]  ;;  %v846_v43 = vld [vmem:[%s1360_s0 + $0x78] sm:$0x3]  ;;  %174 = vst [vmem:[#allocation0 + $0x1f0] sm:$0x3] %v844_v41 }
  0x43   :  { %v687_v44 = vld [vmem:[#allocation0 + $0xc1] ss:$8 sm:$0xf0]   ;;  %179 = vst [vmem:[#allocation0 + $0x1e8] sm:$0x3] %v845_v42 }
  0x44   :  { %184 = vst [vmem:[#allocation0 + $0x1e0] sm:$0x3] %v846_v43  ;;  %v847_v45 = vld [vmem:[%s1360_s0 + $0x76] sm:$0x3]  ;;  %v848_v46 = vld [vmem:[%s1360_s0 + $0x74] sm:$0x3] }
  0x45   :  { %189 = vst [vmem:[#allocation0 + $0x1d8] sm:$0x3] %v847_v45  ;;  %v849_v47 = vld [vmem:[%s1360_s0 + $0x72] sm:$0x3]  ;;  %v850_v48 = vld [vmem:[%s1360_s0 + $0x70] sm:$0x3] }
  0x46   :  { %v685_v49 = vld [vmem:[#allocation0 + $0xc1] ss:$8 sm:$0xf]   ;;  %194 = vst [vmem:[#allocation0 + $0x1d0] sm:$0x3] %v848_v46 }
  0x47   :  { %199 = vst [vmem:[#allocation0 + $0x1c8] sm:$0x3] %v849_v47  ;;  %204 = vst [vmem:[#allocation0 + $0x1c0] sm:$0x3] %v850_v48  ;;  %v811_v50 = vld [vmem:[%s1360_s0 + $0xbe] sm:$0x3]  ;;  %v689_v51 = vsel %vm483_vm0, %v687_v44, %v685_v49 }
  0x48   :  { %9 = vst [vmem:[#allocation0 + $0x2f8] sm:$0x3] %v811_v50  ;;  %v812_v52 = vld [vmem:[%s1360_s0 + $0xbc] sm:$0x3]  ;;  %v813_v53 = vld [vmem:[%s1360_s0 + $0xba] sm:$0x3]  ;;  %690 = vrot.lane.b32.xlu1 %v689_v51, %s929_s10 }
  0x49   :  { %v814_v54 = vld [vmem:[%s1360_s0 + $0xb8] sm:$0x3]  ;;  %14 = vst [vmem:[#allocation0 + $0x2f0] sm:$0x3] %v812_v52  ;;  %19 = vst [vmem:[#allocation0 + $0x2e8] sm:$0x3] %v813_v53 }
  0x4a   :  { %v676_v55 = vld [vmem:[#allocation0 + $0x281] ss:$8 sm:$0xf0]   ;;  %24 = vst [vmem:[#allocation0 + $0x2e0] sm:$0x3] %v814_v54 }
  0x4b   :  { %v815_v56 = vld [vmem:[%s1360_s0 + $0xb6] sm:$0x3]  ;;  %v816_v57 = vld [vmem:[%s1360_s0 + $0xb4] sm:$0x3]  ;;  %v817_v58 = vld [vmem:[%s1360_s0 + $0xb2] sm:$0x3] }
  0x4c   :  { %29 = vst [vmem:[#allocation0 + $0x2d8] sm:$0x3] %v815_v56  ;;  %v818_v59 = vld [vmem:[%s1360_s0 + $0xb0] sm:$0x3]  ;;  %34 = vst [vmem:[#allocation0 + $0x2d0] sm:$0x3] %v816_v57 }
  0x4d   :  { %v674_v60 = vld [vmem:[#allocation0 + $0x281] ss:$8 sm:$0xf]   ;;  %39 = vst [vmem:[#allocation0 + $0x2c8] sm:$0x3] %v817_v58 }
  0x4e   :  { %44 = vst [vmem:[#allocation0 + $0x2c0] sm:$0x3] %v818_v59  ;;  %v481_v61 = vld [vmem:[#allocation0] ss:$8 sm:$0xf]   ;;  %v678_v62 = vsel %vm483_vm0, %v676_v55, %v674_v60 }
  0x4f   :  { %v698_v63 = vld [vmem:[#allocation0 + $0x1c1] ss:$8 sm:$0xf0]   ;;  %v482_v0 = vld [vmem:[#allocation0] ss:$8 sm:$0xf0]   ;;  %679 = vrot.lane.b32.xlu0 %v678_v62, %s929_s10 }
  0x50   :  { %v484_v1 = vsel %vm483_vm0, %v482_v0, %v481_v61  ;;  %v551_v2 = vld [vmem:[#allocation0 + $0x200] ss:$8 sm:$0xf]   ;;  %v696_v4 = vld [vmem:[#allocation0 + $0x1c1] ss:$8 sm:$0xf]  }
  0x51   :  { %v553_v3 = vld [vmem:[#allocation0 + $0x200] ss:$8 sm:$0xf0]   ;;  %486 = vst.msk [vmem:[%s1361_s1] sm:$0xff] %vm485_vm1, %v484_v1   ;;  %v700_v7 = vsel %vm483_vm0, %v698_v63, %v696_v4 }
  0x52   :  { %v555_v5 = vsel %vm483_vm0, %v553_v3, %v551_v2  ;;  %v515_v6 = vld [vmem:[#allocation0 + $0x100] ss:$8 sm:$0xf]   ;;  %v709_v10 = vld [vmem:[#allocation0 + $0x2c1] ss:$8 sm:$0xf0]  }
  0x53   :  { %913 = vst.msk [vmem:[%s1361_s1 + $0x40] sm:$0xff] %vm485_vm1, %v555_v5   ;;  %v517_v8 = vld [vmem:[#allocation0 + $0x100] ss:$8 sm:$0xf0]   ;;  %701 = vrot.lane.b32.xlu0 %v700_v7, %s929_s10 }
  0x54   :  { %v488_v9 = vld [vmem:[#allocation0 + $0x40] ss:$8 sm:$0xf]   ;;  %v519_v11 = vsel %vm483_vm0, %v517_v8, %v515_v6 }
  0x55   :  { %v490_v12 = vld [vmem:[#allocation0 + $0x40] ss:$8 sm:$0xf0]   ;;  %909 = vst.msk [vmem:[%s1361_s1 + $0x20] sm:$0xff] %vm485_vm1, %v519_v11  }
  0x56   :  { %v492_v13 = vsel %vm483_vm0, %v490_v12, %v488_v9  ;;  %v524_v14 = vld [vmem:[#allocation0 + $0x140] ss:$8 sm:$0xf]   ;;  %v707_v16 = vld [vmem:[#allocation0 + $0x2c1] ss:$8 sm:$0xf]  }
  0x57   :  { %v526_v15 = vld [vmem:[#allocation0 + $0x140] ss:$8 sm:$0xf0]   ;;  %906 = vst.msk [vmem:[%s1361_s1 + $0x8] sm:$0xff] %vm485_vm1, %v492_v13   ;;  %v711_v19 = vsel %vm483_vm0, %v709_v10, %v707_v16 }
  0x58   :  { %v528_v17 = vsel %vm483_vm0, %v526_v15, %v524_v14  ;;  %v560_v18 = vld [vmem:[#allocation0 + $0x240] ss:$8 sm:$0xf]   ;;  %712 = vrot.lane.b32.xlu1 %v711_v19, %s929_s10 }
  0x59   :  { %910 = vst.msk [vmem:[%s1361_s1 + $0x28] sm:$0xff] %vm485_vm1, %v528_v17   ;;  %v562_v20 = vld [vmem:[#allocation0 + $0x240] ss:$8 sm:$0xf0]  }
  0x5a   :  { %v497_v21 = vld [vmem:[#allocation0 + $0x80] ss:$8 sm:$0xf]   ;;  %v564_v22 = vsel %vm483_vm0, %v562_v20, %v560_v18 }
  0x5b   :  { %v499_v23 = vld [vmem:[#allocation0 + $0x80] ss:$8 sm:$0xf0]   ;;  %914 = vst.msk [vmem:[%s1361_s1 + $0x48] sm:$0xff] %vm485_vm1, %v564_v22  }
  0x5c   :  { %v533_v24 = vld [vmem:[#allocation0 + $0x180] ss:$8 sm:$0xf]   ;;  %v501_v25 = vsel %vm483_vm0, %v499_v23, %v497_v21 }
  0x5d   :  { %v535_v26 = vld [vmem:[#allocation0 + $0x180] ss:$8 sm:$0xf0]   ;;  %907 = vst.msk [vmem:[%s1361_s1 + $0x10] sm:$0xff] %vm485_vm1, %v501_v25  }
  0x5e   :  { %v506_v27 = vld [vmem:[#allocation0 + $0xc0] ss:$8 sm:$0xf]   ;;  %v537_v28 = vsel %vm483_vm0, %v535_v26, %v533_v24 }
  0x5f   :  { %v508_v29 = vld [vmem:[#allocation0 + $0xc0] ss:$8 sm:$0xf0]   ;;  %911 = vst.msk [vmem:[%s1361_s1 + $0x30] sm:$0xff] %vm485_vm1, %v537_v28  }
  0x60   :  { %v569_v30 = vld [vmem:[#allocation0 + $0x280] ss:$8 sm:$0xf]   ;;  %v510_v31 = vsel %vm483_vm0, %v508_v29, %v506_v27 }
  0x61   :  { %v571_v32 = vld [vmem:[#allocation0 + $0x280] ss:$8 sm:$0xf0]   ;;  %908 = vst.msk [vmem:[%s1361_s1 + $0x18] sm:$0xff] %vm485_vm1, %v510_v31  }
  0x62   :  { %v542_v33 = vld [vmem:[#allocation0 + $0x1c0] ss:$8 sm:$0xf]   ;;  %v573_v34 = vsel %vm483_vm0, %v571_v32, %v569_v30 }
  0x63   :  { %v544_v35 = vld [vmem:[#allocation0 + $0x1c0] ss:$8 sm:$0xf0]   ;;  %915 = vst.msk [vmem:[%s1361_s1 + $0x50] sm:$0xff] %vm485_vm1, %v573_v34  }
  0x64   :  { %v578_v36 = vld [vmem:[#allocation0 + $0x2c0] ss:$8 sm:$0xf]   ;;  %v546_v37 = vsel %vm483_vm0, %v544_v35, %v542_v33 }
  0x65   :  { %v580_v38 = vld [vmem:[#allocation0 + $0x2c0] ss:$8 sm:$0xf0]   ;;  %912 = vst.msk [vmem:[%s1361_s1 + $0x38] sm:$0xff] %vm485_vm1, %v546_v37  }
  0x66   :  { %v582_v39 = vsel %vm483_vm0, %v580_v38, %v578_v36 }
  0x67   :  { %916 = vst.msk [vmem:[%s1361_s1 + $0x58] sm:$0xff] %vm485_vm1, %v582_v39  }
  0x87   :  { %v593_v40 = vpop.permute.xlu0 %592  }
  0x88   :  { %595 = vst.msk [vmem:[%s1361_s1] sm:$0xff] %vm594_vm2, %v593_v40  }
  0x8c   :  { %v614_v41 = vpop.permute.xlu1 %613  }
  0x8d   :  { %918 = vst.msk [vmem:[%s1361_s1 + $0x40] sm:$0xff] %vm594_vm2, %v614_v41  }
  0x90   :  { %v603_v42 = vpop.permute.xlu0 %602  }
  0x91   :  { %917 = vst.msk [vmem:[%s1361_s1 + $0x20] sm:$0xff] %vm594_vm2, %v603_v42  }
  0x97   :  { %v625_v43 = vpop.permute.xlu1 %624  }
  0x98   :  { %919 = vst.msk [vmem:[%s1361_s1 + $0x8] sm:$0xff] %vm594_vm2, %v625_v43  }
  0xa0   :  { %v636_v44 = vpop.permute.xlu0 %635  }
  0xa1   :  { %920 = vst.msk [vmem:[%s1361_s1 + $0x28] sm:$0xff] %vm594_vm2, %v636_v44  }
  0xa6   :  { %v647_v45 = vpop.permute.xlu1 %646  }
  0xa7   :  { %921 = vst.msk [vmem:[%s1361_s1 + $0x48] sm:$0xff] %vm594_vm2, %v647_v45  }
  0xab   :  { %v658_v46 = vpop.permute.xlu0 %657  }
  0xac   :  { %922 = vst.msk [vmem:[%s1361_s1 + $0x10] sm:$0xff] %vm594_vm2, %v658_v46  }
  0xb1   :  { %v669_v47 = vpop.permute.xlu1 %668  }
  0xb2   :  { %923 = vst.msk [vmem:[%s1361_s1 + $0x30] sm:$0xff] %vm594_vm2, %v669_v47  }
  0xba   :  { %v691_v48 = vpop.permute.xlu1 %690  }
  0xbb   :  { %925 = vst.msk [vmem:[%s1361_s1 + $0x18] sm:$0xff] %vm594_vm2, %v691_v48  }
  0xc1   :  { %v680_v49 = vpop.permute.xlu0 %679  }
  0xc2   :  { %924 = vst.msk [vmem:[%s1361_s1 + $0x50] sm:$0xff] %vm594_vm2, %v680_v49  }
  0xc5   :  { %v702_v50 = vpop.permute.xlu0 %701  }
  0xc6   :  { %926 = vst.msk [vmem:[%s1361_s1 + $0x38] sm:$0xff] %vm594_vm2, %v702_v50  }
  0xca   :  { %v713_v51 = vpop.permute.xlu1 %712  }
  0xcb   :  { %927 = vst.msk [vmem:[%s1361_s1 + $0x58] sm:$0xff] %vm594_vm2, %v713_v51  }

// kernel: structure_module_forward.14
= control target key start
LH: loop header
LB: loop body
LE: loop exit
PB: predicated region body
PF: predicated region fallthrough
CT: control target
= control target key end

     0   :  { %s2506_s24 = smov 0   ;;  %s2508_s25 = smov 0   ;;  %s2955_s0 = inlined_call_operand.vmem [shape: bf16[2,4,8,20], index: 0, kind: input, shape index: {}]   ;;  %s2956_s1 = inlined_call_operand.vmem [shape: bf16[2,4,8,20], index: 1, kind: input, shape index: {}]   ;;  %s2957_s2 = inlined_call_operand.vmem [shape: bf16[2,4,8,32], index: 2, kind: input, shape index: {}]   ;;  %s2958_s3 = inlined_call_operand.vmem [shape: f32[2,4,8], index: 3, kind: input, shape index: {}]   ;;  %s2959_s4 = inlined_call_operand.vmem [shape: f32[2,4,8,8], index: 4, kind: input, shape index: {}]   ;;  %s2960_s5 = inlined_call_operand.vmem [shape: bf16[2,8,8,32], index: 5, kind: input, shape index: {}]   ;;  %s2961_s6 = inlined_call_operand.vmem [shape: f32[2,8,4,32], index: 6, kind: output, shape index: {0}]   ;;  %s2962_s7 = inlined_call_operand.vmem [shape: f32[2,8,4,32], index: 7, kind: output, shape index: {1}]  }
   0x1   :  { %s2510_s26 = smov 0  }
   0x2 LB: > { %s33_s27 = sadd.s32 1, %s2453_s25  ;;  %p2208_p0 = scmp.ge.s32.totalorder %s2457_s26, 1  ;;  %s2457_s26 = sphi %s2510_s26, %s18_s26   ;;  %s2453_s25 = sphi %s2508_s25, %s2964_s25   ;;  %s2449_s24 = sphi %s2506_s24, %s2963_s24  }
   0x3   : > { %p35_p1 = scmp.ge.s32.totalorder %s33_s27, 2  ;;  %p354_p2 = scmp.lt.s32.totalorder %s2457_s26, 3 }
   0x5   : > { %s2966_s27 = smov (%p35_p1, %s33_s27), 0  ;;  %p355_p3 = pnand %p2208_p0, %p354_p2 }
   0x6   : > { %p448_p4 = scmp.lt.s32.totalorder (!%p355_p3), %s2449_s24, 1 }
   0x7   : > { %358 = sbr.rel (%p355_p3) target bundleno = 1142 (0x476), region = 44 }
   0xc   : > { %v2459_v0 = vmov 0.0   ;;  %s2968_s24 = smov (!%p448_p4, %s2449_s24), 1  ;;  %vm2460_vm0 = vmmov 0   ;;  %vm563_vm1 = vcmask 162816   ;;  %vm528_vm2 = vcmask 7168  }
   0xd   : > { %2282 = vmatprep.subr.bf16.mxu0 %v2459_v0  ;;  %2288 = vmatprep.subr.bf16.mxu1 %v2459_v0  ;;  %s2533_s28 = sshll.u32 %s2968_s24, 4  ;;  %v2461_v13 = vmov -inf   ;;  %533 = vst.msk [vmem:[#allocation3] sm:$0xff] %vm528_vm2, %v2459_v0  ;;  %534 = vst.msk [vmem:[#allocation3 + $0x8] sm:$0xff] %vm528_vm2, %v2459_v0  ;;  %v2462_v14 = vmov 1966171168   ;;  %v761_v16 = vlaneseq }
   0xe   : > { %2284 = vmatprep.mubr.msk.bf16.mxu0 %vm2460_vm0, %v2459_v0  ;;  %2290 = vmatprep.mubr.msk.bf16.mxu1 %vm2460_vm0, %v2459_v0  ;;  %s463_s8 = scalar_lea.vmem %s2956_s1, %s2533_s28  ;;  %s455_s11 = scalar_lea.vmem %s2955_s0, %s2533_s28  ;;  %529 = vst.msk [vmem:[#allocation2] sm:$0xff] %vm528_vm2, %v2461_v13  ;;  %530 = vst.msk [vmem:[#allocation2 + $0x8] sm:$0xff] %vm528_vm2, %v2461_v13  ;;  %v759_v15 = vunpack.c.l.s4 %v2462_v14  ;;  %vm802_vm3 = vcmask 64512   ;;  %v2463_v63 = vmov 0   ;;  %vm935_vm4 = vcmask 1043456  }
   0xf   : > { %v555_v1 = vld [vmem:[%s463_s8] sm:$0xf]  ;;  %v556_v2 = vld [vmem:[%s463_s8 + $0x4] sm:$0xf]  ;;  %v557_v5 = vld [vmem:[%s463_s8 + $0x8] sm:$0xf]  ;;  %2409 = vset.pattern.permute.xlu0 %v2463_v63  ;;  %2410 = vset.pattern.permute.xlu1 %v2463_v63  ;;  %s471_s22 = scalar_lea.vmem %s2957_s2, %s2533_s28 }
  0x10   : > { %v568_v3 = vsel %vm563_vm1, %v555_v1, 0  ;;  %v614_v4 = vsel %vm563_vm1, %v556_v2, 0  ;;  %v558_v6 = vld [vmem:[%s463_s8 + $0xc] sm:$0xf]  ;;  %v551_v7 = vld [vmem:[%s455_s11] sm:$0xf]  ;;  %v760_v17 = vunpack.c.0.s8 %v759_v15 }
  0x11   : > { %2283 = vmatpush3.bf16.xpose.msra.mxu0 %v568_v3  ;;  %2289 = vmatpush3.bf16.xpose.msra.mxu1 %v614_v4  ;;  %v552_v8 = vld [vmem:[%s455_s11 + $0x4] sm:$0xf]  ;;  %v660_v9 = vsel %vm563_vm1, %v557_v5, 0  ;;  %v706_v10 = vsel %vm563_vm1, %v558_v6, 0  ;;  %v553_v11 = vld [vmem:[%s455_s11 + $0x8] sm:$0xf] }
  0x12   : > { %2294 = vmatprep.subr.bf16.mxu0 %v2459_v0  ;;  %2300 = vmatprep.subr.bf16.mxu1 %v2459_v0  ;;  %v554_v12 = vld [vmem:[%s455_s11 + $0xc] sm:$0xf]  ;;  %531 = vst.msk [vmem:[#allocation2 + $0x10] sm:$0xff] %vm528_vm2, %v2461_v13  ;;  %532 = vst.msk [vmem:[#allocation2 + $0x18] sm:$0xff] %vm528_vm2, %v2461_v13  ;;  %s2215_s12 = sshll.u32 %s2968_s24, 2  ;;  %v2580_v18 = vshrl.u32 %v761_v16, 7 }
  0x13   : > { %535 = vst.msk [vmem:[#allocation3 + $0x10] sm:$0xff] %vm528_vm2, %v2459_v0  ;;  %536 = vst.msk [vmem:[#allocation3 + $0x18] sm:$0xff] %vm528_vm2, %v2459_v0  ;;  %s478_s15 = scalar_lea.vmem %s2958_s3, %s2215_s12  ;;  %s2584_s16 = sshll.u32 %s2968_s24, 5  ;;  %vm537_vm5 = vcmask 261120   ;;  %vm542_vm6 = vcmask 257024   ;;  %vm1220_vm7 = vcmask 1041409  }
  0x14   : > { %v2228_v19 = vld.sshfl [vmem:[%s478_s15] sm:$0x33 pattern:$0x75316420]  ;;  %v763_v21 = vsub.s32 %v760_v17, %v2580_v18  ;;  %s489_s19 = scalar_lea.vmem %s2959_s4, %s2584_s16  ;;  %v2591_v23 = vsub.s32 0, %v2580_v18  ;;  %s501_s28 = scalar_lea.vmem %s2960_s5, %s2584_s16  ;;  %539 = vst.msk [vmem:[#allocation4 + $0x8] sm:$0xff] %vm537_vm5, %v2459_v0 }
  0x15   : > { %v757_v20 = vcombine.high %v2228_v19, %v2228_v19  ;;  %v559_v25 = vld [vmem:[%s489_s19] sm:$0xff]  ;;  %v560_v26 = vld [vmem:[%s489_s19 + $0x8] sm:$0xff]  ;;  %v561_v44 = vld [vmem:[%s489_s19 + $0x10] sm:$0xff]  ;;  %538 = vst.msk [vmem:[#allocation4] sm:$0xff] %vm537_vm5, %v2459_v0  ;;  %vm1222_vm8 = vcmask 1042434   ;;  %vm1224_vm9 = vcmask 1043459   ;;  %s521_s8 = scalar_lea.vmem %s2962_s7, %s2584_s16  ;;  %s2928_s11 = scalar_lea.vmem %s2961_s6, %s2584_s16 }
  0x16   : > { %v764_v22 = vrot.slane %v2228_v19, %v763_v21  ;;  %v562_v45 = vld [vmem:[%s489_s19 + $0x18] sm:$0xff]  ;;  %v2613_v1 = vld [vmem:[#allocation2] sm:$0xff]  ;;  %v2618_v4 = vld [vmem:[#allocation2 + $0x8] sm:$0xff]  ;;  %540 = vst.msk [vmem:[#allocation4 + $0x10] sm:$0xff] %vm537_vm5, %v2459_v0 }
  0x17   : > { %v771_v24 = vrot.slane %v757_v20, %v763_v21  ;;  %v928_v17 = vld [vmem:[%s471_s22] sm:$0xf]  ;;  %v929_v21 = vld [vmem:[%s471_s22 + $0x4] sm:$0xf]  ;;  %541 = vst.msk [vmem:[#allocation4 + $0x18] sm:$0xff] %vm537_vm5, %v2459_v0 }
  0x18   : > { %2285 = vmatmul.mubr.msk.bf16.vlgmr.msra.gmra.mxu0 %vm563_vm1, %v551_v7  ;;  %2291 = vmatmul.mubr.msk.bf16.vlgmr.msra.gmra.mxu1 %vm563_vm1, %v552_v8  ;;  %v777_v27 = vrot.slane %v764_v22, %v2591_v23  ;;  %v772_v37 = vcombine.high %v764_v22, %v764_v22  ;;  %v937_v20 = vsel %vm935_vm4, %v928_v17, 0  ;;  %v983_v22 = vsel %vm935_vm4, %v929_v21, 0  ;;  %543 = vst.msk [vmem:[#allocation5] sm:$0xf] %vm542_vm6, %v2459_v0 }
  0x19   : > { %2295 = vmatpush3.bf16.xpose.msra.mxu0 %v660_v9  ;;  %2301 = vmatpush3.bf16.xpose.msra.mxu1 %v706_v10  ;;  %v781_v28 = vrot.slane %v771_v24, %v2591_v23  ;;  %v773_v38 = vcombine.high %v771_v24, %v771_v24  ;;  %v2628_v8 = vld [vmem:[#allocation2 + $0x10] sm:$0xff]  ;;  %v930_v24 = vld [vmem:[%s471_s22 + $0x8] sm:$0xf]  ;;  %544 = vst.msk [vmem:[#allocation5 + $0x4] sm:$0xf] %vm542_vm6, %v2459_v0 }
  0x1a   : > { %2296 = vmatprep.mubr.msk.bf16.mxu0 %vm2460_vm0, %v2459_v0  ;;  %2302 = vmatprep.mubr.msk.bf16.mxu1 %vm2460_vm0, %v2459_v0  ;;  %v785_v47 = vrot.slane %v772_v37, %v2591_v23  ;;  %545 = vst.msk [vmem:[#allocation5 + $0x8] sm:$0xf] %vm542_vm6, %v2459_v0  ;;  %546 = vst.msk [vmem:[#allocation5 + $0xc] sm:$0xf] %vm542_vm6, %v2459_v0 }
  0x1b   : > { %2306 = vmatprep.subr.bf16.mxu0 %v2459_v0  ;;  %2312 = vmatprep.subr.bf16.mxu1 %v2459_v0  ;;  %v789_v48 = vrot.slane %v773_v38, %v2591_v23  ;;  %v1335_v38 = vld [vmem:[%s501_s28 + $0x10] sm:$0xf]  ;;  %547 = vst.msk [vmem:[#allocation5 + $0x10] sm:$0xf] %vm542_vm6, %v2459_v0  ;;  %548 = vst.msk [vmem:[#allocation5 + $0x14] sm:$0xf] %vm542_vm6, %v2459_v0 }
  0x1c   : > { %549 = vst.msk [vmem:[#allocation5 + $0x18] sm:$0xf] %vm542_vm6, %v2459_v0  ;;  %550 = vst.msk [vmem:[#allocation5 + $0x1c] sm:$0xf] %vm542_vm6, %v2459_v0 }
  0x20   : > { %2297 = vmatmul.mubr.msk.bf16.vlgmr.msra.gmra.mxu0 %vm563_vm1, %v553_v11  ;;  %2303 = vmatmul.mubr.msk.bf16.vlgmr.msra.gmra.mxu1 %vm563_vm1, %v554_v12  ;;  %v2638_v12 = vld [vmem:[#allocation2 + $0x18] sm:$0xff] }
  0x21   : > { %2308 = vmatprep.mubr.msk.bf16.mxu0 %vm2460_vm0, %v2459_v0  ;;  %2314 = vmatprep.mubr.msk.bf16.mxu1 %vm2460_vm0, %v2459_v0 }
  0x22   : > { %2307 = vmatpush3.bf16.msra.mxu0 %v937_v20  ;;  %2313 = vmatpush3.bf16.msra.mxu1 %v983_v22 }
  0x23   : > { %2318 = vmatprep.subr.bf16.mxu0 %v2459_v0  ;;  %2324 = vmatprep.subr.bf16.mxu1 %v2459_v0 }
  0xd8   : > { %v604_v29 = vpop.f32.mrf.mxu0  ;;  %v650_v30 = vpop.f32.mrf.mxu1 }
  0xd9   : > { %v605_v31 = vadd.f32 %v604_v29, %v559_v25  ;;  %v651_v32 = vadd.f32 %v650_v30, %v560_v26  ;;  %v1029_v25 = vsel %vm935_vm4, %v930_v24, 0  ;;  %v931_v26 = vld [vmem:[%s471_s22 + $0xc] sm:$0xf]  ;;  %v1332_v29 = vld [vmem:[%s501_s28 + $0x4] sm:$0xf] }
  0xda   : > { %v2286_v33 = vpop.f32.mrf.mxu0  ;;  %v2292_v34 = vpop.f32.mrf.mxu1 }
  0xdb   : > { %v2595_v35 = vsub.f32 %v605_v31, %v777_v27  ;;  %v2597_v36 = vsub.f32 %v651_v32, %v781_v28  ;;  %v1075_v27 = vsel %vm935_vm4, %v931_v26, 0  ;;  %v1331_v28 = vld [vmem:[%s501_s28] sm:$0xf]  ;;  %v2669_v31 = vsel %vm935_vm4, %v1332_v29, 0  ;;  %v1333_v32 = vld [vmem:[%s501_s28 + $0x8] sm:$0xf] }
  0xdc   : > { %v607_v39 = vpop.f32.mrf.mxu0  ;;  %v653_v40 = vpop.f32.mrf.mxu1  ;;  %v1343_v30 = vsel %vm935_vm4, %v1331_v28, 0  ;;  %v2672_v33 = vsel %vm935_vm4, %v1333_v32, 0  ;;  %v1334_v34 = vld [vmem:[%s501_s28 + $0xc] sm:$0xf] }
  0xdd   : > { %v803_v41 = vsel %vm802_vm3, %v2595_v35, -inf  ;;  %v806_v46 = vsel %vm802_vm3, %v2597_v36, -inf  ;;  %v2675_v37 = vsel %vm935_vm4, %v1334_v34, 0  ;;  %v2678_v39 = vsel %vm935_vm4, %v1335_v38, 0  ;;  %v1336_v40 = vld [vmem:[%s501_s28 + $0x14] sm:$0xf] }
  0xde   : > { %v2293_v42 = vpop.f32.mrf.mxu1  ;;  %804 = vmax.xlane.f32.xlu0 %v803_v41  ;;  %v2287_v43 = vpop.f32.mrf.mxu0  ;;  %v2681_v41 = vsel %vm935_vm4, %v1336_v40, 0 }
  0xdf   : > { %v1337_v42 = vld [vmem:[%s501_s28 + $0x18] sm:$0xf]  ;;  %v1338_v43 = vld [vmem:[%s501_s28 + $0x1c] sm:$0xf] }
  0xe0   : > { %v696_v49 = vpop.f32.mrf.mxu0  ;;  %v742_v50 = vpop.f32.mrf.mxu1 }
  0xe1   : > { %v697_v51 = vadd.f32 %v696_v49, %v561_v44  ;;  %v743_v52 = vadd.f32 %v742_v50, %v562_v45  ;;  %v2684_v44 = vsel %vm935_vm4, %v1337_v42, 0  ;;  %v2687_v45 = vsel %vm935_vm4, %v1338_v43, 0 }
  0xe2   : > { %807 = vmax.xlane.f32.xlu0 %v806_v46  ;;  %v2298_v53 = vpop.f32.mrf.mxu0  ;;  %v2304_v54 = vpop.f32.mrf.mxu1 }
  0xe3   : > { %v2605_v55 = vsub.f32 %v697_v51, %v785_v47  ;;  %v2607_v56 = vsub.f32 %v743_v52, %v789_v48 }
  0xe4   : > { %v699_v57 = vpop.f32.mrf.mxu0  ;;  %v745_v58 = vpop.f32.mrf.mxu1 }
  0xe5   : > { %v809_v59 = vsel %vm802_vm3, %v2605_v55, -inf  ;;  %v812_v62 = vsel %vm802_vm3, %v2607_v56, -inf }
  0xe6   : > { %810 = vmax.xlane.f32.xlu1 %v809_v59  ;;  %v2299_v60 = vpop.f32.mrf.mxu0  ;;  %v2305_v61 = vpop.f32.mrf.mxu1 }
  0xe7   : > { %v2464_v61 = vmov 1983009808  }
  0xea   : > { %813 = vmax.xlane.f32.xlu1 %v812_v62 }
 0x167   : > { %v805_v2 = vpop.xlane.xlu0 %804 }
 0x168   : > { %v2616_v3 = vmax.f32 %v2613_v1, %v805_v2 }
 0x16a   : > { %v819_v5 = vsub.f32 %v2613_v1, %v2616_v3  ;;  %892 = vst.msk [vmem:[#allocation2] sm:$0xff] %vm528_vm2, %v2616_v3  ;;  %833 = vperm.xlu0 %2409, %v2616_v3  }
 0x16b   : > { %v808_v6 = vpop.xlane.xlu0 %807 }
 0x16c   : > { %v2626_v7 = vmax.f32 %v2618_v4, %v808_v6  ;;  %v2465_v6 = vmov 1934713408  }
 0x16e   : > { %v820_v9 = vsub.f32 %v2618_v4, %v2626_v7  ;;  %893 = vst.msk [vmem:[#allocation2 + $0x8] sm:$0xff] %vm528_vm2, %v2626_v7  ;;  %838 = vperm.xlu1 %2410, %v2626_v7  }
 0x16f   : > { %v811_v10 = vpop.xlane.xlu1 %810 }
 0x170   : > { %v2636_v11 = vmax.f32 %v2628_v8, %v811_v10  ;;  %v1161_v10 = vunpack.c.l.s4 %v2465_v6  ;;  %v825_v21 = vmul.f32 1.442695, %v820_v9 }
 0x172   : > { %v821_v13 = vsub.f32 %v2628_v8, %v2636_v11  ;;  %894 = vst.msk [vmem:[#allocation2 + $0x10] sm:$0xff] %vm528_vm2, %v2636_v11  ;;  %843 = vperm.xlu1 %2410, %v2636_v11  }
 0x173   : > { %v814_v14 = vpop.xlane.xlu1 %813 }
 0x174   : > { %v2646_v15 = vmax.f32 %v2638_v12, %v814_v14  ;;  %v827_v1 = vmul.f32 1.442695, %v821_v13 }
 0x176   : > { %v822_v19 = vsub.f32 %v2638_v12, %v2646_v15  ;;  %895 = vst.msk [vmem:[#allocation2 + $0x18] sm:$0xff] %vm528_vm2, %v2646_v15  ;;  %848 = vperm.xlu1 %2410, %v2646_v15  }
 0x178   : > { %v829_v13 = vmul.f32 1.442695, %v822_v19 }
 0x1e5   : > { %v834_v46 = vpop.permute.xlu0 %833 }
 0x1e6   : > { %v851_v47 = vsub.f32 %v2595_v35, %v834_v46 }
 0x1e8   : > { %v855_v48 = vmul.f32 1.442695, %v851_v47 }
 0x1e9   : > { %v839_v49 = vpop.permute.xlu1 %838 }
 0x1ea   : > { %2411 = vpow2.f32 %v855_v48  ;;  %v852_v50 = vsub.f32 %v2597_v36, %v839_v49 }
 0x1ec   : > { %v857_v51 = vmul.f32 1.442695, %v852_v50 }
 0x1ed   : > { %v844_v52 = vpop.permute.xlu1 %843 }
 0x1ee   : > { %2413 = vpow2.f32 %v857_v51  ;;  %v853_v53 = vsub.f32 %v2605_v55, %v844_v52  ;;  %v1129_v55 = vunpack.c.l.s4 %v2464_v61  ;;  %v865_v61 = vld [vmem:[#allocation3 + $0x10] sm:$0xff] }
 0x1f0   : > { %v859_v54 = vmul.f32 1.442695, %v853_v53  ;;  %v1130_v2 = vunpack.c.0.s8 %v1129_v55 }
 0x1f1   : > { %v849_v57 = vpop.permute.xlu1 %848 }
 0x1f2   : > { %2415 = vpow2.f32 %v859_v54  ;;  %v854_v58 = vsub.f32 %v2607_v56, %v849_v57  ;;  %v2715_v24 = vsub.s32 %v1130_v2, %v2580_v18 }
 0x1f4   : > { %v861_v59 = vmul.f32 1.442695, %v854_v58  ;;  %v863_v58 = vld [vmem:[#allocation3] sm:$0xff] }
 0x1f6   : > { %2417 = vpow2.f32 %v861_v59 }
 0x1f7   : > { %v2693_v60 = vpop.eup %2411  ;;  %2419 = vpow2.f32 %v825_v21 }
 0x1f8   : > { %v871_v35 = vsel %vm802_vm3, %v2693_v60, 0.0  ;;  %v924_v36 = vpack.c.bf16 %v2693_v60, %v2693_v60 }
 0x1f9   : > { %872 = vadd.xlane.f32.xlu1 %v871_v35 }
 0x1fa   : > { %2309 = vmatmul.mubr.msk.bf16.vlgmr.msra.gmra.mxu0 %vm802_vm3, %v924_v36 }
 0x1fb   : > { %v2414_v62 = vpop.eup %2413  ;;  %2319 = vmatpush3.bf16.msra.mxu0 %v1029_v25  ;;  %2320 = vmatprep.mubr.msk.bf16.mxu0 %vm2460_vm0, %v2459_v0  ;;  %v1162_v25 = vunpack.c.0.s8 %v1161_v10 }
 0x1fc   : > { %v874_v56 = vsel %vm802_vm3, %v2414_v62, 0.0  ;;  %v925_v63 = vpack.c.bf16 %v2414_v62, %v2414_v62  ;;  %2330 = vmatprep.subr.bf16.mxu0 %v2459_v0 }
 0x1fd   : > { %875 = vadd.xlane.f32.xlu0 %v874_v56 }
 0x1fe   : > { %2315 = vmatmul.mubr.msk.bf16.vlgmr.msra.gmra.mxu1 %vm802_vm3, %v925_v63  ;;  %v866_v63 = vld [vmem:[#allocation3 + $0x18] sm:$0xff] }
 0x1ff   : > { %v2416_v14 = vpop.eup %2415  ;;  %2325 = vmatpush3.bf16.msra.mxu1 %v1075_v27  ;;  %2326 = vmatprep.mubr.msk.bf16.mxu1 %vm2460_vm0, %v2459_v0  ;;  %v823_v27 = vmul.f32 1.442695, %v819_v5 }
 0x200   : > { %v877_v17 = vsel %vm802_vm3, %v2416_v14, 0.0  ;;  %v926_v20 = vpack.c.bf16 %v2416_v14, %v2416_v14  ;;  %2336 = vmatprep.subr.bf16.mxu1 %v2459_v0  ;;  %v1126_v22 = vcombine.low %v2693_v60, %v2416_v14  ;;  %v1127_v34 = vcombine.high %v2693_v60, %v2416_v14  ;;  %v864_v60 = vld [vmem:[#allocation3 + $0x8] sm:$0xff] }
 0x201   : > { %878 = vadd.xlane.f32.xlu1 %v877_v17  ;;  %2421 = vpow2.f32 %v823_v27 }
 0x202   : > { %2321 = vmatmul.mubr.msk.bf16.vlgmr.msra.gmra.mxu0 %vm802_vm3, %v926_v20  ;;  %v1134_v28 = vrot.slane %v1126_v22, %v2715_v24  ;;  %2423 = vpow2.f32 %v827_v1  ;;  %v1141_v12 = vrot.slane %v1127_v34, %v2715_v24 }
 0x203   : > { %v2418_v26 = vpop.eup %2417  ;;  %2331 = vmatpush3.bf16.msra.mxu0 %v1343_v30  ;;  %2332 = vmatprep.mubr.msk.bf16.mxu0 %vm2460_vm0, %v2459_v0  ;;  %v2728_v30 = vsub.s32 %v1162_v25, %v2580_v18  ;;  %2425 = vpow2.f32 %v829_v13 }
 0x204   : > { %v880_v4 = vsel %vm802_vm3, %v2418_v26, 0.0  ;;  %v927_v7 = vpack.c.bf16 %v2418_v26, %v2418_v26  ;;  %v1142_v9 = vcombine.low %v2414_v62, %v2418_v26  ;;  %2342 = vmatprep.subr.bf16.mxu0 %v2459_v0  ;;  %v1143_v11 = vcombine.high %v2414_v62, %v2418_v26  ;;  %v2420_v15 = vpop.eup %2419 }
 0x205   : > { %881 = vadd.xlane.f32.xlu1 %v880_v4  ;;  %v868_v36 = vmul.f32 %v2420_v15, %v864_v60 }
 0x206   : > { %2327 = vmatmul.mubr.msk.bf16.vlgmr.msra.gmra.mxu1 %vm802_vm3, %v927_v7  ;;  %v1150_v29 = vrot.slane %v1142_v9, %v2715_v24  ;;  %v1157_v42 = vrot.slane %v1143_v11, %v2715_v24  ;;  %v896_v9 = vld [vmem:[#allocation4] sm:$0xff] }
 0x207   : > { %2337 = vmatpush3.bf16.msra.mxu1 %v2669_v31  ;;  %2338 = vmatprep.mubr.msk.bf16.mxu1 %vm2460_vm0, %v2459_v0 }
 0x208   : > { %v1158_v3 = vcombine.low %v1134_v28, %v1150_v29  ;;  %2348 = vmatprep.subr.bf16.mxu1 %v2459_v0  ;;  %v1159_v8 = vcombine.high %v1134_v28, %v1150_v29  ;;  %v1175_v50 = vcombine.high %v1141_v12, %v1157_v42  ;;  %v897_v29 = vld [vmem:[#allocation4 + $0x8] sm:$0xff] }
 0x20a   : > { %v1166_v5 = vrot.slane %v1158_v3, %v2728_v30  ;;  %v1173_v40 = vrot.slane %v1159_v8, %v2728_v30  ;;  %v1189_v53 = vrot.slane %v1175_v50, %v2728_v30 }
 0x20c   : > { %v1194_v31 = vpack.c.bf16 %v1166_v5, %v1166_v5  ;;  %v1190_v32 = vcombine.high %v1166_v5, %v2459_v0  ;;  %v1191_v19 = vcombine.high %v1173_v40, %v2459_v0  ;;  %v1196_v43 = vpack.c.bf16 %v1173_v40, %v1173_v40 }
 0x20d   : > { %v1200_v54 = vpack.c.bf16 %v1189_v53, %v1189_v53 }
 0x20e   : > { %2333 = vmatmul.mubr.msk.bf16.vlgmr.msra.gmra.mxu0 %vm802_vm3, %v1194_v31  ;;  %v1195_v38 = vpack.c.bf16 %v1190_v32, %v1190_v32  ;;  %v2422_v46 = vpop.eup %2421  ;;  %v1197_v47 = vpack.c.bf16 %v1191_v19, %v1191_v19  ;;  %v898_v31 = vld [vmem:[#allocation4 + $0x10] sm:$0xff] }
 0x20f   : > { %2343 = vmatpush3.bf16.msra.mxu0 %v2672_v33  ;;  %2344 = vmatprep.mubr.msk.bf16.mxu0 %vm2460_vm0, %v2459_v0  ;;  %v1174_v33 = vcombine.low %v1141_v12, %v1157_v42 }
 0x210   : > { %2339 = vmatmul.mubr.msk.bf16.vlgmr.msra.gmra.mxu1 %vm802_vm3, %v1195_v38  ;;  %2354 = vmatprep.subr.bf16.mxu0 %v2459_v0  ;;  %v1203_v38 = vand.u32 127, %v761_v16 }
 0x211   : > { %2349 = vmatpush3.bf16.msra.mxu1 %v2675_v37  ;;  %2350 = vmatprep.mubr.msk.bf16.mxu1 %vm2460_vm0, %v2459_v0  ;;  %v1182_v48 = vrot.slane %v1174_v33, %v2728_v30  ;;  %v2424_v37 = vpop.eup %2423  ;;  %v899_v33 = vld [vmem:[#allocation4 + $0x18] sm:$0xff] }
 0x212   : > { %2360 = vmatprep.subr.bf16.mxu1 %v2459_v0  ;;  %v2426_v51 = vpop.eup %2425  ;;  %v869_v62 = vmul.f32 %v2424_v37, %v865_v61 }
 0x213   : > { %907 = vperm.xlu0 %2409, %v2420_v15   ;;  %v1192_v49 = vcombine.high %v1182_v48, %v2459_v0  ;;  %v870_v10 = vmul.f32 %v2426_v51, %v866_v63 }
 0x215   : > { %v1199_v52 = vpack.c.bf16 %v1192_v49, %v1192_v49 }
 0x216   : > { %2345 = vmatmul.mubr.msk.bf16.vlgmr.msra.gmra.mxu0 %vm802_vm3, %v1196_v43  ;;  %902 = vperm.xlu1 %2410, %v2422_v46  }
 0x217   : > { %2355 = vmatpush3.bf16.msra.mxu0 %v2678_v39  ;;  %2356 = vmatprep.mubr.msk.bf16.mxu0 %vm2460_vm0, %v2459_v0  ;;  %v1198_v39 = vpack.c.bf16 %v1182_v48, %v1182_v48 }
 0x218   : > { %2351 = vmatmul.mubr.msk.bf16.vlgmr.msra.gmra.mxu1 %vm802_vm3, %v1197_v47  ;;  %2366 = vmatprep.subr.bf16.mxu0 %v2459_v0  ;;  %v2813_v47 = vsub.s32 %v1203_v38, %v2580_v18 }
 0x219   : > { %2361 = vmatpush3.bf16.msra.mxu1 %v2681_v41  ;;  %2362 = vmatprep.mubr.msk.bf16.mxu1 %vm2460_vm0, %v2459_v0  ;;  %v1193_v41 = vcombine.high %v1189_v53, %v2459_v0 }
 0x21a   : > { %912 = vperm.xlu1 %2410, %v2424_v37   ;;  %2372 = vmatprep.subr.bf16.mxu1 %v2459_v0 }
 0x21b   : > { %v1201_v57 = vpack.c.bf16 %v1193_v41, %v1193_v41 }
 0x21e   : > { %2357 = vmatmul.mubr.msk.bf16.vlgmr.msra.gmra.mxu0 %vm802_vm3, %v1198_v39  ;;  %917 = vperm.xlu1 %2410, %v2426_v51  }
 0x21f   : > { %2367 = vmatpush3.bf16.msra.mxu0 %v2684_v44  ;;  %2368 = vmatprep.mubr.msk.bf16.mxu0 %vm2460_vm0, %v2459_v0  ;;  %v867_v44 = vmul.f32 %v2422_v46, %v863_v58 }
 0x220   : > { %2363 = vmatmul.mubr.msk.bf16.vlgmr.msra.gmra.mxu1 %vm802_vm3, %v1199_v52 }
 0x221   : > { %2373 = vmatpush3.bf16.msra.mxu1 %v2687_v45  ;;  %2374 = vmatprep.mubr.msk.bf16.mxu1 %vm2460_vm0, %v2459_v0 }
 0x226   : > { %2369 = vmatmul.mubr.msk.bf16.vlgmr.msra.gmra.mxu0 %vm802_vm3, %v1200_v54 }
 0x228   : > { %2375 = vmatmul.mubr.msk.bf16.vlgmr.msra.gmra.mxu1 %vm802_vm3, %v1201_v57 }
 0x282   : > { %v873_v59 = vpop.xlane.xlu1 %872 }
 0x283   : > { %v883_v35 = vadd.f32 %v873_v59, %v867_v44 }
 0x285   : > { %888 = vst.msk [vmem:[#allocation3] sm:$0xff] %vm528_vm2, %v883_v35 }
 0x286   : > { %v876_v45 = vpop.xlane.xlu0 %875 }
 0x287   : > { %v884_v55 = vadd.f32 %v876_v45, %v868_v36 }
 0x289   : > { %889 = vst.msk [vmem:[#allocation3 + $0x8] sm:$0xff] %vm528_vm2, %v884_v55 }
 0x28a   : > { %v879_v56 = vpop.xlane.xlu1 %878 }
 0x28b   : > { %v885_v2 = vadd.f32 %v879_v56, %v869_v62 }
 0x28c   : > { %v1727_v6 = vld [vmem:[#allocation3] sm:$0xff] }
 0x28d   : > { %890 = vst.msk [vmem:[#allocation3 + $0x10] sm:$0xff] %vm528_vm2, %v885_v2  ;;  %2427 = vrcp.f32 %v1727_v6 }
 0x28e   : > { %v882_v14 = vpop.xlane.xlu1 %881  ;;  %v908_v1 = vpop.permute.xlu0 %907 }
 0x28f   : > { %v886_v17 = vadd.f32 %v882_v14, %v870_v10  ;;  %v921_v13 = vmul.f32 %v908_v1, %v897_v29  ;;  %v1211_v53 = vrot.slane %v908_v1, %v2813_v47 }
 0x290   : > { %v1728_v20 = vld [vmem:[#allocation3 + $0x8] sm:$0xff] }
 0x291   : > { %891 = vst.msk [vmem:[#allocation3 + $0x18] sm:$0xff] %vm528_vm2, %v886_v17  ;;  %2429 = vrcp.f32 %v1728_v20 }
 0x292   : > { %v903_v7 = vpop.permute.xlu1 %902 }
 0x293   : > { %v920_v28 = vmul.f32 %v903_v7, %v896_v9  ;;  %v1207_v50 = vrot.slane %v903_v7, %v2813_v47 }
 0x294   : > { %v1729_v21 = vld [vmem:[#allocation3 + $0x10] sm:$0xff] }
 0x295   : > { %2431 = vrcp.f32 %v1729_v21  ;;  %v1221_v44 = vsel %vm1220_vm7, %v1211_v53, %v1207_v50 }
 0x296   : > { %v913_v5 = vpop.permute.xlu1 %912 }
 0x297   : > { %v922_v15 = vmul.f32 %v913_v5, %v898_v31  ;;  %v1215_v16 = vrot.slane %v913_v5, %v2813_v47 }
 0x298   : > { %v1730_v22 = vld [vmem:[#allocation3 + $0x18] sm:$0xff] }
 0x299   : > { %2433 = vrcp.f32 %v1730_v22  ;;  %v1223_v60 = vsel %vm1222_vm8, %v1215_v16, %v1221_v44 }
 0x29a   : > { %v2428_v25 = vpop.eup %2427  ;;  %v918_v19 = vpop.permute.xlu1 %917 }
 0x29b   : > { %1740 = vperm.xlu1 %2410, %v2428_v25   ;;  %v923_v39 = vmul.f32 %v918_v19, %v899_v33  ;;  %v1219_v41 = vrot.slane %v918_v19, %v2813_v47 }
 0x29d   : > { %v1225_v35 = vsel %vm1224_vm9, %v1219_v41, %v1223_v60 }
 0x29e   : > { %v2430_v26 = vpop.eup %2429 }
 0x29f   : > { %1743 = vperm.xlu0 %2409, %v2430_v26  }
 0x2a2   : > { %v2432_v27 = vpop.eup %2431 }
 0x2a3   : > { %1746 = vperm.xlu1 %2410, %v2432_v27  }
 0x2a6   : > { %v2434_v4 = vpop.eup %2433 }
 0x2a7   : > { %1749 = vperm.xlu0 %2409, %v2434_v4  }
 0x2ba   : > { %v973_v3 = vpop.f32.mrf.mxu0 }
 0x2bb   : > { %v1117_v8 = vadd.f32 %v973_v3, %v920_v28 }
 0x2bc   : > { %v2310_v11 = vpop.f32.mrf.mxu0 }
 0x2bd   : > { %1122 = vst.msk [vmem:[#allocation4] sm:$0xff] %vm537_vm5, %v1117_v8 }
 0x2be   : > { %v976_v32 = vpop.f32.mrf.mxu0  ;;  %v1019_v34 = vpop.f32.mrf.mxu1 }
 0x2bf   : > { %v1118_v40 = vadd.f32 %v1019_v34, %v921_v13 }
 0x2c0   : > { %v2311_v42 = vpop.f32.mrf.mxu0  ;;  %v2316_v12 = vpop.f32.mrf.mxu1 }
 0x2c1   : > { %1123 = vst.msk [vmem:[#allocation4 + $0x8] sm:$0xff] %vm537_vm5, %v1118_v40 }
 0x2c2   : > { %v1022_v43 = vpop.f32.mrf.mxu1  ;;  %v1065_v46 = vpop.f32.mrf.mxu0 }
 0x2c3   : > { %v1119_v48 = vadd.f32 %v1065_v46, %v922_v15 }
 0x2c4   : > { %v2317_v37 = vpop.f32.mrf.mxu1  ;;  %v2322_v49 = vpop.f32.mrf.mxu0 }
 0x2c5   : > { %1124 = vst.msk [vmem:[#allocation4 + $0x10] sm:$0xff] %vm537_vm5, %v1119_v48  ;;  %v1883_v37 = vld [vmem:[#allocation4] sm:$0xff] }
 0x2c6   : > { %v1068_v51 = vpop.f32.mrf.mxu0  ;;  %v1111_v52 = vpop.f32.mrf.mxu1 }
 0x2c7   : > { %v1120_v54 = vadd.f32 %v1111_v52, %v923_v39 }
 0x2c8   : > { %v2323_v57 = vpop.f32.mrf.mxu0  ;;  %v2328_v58 = vpop.f32.mrf.mxu1  ;;  %v1884_v39 = vld [vmem:[#allocation4 + $0x8] sm:$0xff] }
 0x2c9   : > { %1125 = vst.msk [vmem:[#allocation4 + $0x18] sm:$0xff] %vm537_vm5, %v1120_v54 }
 0x2ca   : > { %v1114_v59 = vpop.f32.mrf.mxu1 }
 0x2cc   : > { %v2329_v36 = vpop.f32.mrf.mxu1  ;;  %1227 = vxpose.xlu1.b32.start.end [1/1] (short) (narrow) %v1225_v35, 8  ;;  %v1885_v43 = vld [vmem:[#allocation4 + $0x10] sm:$0xff] }
 0x2ce   : > { %v2824_v45 = vpop.f32.mrf.mxu0 }
 0x2d0   : > { %v2334_v61 = vpop.f32.mrf.mxu0  ;;  %v2826_v55 = vpop.f32.mrf.mxu1  ;;  %v1886_v51 = vld [vmem:[#allocation4 + $0x18] sm:$0xff] }
 0x2d2   : > { %v1382_v62 = vpop.f32.mrf.mxu0  ;;  %v2340_v56 = vpop.f32.mrf.mxu1 }
 0x2d4   : > { %v2335_v63 = vpop.f32.mrf.mxu0  ;;  %v1428_v2 = vpop.f32.mrf.mxu1 }
 0x2d6   : > { %v2341_v6 = vpop.f32.mrf.mxu1  ;;  %v2828_v10 = vpop.f32.mrf.mxu0 }
 0x2d8   : > { %v2346_v14 = vpop.f32.mrf.mxu0  ;;  %v2830_v17 = vpop.f32.mrf.mxu1 }
 0x2da   : > { %v1474_v20 = vpop.f32.mrf.mxu0  ;;  %v2352_v21 = vpop.f32.mrf.mxu1 }
 0x2dc   : > { %v2347_v22 = vpop.f32.mrf.mxu0  ;;  %v1520_v25 = vpop.f32.mrf.mxu1 }
 0x2de   : > { %v2353_v26 = vpop.f32.mrf.mxu1  ;;  %v2832_v27 = vpop.f32.mrf.mxu0 }
 0x2e0   : > { %v2358_v4 = vpop.f32.mrf.mxu0  ;;  %v2834_v7 = vpop.f32.mrf.mxu1 }
 0x2e1   : > { %v1275_v4 = vsub.s32 2, %v2580_v18 }
 0x2e2   : > { %v1566_v9 = vpop.f32.mrf.mxu0  ;;  %v2364_v28 = vpop.f32.mrf.mxu1 }
 0x2e3   : > { %v1282_v9 = vsub.s32 3, %v2580_v18 }
 0x2e4   : > { %v2359_v29 = vpop.f32.mrf.mxu0  ;;  %v1612_v1 = vpop.f32.mrf.mxu1 }
 0x2e5   : > { %v1289_v1 = vsub.s32 4, %v2580_v18 }
 0x2e6   : > { %v2365_v3 = vpop.f32.mrf.mxu1  ;;  %v2836_v5 = vpop.f32.mrf.mxu0 }
 0x2e7   : > { %v1296_v3 = vsub.s32 5, %v2580_v18 }
 0x2e8   : > { %v2370_v8 = vpop.f32.mrf.mxu0  ;;  %v2838_v11 = vpop.f32.mrf.mxu1 }
 0x2ea   : > { %v1658_v13 = vpop.f32.mrf.mxu0  ;;  %v2376_v31 = vpop.f32.mrf.mxu1 }
 0x2eb   : > { %v1303_v31 = vsub.s32 6, %v2580_v18 }
 0x2ec   : > { %v2371_v32 = vpop.f32.mrf.mxu0  ;;  %v1704_v34 = vpop.f32.mrf.mxu1 }
 0x2ed   : > { %v1310_v32 = vsub.s32 7, %v2580_v18 }
 0x2ee   : > { %v2377_v38 = vpop.f32.mrf.mxu1 }
 0x316   : > { %v1741_v40 = vpop.permute.xlu1 %1740 }
 0x317   : > { %v1754_v12 = vrot.slane %v1741_v40, %v2813_v47  ;;  %v1891_v49 = vmul.f32 %v1883_v37, %v1741_v40  ;;  %v1318_v37 = vld [vmem:[#allocation5 + $0xc] sm:$0xf] }
 0x31a   : > { %v1744_v42 = vpop.permute.xlu0 %1743 }
 0x31b   : > { %v1758_v15 = vrot.slane %v1744_v42, %v2813_v47  ;;  %v1892_v52 = vmul.f32 %v1884_v39, %v1744_v42 }
 0x31d   : > { %v1767_v19 = vsel %vm1220_vm7, %v1758_v15, %v1754_v12  ;;  %v1316_v12 = vld [vmem:[#allocation5 + $0x4] sm:$0xf]  ;;  %v1315_v15 = vld [vmem:[#allocation5] sm:$0xf] }
 0x31e   : > { %v1747_v33 = vpop.permute.xlu1 %1746 }
 0x31f   : > { %v1762_v46 = vrot.slane %v1747_v33, %v2813_v47  ;;  %v1893_v48 = vmul.f32 %v1885_v43, %v1747_v33 }
 0x321   : > { %v1768_v50 = vsel %vm1222_vm8, %v1762_v46, %v1767_v19  ;;  %v1895_v53 = vcombine.low %v1891_v49, %v1893_v48  ;;  %v1896_v41 = vcombine.high %v1891_v49, %v1893_v48  ;;  %v1317_v48 = vld [vmem:[#allocation5 + $0x8] sm:$0xf] }
 0x322   : > { %v1750_v16 = vpop.permute.xlu0 %1749 }
 0x323   : > { %v1894_v54 = vmul.f32 %v1886_v51, %v1750_v16  ;;  %v1903_v44 = vrot.slane %v1895_v53, %v2715_v24  ;;  %v1910_v59 = vrot.slane %v1896_v41, %v2715_v24  ;;  %v1766_v40 = vrot.slane %v1750_v16, %v2813_v47  ;;  %v1319_v16 = vld [vmem:[#allocation5 + $0x10] sm:$0xf]  ;;  %v1320_v53 = vld [vmem:[#allocation5 + $0x14] sm:$0xf] }
 0x325   : > { %v1911_v57 = vcombine.low %v1892_v52, %v1894_v54  ;;  %v1912_v58 = vcombine.high %v1892_v52, %v1894_v54  ;;  %v1769_v42 = vsel %vm1224_vm9, %v1766_v40, %v1768_v50 }
 0x327   : > { %v1919_v60 = vrot.slane %v1911_v57, %v2715_v24  ;;  %v1926_v35 = vrot.slane %v1912_v58, %v2715_v24 }
 0x329   : > { %v1927_v36 = vcombine.low %v1903_v44, %v1919_v60  ;;  %v1928_v61 = vcombine.high %v1903_v44, %v1919_v60  ;;  %v1943_v62 = vcombine.low %v1910_v59, %v1926_v35  ;;  %v1944_v56 = vcombine.high %v1910_v59, %v1926_v35  ;;  %v1321_v44 = vld [vmem:[#allocation5 + $0x18] sm:$0xf]  ;;  %v1322_v59 = vld [vmem:[#allocation5 + $0x1c] sm:$0xf] }
 0x32b   : > { %v1935_v63 = vrot.slane %v1927_v36, %v2728_v30  ;;  %v1942_v2 = vrot.slane %v1928_v61, %v2728_v30  ;;  %v1951_v6 = vrot.slane %v1943_v62, %v2728_v30  ;;  %v1958_v14 = vrot.slane %v1944_v56, %v2728_v30 }
 0x32c   : > { %v1268_v30 = vsub.s32 1, %v2580_v18 }
 0x32d   : > { %v1959_v20 = vcombine.high %v1935_v63, %v2459_v0  ;;  %v1960_v24 = vcombine.high %v1942_v2, %v2459_v0  ;;  %v1961_v21 = vcombine.high %v1951_v6, %v2459_v0  ;;  %v1962_v22 = vcombine.high %v1958_v14, %v2459_v0  ;;  %1963 = vst.msk [vmem:[%s521_s8] sm:$0xf] %vm542_vm6, %v1935_v63 }
 0x32e   : > { %1965 = vst.msk [vmem:[%s521_s8 + $0x8] sm:$0xf] %vm542_vm6, %v1942_v2  ;;  %1967 = vst.msk [vmem:[%s521_s8 + $0x10] sm:$0xf] %vm542_vm6, %v1951_v6 }
 0x32f   : > { %1969 = vst.msk [vmem:[%s521_s8 + $0x18] sm:$0xf] %vm542_vm6, %v1958_v14  ;;  %1964 = vst.msk [vmem:[%s521_s8 + $0x4] sm:$0xf] %vm542_vm6, %v1959_v20 }
 0x330   : > { %1966 = vst.msk [vmem:[%s521_s8 + $0xc] sm:$0xf] %vm542_vm6, %v1960_v24  ;;  %1968 = vst.msk [vmem:[%s521_s8 + $0x14] sm:$0xf] %vm542_vm6, %v1961_v21 }
 0x331   : > { %1970 = vst.msk [vmem:[%s521_s8 + $0x1c] sm:$0xf] %vm542_vm6, %v1962_v22 }
 0x348   : > { %v1243_v25 = vpop.trf.xlu1 }
 0x349   : > { %v1269_v0 = vrot.slane %v1243_v25, %v1268_v30  ;;  %v1262_v26 = vrot.slane %v1243_v25, %v2591_v23  ;;  %v1276_v28 = vrot.slane %v1243_v25, %v1275_v4  ;;  %v1283_v29 = vrot.slane %v1243_v25, %v1282_v9 }
 0x34a   : > { %v1290_v8 = vrot.slane %v1243_v25, %v1289_v1  ;;  %v1297_v13 = vrot.slane %v1243_v25, %v1296_v3  ;;  %v1304_v34 = vrot.slane %v1243_v25, %v1303_v31  ;;  %v1311_v38 = vrot.slane %v1243_v25, %v1310_v32 }
 0x34b   : > { %1271 = vbcast.lane.b32.xlu1 %v1269_v0, 256  ;;  %1264 = vbcast.lane.b32.xlu0 %v1262_v26, 256 }
 0x34f   : > { %1278 = vbcast.lane.b32.xlu1 %v1276_v28, 256  ;;  %1285 = vbcast.lane.b32.xlu0 %v1283_v29, 256 }
 0x353   : > { %1292 = vbcast.lane.b32.xlu1 %v1290_v8, 256  ;;  %1299 = vbcast.lane.b32.xlu0 %v1297_v13, 256 }
 0x357   : > { %1306 = vbcast.lane.b32.xlu1 %v1304_v34, 256  ;;  %1313 = vbcast.lane.b32.xlu0 %v1311_v38, 256 }
 0x375   : > { %1771 = vxpose.xlu0.b32.start.end [1/1] (short) (narrow) %v1769_v42, 8 }
 0x3bd   : > { %v1272_v19 = vpop.permute.xlu1 %1271  ;;  %v1265_v33 = vpop.permute.xlu0 %1264 }
 0x3be   : > { %v1324_v43 = vmul.f32 %v1316_v12, %v1272_v19  ;;  %v1323_v46 = vmul.f32 %v1315_v15, %v1265_v33 }
 0x3c0   : > { %v1708_v49 = vadd.f32 %v2826_v55, %v1324_v43  ;;  %v1707_v39 = vadd.f32 %v2824_v45, %v1323_v46 }
 0x3c1   : > { %v1279_v51 = vpop.permute.xlu1 %1278  ;;  %v1286_v52 = vpop.permute.xlu0 %1285 }
 0x3c2   : > { %1717 = vst.msk [vmem:[#allocation5 + $0x4] sm:$0xf] %vm542_vm6, %v1708_v49  ;;  %1716 = vst.msk [vmem:[#allocation5] sm:$0xf] %vm542_vm6, %v1707_v39  ;;  %v1325_v47 = vmul.f32 %v1317_v48, %v1279_v51  ;;  %v1326_v50 = vmul.f32 %v1318_v37, %v1286_v52 }
 0x3c4   : > { %v1709_v41 = vadd.f32 %v2828_v10, %v1325_v47  ;;  %v1710_v54 = vadd.f32 %v2830_v17, %v1326_v50 }
 0x3c5   : > { %v1293_v57 = vpop.permute.xlu1 %1292  ;;  %v1300_v58 = vpop.permute.xlu0 %1299 }
 0x3c6   : > { %1718 = vst.msk [vmem:[#allocation5 + $0x8] sm:$0xf] %vm542_vm6, %v1709_v41  ;;  %1719 = vst.msk [vmem:[#allocation5 + $0xc] sm:$0xf] %vm542_vm6, %v1710_v54  ;;  %v1327_v45 = vmul.f32 %v1319_v16, %v1293_v57  ;;  %v1328_v55 = vmul.f32 %v1320_v53, %v1300_v58 }
 0x3c8   : > { %v1711_v60 = vadd.f32 %v2832_v27, %v1327_v45  ;;  %v1712_v35 = vadd.f32 %v2834_v7, %v1328_v55 }
 0x3c9   : > { %v1307_v36 = vpop.permute.xlu1 %1306  ;;  %v1314_v61 = vpop.permute.xlu0 %1313  ;;  %v1860_v20 = vld [vmem:[#allocation5 + $0x4] sm:$0xf]  ;;  %v1859_v22 = vld [vmem:[#allocation5] sm:$0xf] }
 0x3ca   : > { %1720 = vst.msk [vmem:[#allocation5 + $0x10] sm:$0xf] %vm542_vm6, %v1711_v60  ;;  %1721 = vst.msk [vmem:[#allocation5 + $0x14] sm:$0xf] %vm542_vm6, %v1712_v35  ;;  %v1329_v10 = vmul.f32 %v1321_v44, %v1307_v36  ;;  %v1330_v17 = vmul.f32 %v1322_v59, %v1314_v61 }
 0x3cc   : > { %v1713_v62 = vadd.f32 %v2836_v5, %v1329_v10  ;;  %v1714_v56 = vadd.f32 %v2838_v11, %v1330_v17 }
 0x3cd   : > { %v1862_v18 = vld [vmem:[#allocation5 + $0xc] sm:$0xf] }
 0x3ce   : > { %1722 = vst.msk [vmem:[#allocation5 + $0x18] sm:$0xf] %vm542_vm6, %v1713_v62  ;;  %1723 = vst.msk [vmem:[#allocation5 + $0x1c] sm:$0xf] %vm542_vm6, %v1714_v56 }
 0x3d1   : > { %v1864_v29 = vld [vmem:[#allocation5 + $0x14] sm:$0xf]  ;;  %v1863_v8 = vld [vmem:[#allocation5 + $0x10] sm:$0xf] }
 0x3d5   : > { %v1865_v40 = vld [vmem:[#allocation5 + $0x18] sm:$0xf] }
 0x3f1   : > { %v1787_v63 = vpop.trf.xlu0 }
 0x3f2   : > { %v1813_v27 = vrot.slane %v1787_v63, %v1268_v30  ;;  %v1806_v7 = vrot.slane %v1787_v63, %v2591_v23  ;;  %v1827_v2 = vrot.slane %v1787_v63, %v1282_v9  ;;  %v1820_v5 = vrot.slane %v1787_v63, %v1275_v4  ;;  %v1861_v4 = vld [vmem:[#allocation5 + $0x8] sm:$0xf] }
 0x3f3   : > { %v1841_v11 = vrot.slane %v1787_v63, %v1296_v3  ;;  %v1834_v6 = vrot.slane %v1787_v63, %v1289_v1  ;;  %v1855_v23 = vrot.slane %v1787_v63, %v1310_v32  ;;  %v1848_v14 = vrot.slane %v1787_v63, %v1303_v31  ;;  %v1866_v32 = vld [vmem:[#allocation5 + $0x1c] sm:$0xf] }
 0x3f4   : > { %1815 = vbcast.lane.b32.xlu0 %v1813_v27, 256  ;;  %1808 = vbcast.lane.b32.xlu1 %v1806_v7, 256 }
 0x3f8   : > { %1829 = vbcast.lane.b32.xlu0 %v1827_v2, 256  ;;  %1822 = vbcast.lane.b32.xlu1 %v1820_v5, 256 }
 0x3fc   : > { %1843 = vbcast.lane.b32.xlu0 %v1841_v11, 256  ;;  %1836 = vbcast.lane.b32.xlu1 %v1834_v6, 256 }
 0x400   : > { %1857 = vbcast.lane.b32.xlu0 %v1855_v23, 256  ;;  %1850 = vbcast.lane.b32.xlu1 %v1848_v14, 256 }
 0x466   : > { %v1816_v24 = vpop.permute.xlu0 %1815  ;;  %v1809_v21 = vpop.permute.xlu1 %1808 }
 0x467   : > { %v1868_v30 = vmul.f32 %v1860_v20, %v1816_v24  ;;  %v1867_v25 = vmul.f32 %v1859_v22, %v1809_v21 }
 0x469   : > { %1876 = vst.msk [vmem:[%s2928_s11 + $0x4] sm:$0xf] %vm542_vm6, %v1868_v30  ;;  %1875 = vst.msk [vmem:[%s2928_s11] sm:$0xf] %vm542_vm6, %v1867_v25 }
 0x46a   : > { %v1830_v0 = vpop.permute.xlu0 %1829  ;;  %v1823_v26 = vpop.permute.xlu1 %1822 }
 0x46b   : > { %v1870_v9 = vmul.f32 %v1862_v18, %v1830_v0  ;;  %v1869_v28 = vmul.f32 %v1861_v4, %v1823_v26 }
 0x46d   : > { %1878 = vst.msk [vmem:[%s2928_s11 + $0xc] sm:$0xf] %vm542_vm6, %v1870_v9  ;;  %1877 = vst.msk [vmem:[%s2928_s11 + $0x8] sm:$0xf] %vm542_vm6, %v1869_v28 }
 0x46e   : > { %v1844_v1 = vpop.permute.xlu0 %1843  ;;  %v1837_v3 = vpop.permute.xlu1 %1836 }
 0x46f   : > { %v1872_v13 = vmul.f32 %v1864_v29, %v1844_v1  ;;  %v1871_v31 = vmul.f32 %v1863_v8, %v1837_v3 }
 0x471   : > { %1880 = vst.msk [vmem:[%s2928_s11 + $0x14] sm:$0xf] %vm542_vm6, %v1872_v13  ;;  %1879 = vst.msk [vmem:[%s2928_s11 + $0x10] sm:$0xf] %vm542_vm6, %v1871_v31 }
 0x472   : > { %v1858_v34 = vpop.permute.xlu0 %1857  ;;  %v1851_v38 = vpop.permute.xlu1 %1850 }
 0x473   : > { %v1874_v42 = vmul.f32 %v1866_v32, %v1858_v34  ;;  %v1873_v12 = vmul.f32 %v1865_v40, %v1851_v38 }
 0x475   : > { %1882 = vst.msk [vmem:[%s2928_s11 + $0x1c] sm:$0xf] %vm542_vm6, %v1874_v42  ;;  %1881 = vst.msk [vmem:[%s2928_s11 + $0x18] sm:$0xf] %vm542_vm6, %v1873_v12 }
 0x476 PF: > { %s18_s26 = sadd.s32 1, %s2457_s26   ;;  %s2963_s24 = smov %s2453_s25 }
 0x477   : > { %p15_p5 = scmp.ge.s32.totalorder %s18_s26, 4   ;;  %s2964_s25 = smov %s2966_s27 }
 0x479   :  { %17 = sbr.rel (!%p15_p5) target bundleno = 2 (0x2), region = 109 }

// kernel: structure_module_forward.15
= control target key start
LH: loop header
LB: loop body
LE: loop exit
PB: predicated region body
PF: predicated region fallthrough
CT: control target
= control target key end

     0   :  { %v507_v0 = vmov 0.0   ;;  %vm508_vm0 = vmmov 0   ;;  %vm170_vm1 = vcmask 261120   ;;  %vm268_vm2 = vcmask 785408   ;;  %s685_s5 = inlined_call_operand.vmem [shape: bf16[128,64], index: 5, kind: input, shape index: {}]   ;;  %s686_s6 = inlined_call_operand.vmem [shape: bf16[32,64], index: 6, kind: input, shape index: {}]   ;;  %s687_s1 = inlined_call_operand.vmem [shape: f32[16,32], index: 1, kind: input, shape index: {}]   ;;  %s688_s7 = inlined_call_operand.vmem [shape: bf16[96,64], index: 7, kind: input, shape index: {}]   ;;  %s689_s8 = inlined_call_operand.vmem [shape: bf16[32,64], index: 8, kind: input, shape index: {}]   ;;  %s690_s0 = inlined_call_operand.vmem [shape: f32[16,128], index: 0, kind: input, shape index: {}]   ;;  %s691_s2 = inlined_call_operand.vmem [shape: f32[16,96], index: 2, kind: input, shape index: {}]   ;;  %s692_s3 = inlined_call_operand.vmem [shape: f32[16,32], index: 3, kind: input, shape index: {}]   ;;  %s693_s9 = inlined_call_operand.vmem [shape: f32[1,64], index: 9, kind: input, shape index: {}]   ;;  %s694_s4 = inlined_call_operand.vmem [shape: f32[16,64], index: 4, kind: input, shape index: {}]   ;;  %s695_s10 = inlined_call_operand.vmem [shape: f32[16,64], index: 10, kind: output, shape index: {}]  }
   0x1   :  { %435 = vmatprep.subr.bf16.mxu0 %v507_v0  ;;  %v489_v1 = vld [vmem:[%s685_s5 + $0x38] sm:$0xff]   ;;  %455 = vmatprep.subr.bf16.mxu1 %v507_v0  ;;  %v490_v2 = vld [vmem:[%s686_s6 + $0x8] sm:$0xff]   ;;  %v491_v3 = vld [vmem:[%s685_s5 + $0x30] sm:$0xff]   ;;  %vm384_vm3 = vcmask 523264  }
   0x2   :  { %459 = vmatprep.mubr.msk.bf16.mxu1 %vm508_vm0, %v507_v0  ;;  %451 = vmatprep.mubr.msk.bf16.mxu0 %vm508_vm0, %v507_v0  ;;  %v492_v4 = vld [vmem:[%s686_s6] sm:$0xff]   ;;  %v152_v6 = vld [vmem:[%s687_s1 + $0x8] sm:$0xff]  ;;  %v497_v12 = vld [vmem:[%s685_s5 + $0x18] sm:$0xff]  }
   0x3   :  { %436 = vmatpush3.bf16.msra.mxu0 %v489_v1  ;;  %456 = vmatpush3.bf16.msra.mxu1 %v490_v2  ;;  %v151_v5 = vld [vmem:[%s687_s1] sm:$0xff]  ;;  %v493_v7 = vld [vmem:[%s685_s5 + $0x28] sm:$0xff]   ;;  %v498_v13 = vld [vmem:[%s688_s7 + $0x18] sm:$0xff]  }
   0x4   :  { %437 = vmatprep.subr.bf16.mxu0 %v507_v0  ;;  %457 = vmatprep.subr.bf16.mxu1 %v507_v0  ;;  %v153_v8 = vpack.c.bf16 %v152_v6, %v151_v5  ;;  %v494_v9 = vld [vmem:[%s688_s7 + $0x28] sm:$0xff]   ;;  %v495_v10 = vld [vmem:[%s685_s5 + $0x20] sm:$0xff]   ;;  %v499_v14 = vld [vmem:[%s685_s5 + $0x10] sm:$0xff]  }
   0x5   :  { %v496_v11 = vld [vmem:[%s688_s7 + $0x20] sm:$0xff]   ;;  %v500_v15 = vld [vmem:[%s688_s7 + $0x10] sm:$0xff]   ;;  %v501_v16 = vld [vmem:[%s685_s5 + $0x8] sm:$0xff]  }
   0x6   :  { %v502_v17 = vld [vmem:[%s688_s7 + $0x8] sm:$0xff]   ;;  %v503_v18 = vld [vmem:[%s685_s5] sm:$0xff]  }
   0x7   :  { %438 = vmatpush3.bf16.msra.mxu0 %v491_v3  ;;  %458 = vmatpush3.bf16.msra.mxu1 %v492_v4  ;;  %v36_v19 = vld [vmem:[%s690_s0] sm:$0xff]  ;;  %v37_v20 = vld [vmem:[%s690_s0 + $0x8] sm:$0xff] }
   0x8   :  { %439 = vmatprep.subr.bf16.mxu0 %v507_v0  ;;  %463 = vmatprep.subr.bf16.mxu1 %v507_v0  ;;  %v504_v21 = vld [vmem:[%s688_s7] sm:$0xff]   ;;  %v218_v23 = vld [vmem:[%s691_s2 + $0x8] sm:$0xff]  ;;  %v38_v24 = vpack.c.bf16 %v37_v20, %v36_v19 }
   0x9   :  { %v217_v22 = vld [vmem:[%s691_s2] sm:$0xff]  ;;  %v505_v26 = vld [vmem:[%s689_s8 + $0x8] sm:$0xff]  }
   0xa   :  { %460 = vmatmul.mubr.msk.bf16.vlgmr.msra.gmra.mxu1 %vm170_vm1, %v153_v8  ;;  %v219_v25 = vpack.c.bf16 %v218_v23, %v217_v22  ;;  %v506_v27 = vld [vmem:[%s689_s8] sm:$0xff]   ;;  %v316_v29 = vld [vmem:[%s692_s3 + $0x8] sm:$0xff] }
   0xb   :  { %440 = vmatpush3.bf16.msra.mxu0 %v493_v7  ;;  %464 = vmatpush3.bf16.msra.mxu1 %v494_v9  ;;  %v315_v28 = vld [vmem:[%s692_s3] sm:$0xff]  ;;  %v381_v56 = vld [vmem:[%s694_s4 + $0x8] sm:$0xff] }
   0xc   :  { %441 = vmatprep.subr.bf16.mxu0 %v507_v0  ;;  %465 = vmatprep.subr.bf16.mxu1 %v507_v0  ;;  %v317_v30 = vpack.c.bf16 %v316_v29, %v315_v28  ;;  %v391_v35 = vld [vmem:[%s693_s9] ss:$0 sm:$0xff] }
   0xd   :  { %475 = vmatprep.mubr.msk.bf16.mxu1 %vm508_vm0, %v507_v0  ;;  %v380_v50 = vld [vmem:[%s694_s4] sm:$0xff] }
   0xf   :  { %442 = vmatpush3.bf16.msra.mxu0 %v495_v10  ;;  %466 = vmatpush3.bf16.msra.mxu1 %v496_v11 }
  0x10   :  { %443 = vmatprep.subr.bf16.mxu0 %v507_v0  ;;  %467 = vmatprep.subr.bf16.mxu1 %v507_v0 }
  0x13   :  { %444 = vmatpush3.bf16.msra.mxu0 %v497_v12  ;;  %468 = vmatpush3.bf16.msra.mxu1 %v498_v13 }
  0x14   :  { %445 = vmatprep.subr.bf16.mxu0 %v507_v0  ;;  %469 = vmatprep.subr.bf16.mxu1 %v507_v0 }
  0x17   :  { %446 = vmatpush3.bf16.msra.mxu0 %v499_v14  ;;  %470 = vmatpush3.bf16.msra.mxu1 %v500_v15 }
  0x18   :  { %447 = vmatprep.subr.bf16.mxu0 %v507_v0  ;;  %471 = vmatprep.subr.bf16.mxu1 %v507_v0 }
  0x1b   :  { %448 = vmatpush3.bf16.msra.mxu0 %v501_v16  ;;  %472 = vmatpush3.bf16.msra.mxu1 %v502_v17 }
  0x1c   :  { %449 = vmatprep.subr.bf16.mxu0 %v507_v0  ;;  %473 = vmatprep.subr.bf16.mxu1 %v507_v0 }
  0x1f   :  { %450 = vmatpush3.bf16.msra.mxu0 %v503_v18  ;;  %474 = vmatpush3.bf16.msra.mxu1 %v504_v21 }
  0x20   :  { %479 = vmatprep.subr.bf16.mxu0 %v507_v0 }
  0x22   :  { %452 = vmatmul.mubr.bf16.vlgmr.msra.gmra.mxu0 %v38_v24  ;;  %476 = vmatmul.mubr.msk.bf16.vlgmr.msra.gmra.mxu1 %vm268_vm2, %v219_v25 }
  0x23   :  { %480 = vmatpush3.bf16.msra.mxu0 %v505_v26  ;;  %483 = vmatprep.mubr.msk.bf16.mxu0 %vm508_vm0, %v507_v0 }
  0x24   :  { %481 = vmatprep.subr.bf16.mxu0 %v507_v0 }
  0x27   :  { %482 = vmatpush3.bf16.msra.mxu0 %v506_v27 }
  0x2a   :  { %484 = vmatmul.mubr.msk.bf16.vlgmr.msra.gmra.mxu0 %vm170_vm1, %v317_v30 }
  0xca   :  { %v208_v31 = vpop.f32.mrf.mxu1 }
  0xcc   :  { %v461_v32 = vpop.f32.mrf.mxu1 }
  0xce   :  { %v211_v33 = vpop.f32.mrf.mxu1 }
  0xd0   :  { %v462_v34 = vpop.f32.mrf.mxu1 }
  0xe2   :  { %v144_v36 = vpop.f32.mrf.mxu0  ;;  %v306_v38 = vpop.f32.mrf.mxu1 }
  0xe3   :  { %v145_v37 = vadd.f32 %v391_v35, %v144_v36 }
  0xe4   :  { %v453_v39 = vpop.f32.mrf.mxu0  ;;  %v477_v41 = vpop.f32.mrf.mxu1 }
  0xe5   :  { %v215_v40 = vadd.f32 %v208_v31, %v145_v37 }
  0xe6   :  { %v147_v42 = vpop.f32.mrf.mxu0  ;;  %v309_v44 = vpop.f32.mrf.mxu1 }
  0xe7   :  { %v148_v43 = vadd.f32 %v391_v35, %v147_v42  ;;  %v313_v46 = vadd.f32 %v306_v38, %v215_v40 }
  0xe8   :  { %v454_v45 = vpop.f32.mrf.mxu0  ;;  %v478_v48 = vpop.f32.mrf.mxu1 }
  0xe9   :  { %v216_v47 = vadd.f32 %v211_v33, %v148_v43 }
  0xea   :  { %v371_v49 = vpop.f32.mrf.mxu0 }
  0xeb   :  { %v378_v51 = vadd.f32 %v371_v49, %v313_v46  ;;  %v314_v53 = vadd.f32 %v309_v44, %v216_v47 }
  0xec   :  { %v485_v52 = vpop.f32.mrf.mxu0 }
  0xed   :  { %v382_v54 = vadd.f32 %v380_v50, %v378_v51 }
  0xee   :  { %v374_v55 = vpop.f32.mrf.mxu0 }
  0xef   :  { %385 = vst.msk [vmem:[%s695_s10] sm:$0xff] %vm384_vm3, %v382_v54  ;;  %v379_v57 = vadd.f32 %v374_v55, %v314_v53 }
  0xf0   :  { %v486_v58 = vpop.f32.mrf.mxu0 }
  0xf1   :  { %v383_v59 = vadd.f32 %v381_v56, %v379_v57 }
  0xf3   :  { %386 = vst.msk [vmem:[%s695_s10 + $0x8] sm:$0xff] %vm384_vm3, %v383_v59 }

// kernel: structure_module_forward.16
= control target key start
LH: loop header
LB: loop body
LE: loop exit
PB: predicated region body
PF: predicated region fallthrough
CT: control target
= control target key end

     0   :  { %vm128_vm0 = vcmask 523264   ;;  %s1424_s6 = smov 4   ;;  %v1425_v14 = vmov 0.0   ;;  %vm1426_vm1 = vmmov 0   ;;  %s1427_s10 = smov 6   ;;  %vm562_vm2 = vcmask 48128   ;;  %s1657_s0 = inlined_call_operand.smem [shape: u32[31], index: -1, kind: input, shape index: {}] }
   0x1   :  { %s1_s5 = sld [smem:[%s1657_s0]]   ;;  %1238 = vmatprep.subr.bf16.mxu0 %v1425_v14  ;;  %1246 = vmatprep.mubr.msk.bf16.mxu0 %vm1426_vm1, %v1425_v14  ;;  %s1428_s14 = smov 2   ;;  %vm759_vm3 = vcmask 261120   ;;  %vm1088_vm4 = vcmask 113664  }
   0x2   :  { %s1106_s9 = sld [smem:[%s1657_s0 + %s1424_s6]]   ;;  %1250 = vmatprep.subr.bf16.mxu1 %v1425_v14  ;;  %1258 = vmatprep.mubr.msk.bf16.mxu1 %vm1426_vm1, %v1425_v14  ;;  %s1429_s18 = smov 3  }
   0x3   :  { %s1492_s13 = sld [smem:[%s1657_s0 + %s1427_s10]]   ;;  %s1430_s22 = smov 8  }
   0x4   :  { %s1104_s17 = sld [smem:[%s1657_s0 + %s1428_s14]]   ;;  %s1431_s26 = smov 5  }
   0x5   :  { %s1105_s21 = sld [smem:[%s1657_s0 + %s1429_s18]]   ;;  %s1432_s30 = smov 7  }
   0x6   :  { %s1110_s25 = sld [smem:[%s1657_s0 + %s1430_s22]]   ;;  %s1433_s4 = smov 9  }
   0x7   :  { %v1464_v0 = vld [vmem:[%s1_s5] sm:$0xff]  ;;  %v1466_v1 = vld [vmem:[%s1_s5 + $0x8] sm:$0xff]  ;;  %s1107_s29 = sld [smem:[%s1657_s0 + %s1431_s26]]   ;;  %s1434_s8 = smov 12  }
   0x8   :  { %v129_v2 = vsel %vm128_vm0, %v1464_v0, 0.0  ;;  %v132_v3 = vsel %vm128_vm0, %v1466_v1, 0.0  ;;  %v1382_v15 = vld [vmem:[%s1106_s9 + $0x18] sm:$0xff]   ;;  %v1383_v16 = vld [vmem:[%s1106_s9 + $0x10] sm:$0xff]   ;;  %v1384_v17 = vld [vmem:[%s1106_s9 + $0x8] sm:$0xff]   ;;  %s1109_s3 = sld [smem:[%s1657_s0 + %s1432_s30]]   ;;  %s1435_s12 = smov 14  }
   0x9   :  { %130 = vadd.xlane.f32.xlu0 %v129_v2  ;;  %1239 = vmatpush3.bf16.msra.mxu0 %v1382_v15  ;;  %v1385_v18 = vld [vmem:[%s1106_s9] sm:$0xff]   ;;  %v1386_v19 = vld [vmem:[%s1492_s13 + $0x18] sm:$0xff]   ;;  %v1387_v37 = vld [vmem:[%s1492_s13 + $0x10] sm:$0xff]   ;;  %s1111_s7 = sld [smem:[%s1657_s0 + %s1433_s4]]   ;;  %s1436_s16 = smov 16  }
   0xa   :  { %1240 = vmatprep.subr.bf16.mxu0 %v1425_v14  ;;  %1251 = vmatpush3.bf16.msra.mxu1 %v1386_v19  ;;  %v1133_v28 = vld [vmem:[%s1104_s17] ss:$0 sm:$0xff]  ;;  %v1388_v38 = vld [vmem:[%s1492_s13 + $0x8] sm:$0xff]   ;;  %s1114_s11 = sld [smem:[%s1657_s0 + %s1434_s8]]   ;;  %s1437_s20 = smov 10  }
   0xb   :  { %1252 = vmatprep.subr.bf16.mxu1 %v1425_v14  ;;  %v1134_v32 = vld [vmem:[%s1105_s21] ss:$0 sm:$0xff]  ;;  %s1116_s15 = sld [smem:[%s1657_s0 + %s1435_s12]]   ;;  %s1438_s24 = smov 11  }
   0xc   :  { %v1389_v39 = vld [vmem:[%s1492_s13] sm:$0xff]   ;;  %v1390_v40 = vld [vmem:[%s1110_s25 + $0x18] sm:$0xff]   ;;  %v1391_v51 = vld [vmem:[%s1110_s25 + $0x10] sm:$0xff]   ;;  %s1556_s19 = sld [smem:[%s1657_s0 + %s1436_s16]]   ;;  %s1439_s28 = smov 28  }
   0xd   :  { %133 = vadd.xlane.f32.xlu0 %v132_v3  ;;  %1241 = vmatpush3.bf16.msra.mxu0 %v1383_v16  ;;  %v1135_v41 = vld [vmem:[%s1107_s29] ss:$0 sm:$0xff]  ;;  %v1392_v52 = vld [vmem:[%s1110_s25 + $0x8] sm:$0xff]   ;;  %s1112_s23 = sld [smem:[%s1657_s0 + %s1437_s20]]   ;;  %s1440_s2 = smov 1  }
   0xe   :  { %1242 = vmatprep.subr.bf16.mxu0 %v1425_v14  ;;  %1253 = vmatpush3.bf16.msra.mxu1 %v1387_v37  ;;  %v1393_v53 = vld [vmem:[%s1110_s25] sm:$0xff]   ;;  %s1113_s27 = sld [smem:[%s1657_s0 + %s1438_s24]]   ;;  %s1441_s6 = smov 18  }
   0xf   :  { %1254 = vmatprep.subr.bf16.mxu1 %v1425_v14  ;;  %v1141_v54 = vld [vmem:[%s1109_s3] ss:$0 sm:$0xff]  ;;  %s1130_s1 = sld [smem:[%s1657_s0 + %s1439_s28]]   ;;  %s1442_s10 = smov 13  }
  0x10   :  { %v1147_v2 = vld [vmem:[%s1111_s7] ss:$0 sm:$0xff]  ;;  %s1103_s5 = sld [smem:[%s1657_s0 + %s1440_s2]]   ;;  %s1443_s14 = smov 29  }
  0x11   :  { %1243 = vmatpush3.bf16.msra.mxu0 %v1384_v17  ;;  %s1120_s9 = sld [smem:[%s1657_s0 + %s1441_s6]]   ;;  %s1444_s18 = smov 17  }
  0x12   :  { %1244 = vmatprep.subr.bf16.mxu0 %v1425_v14  ;;  %1255 = vmatpush3.bf16.msra.mxu1 %v1388_v38  ;;  %s1115_s13 = sld [smem:[%s1657_s0 + %s1442_s10]]   ;;  %s1445_s22 = smov 15  }
  0x13   :  { %1256 = vmatprep.subr.bf16.mxu1 %v1425_v14  ;;  %s1131_s17 = sld [smem:[%s1657_s0 + %s1443_s14]]   ;;  %s1446_s26 = smov 20  }
  0x14   :  { %s1119_s21 = sld [smem:[%s1657_s0 + %s1444_s18]]   ;;  %s1447_s30 = smov 19  }
  0x15   :  { %1245 = vmatpush3.bf16.msra.mxu0 %v1385_v18  ;;  %s1117_s25 = sld [smem:[%s1657_s0 + %s1445_s22]]   ;;  %s1448_s4 = smov 22  }
  0x16   :  { %1262 = vmatprep.subr.bf16.mxu0 %v1425_v14  ;;  %1257 = vmatpush3.bf16.msra.mxu1 %v1389_v39  ;;  %v1153_v39 = vld [vmem:[%s1112_s23] ss:$0 sm:$0xff]  ;;  %s1122_s29 = sld [smem:[%s1657_s0 + %s1446_s26]]   ;;  %s1449_s8 = smov 21  }
  0x17   :  { %1274 = vmatprep.subr.bf16.mxu1 %v1425_v14  ;;  %s1121_s3 = sld [smem:[%s1657_s0 + %s1447_s30]]   ;;  %s1450_s12 = smov 24  }
  0x18   :  { %s1124_s7 = sld [smem:[%s1657_s0 + %s1448_s4]]   ;;  %s1451_s16 = smov 23  }
  0x19   :  { %s1452_s20 = smov 26   ;;  %s1453_s24 = smov 25  }
  0x1a   :  { %s1128_s23 = sld [smem:[%s1657_s0 + %s1452_s20]]   ;;  %s1454_s28 = smov 27  }
  0x1b   :  { %s1455_s2 = smov 30  }
  0x92   :  { %v131_v4 = vpop.xlane.xlu0 %130 }
  0x93   :  { %v136_v5 = vmul.f32 0.015625, %v131_v4 }
  0x95   :  { %v138_v6 = vsub.f32 %v1464_v0, %v136_v5 }
  0x96   :  { %v134_v7 = vpop.xlane.xlu0 %133 }
  0x97   :  { %v137_v8 = vmul.f32 0.015625, %v134_v7  ;;  %v140_v9 = vmul.f32 %v138_v6, %v138_v6 }
  0x99   :  { %v139_v10 = vsub.f32 %v1466_v1, %v137_v8  ;;  %v142_v11 = vsel %vm128_vm0, %v140_v9, 0.0 }
  0x9a   :  { %143 = vadd.xlane.f32.xlu1 %v142_v11 }
  0x9b   :  { %v141_v12 = vmul.f32 %v139_v10, %v139_v10 }
  0x9d   :  { %v145_v13 = vsel %vm128_vm0, %v141_v12, 0.0 }
  0x9e   :  { %146 = vadd.xlane.f32.xlu1 %v145_v13 }
 0x123   :  { %v144_v20 = vpop.xlane.xlu1 %143 }
 0x124   :  { %v148_v21 = vmul.f32 0.015625, %v144_v20 }
 0x126   :  { %v150_v22 = vadd.f32 1e-05, %v148_v21 }
 0x127   :  { %v147_v23 = vpop.xlane.xlu1 %146 }
 0x128   :  { %1416 = vrsqrt.f32 %v150_v22  ;;  %v149_v24 = vmul.f32 0.015625, %v147_v23 }
 0x12a   :  { %v151_v25 = vadd.f32 1e-05, %v149_v24 }
 0x12c   :  { %1418 = vrsqrt.f32 %v151_v25  ;;  %v1395_v25 = vld [vmem:[%s1116_s15 + $0x18] sm:$0xff]  }
 0x135   :  { %v1417_v26 = vpop.eup %1416 }
 0x136   :  { %v154_v27 = vmul.f32 %v1417_v26, %v138_v6  ;;  %v1396_v26 = vld [vmem:[%s1114_s11 + $0x10] sm:$0xff]  }
 0x138   :  { %v162_v31 = vmul.f32 %v1133_v28, %v154_v27  ;;  %v1397_v27 = vld [vmem:[%s1116_s15 + $0x10] sm:$0xff]  }
 0x139   :  { %v1419_v29 = vpop.eup %1418 }
 0x13a   :  { %v155_v30 = vmul.f32 %v1419_v29, %v139_v10  ;;  %v170_v34 = vadd.f32 %v1134_v32, %v162_v31  ;;  %v1399_v29 = vld [vmem:[%s1116_s15 + $0x8] sm:$0xff]   ;;  %v1401_v31 = vld [vmem:[%s1116_s15] sm:$0xff]   ;;  %s1126_s15 = sld [smem:[%s1657_s0 + %s1450_s12]]  }
 0x13c   :  { %v163_v33 = vmul.f32 %v1133_v28, %v155_v30  ;;  %v344_v5 = vadd.f32 %v170_v34, %v1464_v0  ;;  %v1398_v28 = vld [vmem:[%s1114_s11 + $0x8] sm:$0xff]   ;;  %v1400_v30 = vld [vmem:[%s1114_s11] sm:$0xff]  }
 0x13e   :  { %v1502_v35 = vadd.f32 %v1134_v32, %v163_v33 }
 0x140   :  { %v172_v36 = vpack.c.bf16 %v1502_v35, %v170_v34  ;;  %v345_v11 = vadd.f32 %v1502_v35, %v1466_v1  ;;  %v1394_v1 = vld [vmem:[%s1114_s11 + $0x18] sm:$0xff]   ;;  %s1123_s11 = sld [smem:[%s1657_s0 + %s1449_s8]]  }
 0x142   :  { %1247 = vmatmul.mubr.msk.bf16.vlgmr.msra.gmra.mxu0 %vm128_vm0, %v172_v36 }
 0x143   :  { %1270 = vmatprep.mubr.msk.bf16.mxu0 %vm1426_vm1, %v1425_v14  ;;  %1263 = vmatpush3.bf16.msra.mxu0 %v1390_v40 }
 0x144   :  { %1264 = vmatprep.subr.bf16.mxu0 %v1425_v14 }
 0x147   :  { %1265 = vmatpush3.bf16.msra.mxu0 %v1391_v51  ;;  %v1404_v51 = vld [vmem:[%s1556_s19 + $0x8] sm:$0xff]  }
 0x148   :  { %1266 = vmatprep.subr.bf16.mxu0 %v1425_v14 }
 0x14b   :  { %1267 = vmatpush3.bf16.msra.mxu0 %v1392_v52  ;;  %v1405_v52 = vld [vmem:[%s1556_s19] sm:$0xff]  }
 0x14c   :  { %1268 = vmatprep.subr.bf16.mxu0 %v1425_v14 }
 0x14f   :  { %1269 = vmatpush3.bf16.msra.mxu0 %v1393_v53  ;;  %v645_v53 = vld [vmem:[%s1103_s5] sm:$0xff] }
 0x150   :  { %1286 = vmatprep.subr.bf16.mxu0 %v1425_v14 }
 0x202   :  { %v249_v42 = vpop.f32.mrf.mxu0 }
 0x203   :  { %v250_v44 = vadd.f32 %v1135_v41, %v249_v42 }
 0x204   :  { %v1248_v43 = vpop.f32.mrf.mxu0 }
 0x205   :  { %v256_v48 = vmax.f32 %v250_v44, 0.0 }
 0x206   :  { %v252_v45 = vpop.f32.mrf.mxu0 }
 0x207   :  { %v253_v46 = vadd.f32 %v1135_v41, %v252_v45  ;;  %v1154_v41 = vld [vmem:[%s1113_s27] ss:$0 sm:$0xff]  ;;  %s1127_s27 = sld [smem:[%s1657_s0 + %s1453_s24]]  }
 0x208   :  { %v1249_v47 = vpop.f32.mrf.mxu0 }
 0x209   :  { %v257_v49 = vmax.f32 %v253_v46, 0.0 }
 0x20b   :  { %v258_v50 = vpack.c.bf16 %v257_v49, %v256_v48  ;;  %v1402_v48 = vld [vmem:[%s1556_s19 + $0x18] sm:$0xff]  }
 0x20d   :  { %1259 = vmatmul.mubr.msk.bf16.vlgmr.msra.gmra.mxu1 %vm128_vm0, %v258_v50  ;;  %v1403_v50 = vld [vmem:[%s1556_s19 + $0x10] sm:$0xff]   ;;  %s1125_s19 = sld [smem:[%s1657_s0 + %s1451_s16]]  }
 0x20e   :  { %1282 = vmatprep.mubr.msk.bf16.mxu1 %vm1426_vm1, %v1425_v14  ;;  %1275 = vmatpush3.bf16.msra.mxu1 %v1394_v1 }
 0x20f   :  { %1276 = vmatprep.subr.bf16.mxu1 %v1425_v14 }
 0x212   :  { %1277 = vmatpush3.bf16.msra.mxu1 %v1396_v26 }
 0x213   :  { %1278 = vmatprep.subr.bf16.mxu1 %v1425_v14 }
 0x216   :  { %1279 = vmatpush3.bf16.msra.mxu1 %v1398_v28 }
 0x217   :  { %1280 = vmatprep.subr.bf16.mxu1 %v1425_v14 }
 0x21a   :  { %1281 = vmatpush3.bf16.msra.mxu1 %v1400_v30 }
 0x21b   :  { %1298 = vmatprep.subr.bf16.mxu1 %v1425_v14 }
 0x2cd   :  { %v335_v55 = vpop.f32.mrf.mxu1 }
 0x2ce   :  { %v336_v57 = vadd.f32 %v1141_v54, %v335_v55 }
 0x2cf   :  { %v1260_v56 = vpop.f32.mrf.mxu1 }
 0x2d0   :  { %v342_v61 = vmax.f32 %v336_v57, 0.0  ;;  %v1406_v56 = vld [vmem:[%s1120_s9 + $0x8] sm:$0xff]   ;;  %v1407_v57 = vld [vmem:[%s1120_s9] sm:$0xff]  }
 0x2d1   :  { %v338_v58 = vpop.f32.mrf.mxu1 }
 0x2d2   :  { %v339_v59 = vadd.f32 %v1141_v54, %v338_v58  ;;  %v646_v54 = vld [vmem:[%s1103_s5 + $0x8] sm:$0xff]  ;;  %v1155_v58 = vld [vmem:[%s1115_s13] ss:$0 sm:$0xff]  ;;  %s1132_s5 = sld [smem:[%s1657_s0 + %s1455_s2]]  }
 0x2d3   :  { %v1261_v60 = vpop.f32.mrf.mxu1  ;;  %v647_v55 = vpack.c.bf16 %v646_v54, %v645_v53 }
 0x2d4   :  { %v343_v62 = vmax.f32 %v339_v59, 0.0 }
 0x2d6   :  { %v346_v63 = vpack.c.bf16 %v343_v62, %v342_v61 }
 0x2d8   :  { %1271 = vmatmul.mubr.msk.bf16.vlgmr.msra.gmra.mxu0 %vm128_vm0, %v346_v63 }
 0x2d9   :  { %1294 = vmatprep.mubr.msk.bf16.mxu0 %vm1426_vm1, %v1425_v14  ;;  %1287 = vmatpush3.bf16.msra.mxu0 %v1395_v25 }
 0x2da   :  { %1288 = vmatprep.subr.bf16.mxu0 %v1425_v14 }
 0x2dd   :  { %1289 = vmatpush3.bf16.msra.mxu0 %v1397_v27 }
 0x2de   :  { %1290 = vmatprep.subr.bf16.mxu0 %v1425_v14 }
 0x2e1   :  { %1291 = vmatpush3.bf16.msra.mxu0 %v1399_v29 }
 0x2e2   :  { %1292 = vmatprep.subr.bf16.mxu0 %v1425_v14 }
 0x2e5   :  { %1293 = vmatpush3.bf16.msra.mxu0 %v1401_v31 }
 0x2e6   :  { %1310 = vmatprep.subr.bf16.mxu0 %v1425_v14 }
 0x398   :  { %v423_v3 = vpop.f32.mrf.mxu0 }
 0x399   :  { %v424_v4 = vadd.f32 %v1147_v2, %v423_v3 }
 0x39a   :  { %v1272_v6 = vpop.f32.mrf.mxu0 }
 0x39b   :  { %v430_v7 = vadd.f32 %v424_v4, %v344_v5 }
 0x39c   :  { %v426_v8 = vpop.f32.mrf.mxu0 }
 0x39d   :  { %v427_v9 = vadd.f32 %v1147_v2, %v426_v8  ;;  %v434_v10 = vsel %vm128_vm0, %v430_v7, 0.0  ;;  %v1161_v8 = vld [vmem:[%s1117_s25] ss:$0 sm:$0xff] }
 0x39e   :  { %435 = vadd.xlane.f32.xlu0 %v434_v10  ;;  %v1273_v12 = vpop.f32.mrf.mxu0 }
 0x39f   :  { %v431_v13 = vadd.f32 %v427_v9, %v345_v11 }
 0x3a1   :  { %v437_v15 = vsel %vm128_vm0, %v431_v13, 0.0 }
 0x3a2   :  { %438 = vadd.xlane.f32.xlu1 %v437_v15 }
 0x427   :  { %v436_v16 = vpop.xlane.xlu0 %435 }
 0x428   :  { %v440_v17 = vmul.f32 0.015625, %v436_v16 }
 0x42a   :  { %v442_v18 = vsub.f32 %v430_v7, %v440_v17  ;;  %v1167_v7 = vld [vmem:[%s1119_s21] ss:$0 sm:$0xff] }
 0x42b   :  { %v439_v19 = vpop.xlane.xlu1 %438 }
 0x42c   :  { %v441_v0 = vmul.f32 0.015625, %v439_v19  ;;  %v444_v20 = vmul.f32 %v442_v18, %v442_v18 }
 0x42e   :  { %v443_v21 = vsub.f32 %v431_v13, %v441_v0  ;;  %v446_v22 = vsel %vm128_vm0, %v444_v20, 0.0 }
 0x42f   :  { %447 = vadd.xlane.f32.xlu0 %v446_v22  ;;  %v1408_v22 = vld [vmem:[%s1122_s29 + $0x8] sm:$0xff]  }
 0x430   :  { %v445_v23 = vmul.f32 %v443_v21, %v443_v21 }
 0x432   :  { %v449_v24 = vsel %vm128_vm0, %v445_v23, 0.0  ;;  %v1409_v23 = vld [vmem:[%s1122_s29] sm:$0xff]  }
 0x433   :  { %450 = vadd.xlane.f32.xlu1 %v449_v24  ;;  %v1173_v24 = vld [vmem:[%s1121_s3] ss:$0 sm:$0xff] }
 0x4b8   :  { %v448_v32 = vpop.xlane.xlu0 %447 }
 0x4b9   :  { %v452_v33 = vmul.f32 0.015625, %v448_v32 }
 0x4bb   :  { %v454_v34 = vadd.f32 1e-05, %v452_v33  ;;  %v1410_v33 = vld [vmem:[%s1124_s7 + $0x8] sm:$0xff]  }
 0x4bc   :  { %v451_v35 = vpop.xlane.xlu1 %450 }
 0x4bd   :  { %1420 = vrsqrt.f32 %v454_v34  ;;  %v453_v36 = vmul.f32 0.015625, %v451_v35  ;;  %v1411_v34 = vld [vmem:[%s1124_s7] sm:$0xff]  }
 0x4be   :  { %v1177_v35 = vld [vmem:[%s1123_s11] ss:$0 sm:$0xff] }
 0x4bf   :  { %v455_v37 = vadd.f32 1e-05, %v453_v36 }
 0x4c1   :  { %1422 = vrsqrt.f32 %v455_v37 }
 0x4ca   :  { %v1421_v38 = vpop.eup %1420 }
 0x4cb   :  { %v458_v40 = vmul.f32 %v1421_v38, %v442_v18 }
 0x4cd   :  { %v466_v42 = vmul.f32 %v1153_v39, %v458_v40 }
 0x4ce   :  { %v1423_v43 = vpop.eup %1422 }
 0x4cf   :  { %v459_v44 = vmul.f32 %v1423_v43, %v443_v21  ;;  %v474_v45 = vadd.f32 %v1154_v41, %v466_v42 }
 0x4d1   :  { %v467_v46 = vmul.f32 %v1153_v39, %v459_v44  ;;  %476 = vst.msk [vmem:[%s1130_s1] sm:$0xff] %vm128_vm0, %v474_v45 }
 0x4d3   :  { %v475_v47 = vadd.f32 %v1154_v41, %v467_v46 }
 0x4d5   :  { %477 = vst.msk [vmem:[%s1130_s1 + $0x8] sm:$0xff] %vm128_vm0, %v475_v47  ;;  %v478_v49 = vpack.c.bf16 %v475_v47, %v474_v45  ;;  %v1412_v47 = vld [vmem:[%s1126_s15 + $0x8] sm:$0xff]   ;;  %s1129_s1 = sld [smem:[%s1657_s0 + %s1454_s28]]  }
 0x4d7   :  { %1283 = vmatmul.mubr.msk.bf16.vlgmr.msra.gmra.mxu1 %vm128_vm0, %v478_v49  ;;  %1295 = vmatmul.mubr.msk.bf16.vlgmr.msra.gmra.mxu0 %vm128_vm0, %v478_v49  ;;  %v1181_v49 = vld [vmem:[%s1125_s19] ss:$0 sm:$0xff] }
 0x4d8   :  { %1299 = vmatpush3.bf16.msra.mxu1 %v1402_v48  ;;  %1306 = vmatprep.mubr.msk.bf16.mxu1 %vm1426_vm1, %v1425_v14  ;;  %v1413_v48 = vld [vmem:[%s1126_s15] sm:$0xff]  }
 0x4d9   :  { %1300 = vmatprep.subr.bf16.mxu1 %v1425_v14  ;;  %1314 = vmatprep.mubr.msk.bf16.mxu0 %vm1426_vm1, %v1425_v14 }
 0x4da   :  { %1311 = vmatpush3.bf16.msra.mxu0 %v1406_v56 }
 0x4db   :  { %1312 = vmatprep.subr.bf16.mxu0 %v1425_v14 }
 0x4dc   :  { %1301 = vmatpush3.bf16.msra.mxu1 %v1403_v50 }
 0x4dd   :  { %1302 = vmatprep.subr.bf16.mxu1 %v1425_v14 }
 0x4de   :  { %1313 = vmatpush3.bf16.msra.mxu0 %v1407_v57 }
 0x4df   :  { %1326 = vmatprep.subr.bf16.mxu0 %v1425_v14 }
 0x4e0   :  { %1303 = vmatpush3.bf16.msra.mxu1 %v1404_v51 }
 0x4e1   :  { %1304 = vmatprep.subr.bf16.mxu1 %v1425_v14 }
 0x4e4   :  { %1305 = vmatpush3.bf16.msra.mxu1 %v1405_v52 }
 0x4e5   :  { %1318 = vmatprep.subr.bf16.mxu1 %v1425_v14 }
 0x4e7   :  { %1307 = vmatmul.mubr.msk.bf16.vlgmr.msra.gmra.mxu1 %vm128_vm0, %v647_v55 }
 0x4e8   :  { %1322 = vmatprep.mubr.msk.bf16.mxu1 %vm1426_vm1, %v1425_v14  ;;  %1319 = vmatpush3.bf16.msra.mxu1 %v1408_v22 }
 0x4e9   :  { %1320 = vmatprep.subr.bf16.mxu1 %v1425_v14 }
 0x4ec   :  { %1321 = vmatpush3.bf16.msra.mxu1 %v1409_v23 }
 0x4ed   :  { %1334 = vmatprep.subr.bf16.mxu1 %v1425_v14 }
 0x597   :  { %v555_v59 = vpop.f32.mrf.mxu1  ;;  %v638_v60 = vpop.f32.mrf.mxu0 }
 0x598   :  { %v556_v61 = vadd.f32 %v1155_v58, %v555_v59  ;;  %v639_v12 = vadd.f32 %v1161_v8, %v638_v60  ;;  %v1414_v59 = vld [vmem:[%s1128_s23 + $0x8] sm:$0xff]   ;;  %v1415_v60 = vld [vmem:[%s1128_s23] sm:$0xff]  }
 0x599   :  { %v1284_v62 = vpop.f32.mrf.mxu1  ;;  %v1296_v63 = vpop.f32.mrf.mxu0 }
 0x59a   :  { %563 = vst.msk [vmem:[%s1131_s17] sm:$0xff] %vm562_vm2, %v556_v61  ;;  %v1185_v61 = vld [vmem:[%s1127_s27] ss:$0 sm:$0xff] }
 0x59b   :  { %v558_v2 = vpop.f32.mrf.mxu1  ;;  %v641_v3 = vpop.f32.mrf.mxu0 }
 0x59c   :  { %v559_v4 = vadd.f32 %v1155_v58, %v558_v2  ;;  %v642_v15 = vadd.f32 %v1161_v8, %v641_v3 }
 0x59d   :  { %v1285_v5 = vpop.f32.mrf.mxu1  ;;  %v1297_v6 = vpop.f32.mrf.mxu0 }
 0x59e   :  { %564 = vst.msk [vmem:[%s1131_s17 + $0x8] sm:$0xff] %vm562_vm2, %v559_v4 }
 0x5a7   :  { %v724_v9 = vpop.f32.mrf.mxu1 }
 0x5a8   :  { %v725_v10 = vadd.f32 %v1167_v7, %v724_v9 }
 0x5a9   :  { %v1308_v11 = vpop.f32.mrf.mxu1 }
 0x5aa   :  { %v731_v16 = vadd.f32 %v725_v10, %v639_v12 }
 0x5ab   :  { %v727_v13 = vpop.f32.mrf.mxu1 }
 0x5ac   :  { %v728_v17 = vadd.f32 %v1167_v7, %v727_v13  ;;  %v733_v0 = vmax.f32 %v731_v16, 0.0 }
 0x5ad   :  { %v1309_v18 = vpop.f32.mrf.mxu1 }
 0x5ae   :  { %v732_v19 = vadd.f32 %v728_v17, %v642_v15 }
 0x5b0   :  { %v734_v20 = vmax.f32 %v732_v19, 0.0 }
 0x5b2   :  { %v735_v21 = vpack.c.bf16 %v734_v20, %v733_v0 }
 0x5b4   :  { %1315 = vmatmul.mubr.msk.bf16.vlgmr.msra.gmra.mxu0 %vm759_vm3, %v735_v21 }
 0x5b5   :  { %1330 = vmatprep.mubr.msk.bf16.mxu0 %vm1426_vm1, %v1425_v14  ;;  %1327 = vmatpush3.bf16.msra.mxu0 %v1410_v33 }
 0x5b6   :  { %1328 = vmatprep.subr.bf16.mxu0 %v1425_v14 }
 0x5b9   :  { %1329 = vmatpush3.bf16.msra.mxu0 %v1411_v34 }
 0x5ba   :  { %1342 = vmatprep.subr.bf16.mxu0 %v1425_v14 }
 0x674   :  { %v797_v1 = vpop.f32.mrf.mxu0 }
 0x675   :  { %v798_v26 = vadd.f32 %v1173_v24, %v797_v1 }
 0x676   :  { %v1316_v25 = vpop.f32.mrf.mxu0 }
 0x677   :  { %v804_v30 = vmax.f32 %v798_v26, 0.0 }
 0x678   :  { %v800_v27 = vpop.f32.mrf.mxu0 }
 0x679   :  { %v801_v28 = vadd.f32 %v1173_v24, %v800_v27 }
 0x67a   :  { %v1317_v29 = vpop.f32.mrf.mxu0 }
 0x67b   :  { %v805_v31 = vmax.f32 %v801_v28, 0.0 }
 0x67d   :  { %v806_v32 = vpack.c.bf16 %v805_v31, %v804_v30 }
 0x67f   :  { %1323 = vmatmul.mubr.msk.bf16.vlgmr.msra.gmra.mxu1 %vm759_vm3, %v806_v32 }
 0x680   :  { %1338 = vmatprep.mubr.msk.bf16.mxu1 %vm1426_vm1, %v1425_v14  ;;  %1335 = vmatpush3.bf16.msra.mxu1 %v1412_v47 }
 0x681   :  { %1336 = vmatprep.subr.bf16.mxu1 %v1425_v14 }
 0x684   :  { %1337 = vmatpush3.bf16.msra.mxu1 %v1413_v48 }
 0x73f   :  { %v867_v36 = vpop.f32.mrf.mxu1 }
 0x740   :  { %v868_v37 = vadd.f32 %v1177_v35, %v867_v36 }
 0x741   :  { %v1324_v38 = vpop.f32.mrf.mxu1 }
 0x742   :  { %v874_v40 = vadd.f32 %v868_v37, %v731_v16 }
 0x743   :  { %v870_v39 = vpop.f32.mrf.mxu1 }
 0x744   :  { %v871_v41 = vadd.f32 %v1177_v35, %v870_v39  ;;  %v876_v44 = vmax.f32 %v874_v40, 0.0 }
 0x745   :  { %v1325_v42 = vpop.f32.mrf.mxu1 }
 0x746   :  { %v875_v43 = vadd.f32 %v871_v41, %v732_v19 }
 0x748   :  { %v877_v45 = vmax.f32 %v875_v43, 0.0 }
 0x74a   :  { %v878_v46 = vpack.c.bf16 %v877_v45, %v876_v44 }
 0x74c   :  { %1331 = vmatmul.mubr.msk.bf16.vlgmr.msra.gmra.mxu0 %vm759_vm3, %v878_v46 }
 0x74d   :  { %1346 = vmatprep.mubr.msk.bf16.mxu0 %vm1426_vm1, %v1425_v14  ;;  %1343 = vmatpush3.bf16.msra.mxu0 %v1414_v59 }
 0x74e   :  { %1344 = vmatprep.subr.bf16.mxu0 %v1425_v14  ;;  %v1189_v14 = vld [vmem:[%s1129_s1] ss:$0 sm:$0xff] }
 0x751   :  { %1345 = vmatpush3.bf16.msra.mxu0 %v1415_v60 }
 0x80c   :  { %v939_v50 = vpop.f32.mrf.mxu0 }
 0x80d   :  { %v940_v52 = vadd.f32 %v1181_v49, %v939_v50 }
 0x80e   :  { %v1332_v51 = vpop.f32.mrf.mxu0 }
 0x80f   :  { %v946_v56 = vmax.f32 %v940_v52, 0.0 }
 0x810   :  { %v942_v53 = vpop.f32.mrf.mxu0 }
 0x811   :  { %v943_v54 = vadd.f32 %v1181_v49, %v942_v53 }
 0x812   :  { %v1333_v55 = vpop.f32.mrf.mxu0 }
 0x813   :  { %v947_v57 = vmax.f32 %v943_v54, 0.0 }
 0x815   :  { %v948_v58 = vpack.c.bf16 %v947_v57, %v946_v56 }
 0x817   :  { %1339 = vmatmul.mubr.msk.bf16.vlgmr.msra.gmra.mxu1 %vm759_vm3, %v948_v58 }
 0x8d7   :  { %v1009_v62 = vpop.f32.mrf.mxu1 }
 0x8d8   :  { %v1010_v63 = vadd.f32 %v1185_v61, %v1009_v62 }
 0x8d9   :  { %v1340_v2 = vpop.f32.mrf.mxu1 }
 0x8da   :  { %v1016_v4 = vadd.f32 %v1010_v63, %v874_v40 }
 0x8db   :  { %v1012_v3 = vpop.f32.mrf.mxu1 }
 0x8dc   :  { %v1013_v5 = vadd.f32 %v1185_v61, %v1012_v3  ;;  %v1018_v8 = vmax.f32 %v1016_v4, 0.0 }
 0x8dd   :  { %v1341_v6 = vpop.f32.mrf.mxu1 }
 0x8de   :  { %v1017_v7 = vadd.f32 %v1013_v5, %v875_v43 }
 0x8e0   :  { %v1019_v9 = vmax.f32 %v1017_v7, 0.0 }
 0x8e2   :  { %v1020_v10 = vpack.c.bf16 %v1019_v9, %v1018_v8 }
 0x8e4   :  { %1347 = vmatmul.mubr.msk.bf16.vlgmr.msra.gmra.mxu0 %vm759_vm3, %v1020_v10 }
 0x9a4   :  { %v1081_v11 = vpop.f32.mrf.mxu0 }
 0x9a5   :  { %v1082_v12 = vadd.f32 %v1189_v14, %v1081_v11 }
 0x9a6   :  { %v1348_v13 = vpop.f32.mrf.mxu0 }
 0x9a7   :  { %1089 = vst.msk [vmem:[%s1132_s5] sm:$0xff] %vm1088_vm4, %v1082_v12 }
 0x9a8   :  { %v1084_v15 = vpop.f32.mrf.mxu0 }
 0x9a9   :  { %v1085_v16 = vadd.f32 %v1189_v14, %v1084_v15 }
 0x9aa   :  { %v1349_v17 = vpop.f32.mrf.mxu0 }
 0x9ab   :  { %1090 = vst.msk [vmem:[%s1132_s5 + $0x8] sm:$0xff] %vm1088_vm4, %v1085_v16 }

// kernel: structure_module_forward.21
= control target key start
LH: loop header
LB: loop body
LE: loop exit
PB: predicated region body
PF: predicated region fallthrough
CT: control target
= control target key end

     0   :  { %vm38_vm0 = vcmask 523264   ;;  %s611_s0 = inlined_call_operand.vmem [shape: f32[16,64], index: 0, kind: input, shape index: {}]   ;;  %s612_s1 = inlined_call_operand.vmem [shape: f32[1,64], index: 1, kind: input, shape index: {}]   ;;  %s613_s2 = inlined_call_operand.vmem [shape: f32[1,64], index: 2, kind: input, shape index: {}]   ;;  %s614_s3 = inlined_call_operand.vmem [shape: bf16[64,64], index: 3, kind: input, shape index: {}]   ;;  %s615_s4 = inlined_call_operand.vmem [shape: f32[1,64], index: 4, kind: input, shape index: {}]   ;;  %s616_s5 = inlined_call_operand.vmem [shape: bf16[64,64], index: 5, kind: input, shape index: {}]   ;;  %s617_s6 = inlined_call_operand.vmem [shape: f32[1,64], index: 6, kind: input, shape index: {}]   ;;  %s618_s7 = inlined_call_operand.vmem [shape: bf16[64,50], index: 7, kind: input, shape index: {}]   ;;  %s619_s8 = inlined_call_operand.vmem [shape: f32[1,50], index: 8, kind: input, shape index: {}]   ;;  %s620_s9 = inlined_call_operand.hbm [shape: f32[16,50], index: 9, kind: output, shape index: {}]  }
   0x1   :  { %v34_v0 = vld [vmem:[%s611_s0] sm:$0xff]  ;;  %v35_v1 = vld [vmem:[%s611_s0 + $0x8] sm:$0xff] }
   0x2   :  { %v39_v2 = vsel %vm38_vm0, %v34_v0, 0.0  ;;  %v42_v3 = vsel %vm38_vm0, %v35_v1, 0.0 }
   0x3   :  { %40 = vadd.xlane.f32.xlu0 %v39_v2 }
   0x7   :  { %43 = vadd.xlane.f32.xlu0 %v42_v3 }
   0x8   :  { %14 = vsyncpa [#allocation3], 0  ;;  %v433_v14 = vld [vmem:[%s614_s3 + $0x18] sm:$0xff]   ;;  %v471_v15 = vmov 0.0   ;;  %vm472_vm1 = vmmov 0   ;;  %v434_v16 = vld [vmem:[%s614_s3 + $0x10] sm:$0xff]  }
   0x9   :  { %392 = vmatprep.subr.bf16.mxu0 %v471_v15  ;;  %400 = vmatprep.mubr.msk.bf16.mxu0 %vm472_vm1, %v471_v15  ;;  %v435_v17 = vld [vmem:[%s614_s3 + $0x8] sm:$0xff]   ;;  %v436_v18 = vld [vmem:[%s614_s3] sm:$0xff]   ;;  %v437_v19 = vld [vmem:[%s616_s5 + $0x18] sm:$0xff]   ;;  %vm338_vm2 = vcmask 408576  }
   0xa   :  { %393 = vmatpush3.bf16.msra.mxu0 %v433_v14  ;;  %404 = vmatprep.subr.bf16.mxu1 %v471_v15  ;;  %v357_v28 = vld [vmem:[%s612_s1] ss:$0 sm:$0xff]  ;;  %v438_v37 = vld [vmem:[%s616_s5 + $0x10] sm:$0xff]   ;;  %v439_v38 = vld [vmem:[%s616_s5 + $0x8] sm:$0xff]  }
   0xb   :  { %394 = vmatprep.subr.bf16.mxu0 %v471_v15  ;;  %412 = vmatprep.mubr.msk.bf16.mxu1 %vm472_vm1, %v471_v15  ;;  %v358_v32 = vld [vmem:[%s613_s2] ss:$0 sm:$0xff]  ;;  %v441_v40 = vld [vmem:[%s618_s7 + $0x18] sm:$0xff]   ;;  %v442_v51 = vld [vmem:[%s618_s7 + $0x10] sm:$0xff]  }
   0xc   :  { %405 = vmatpush3.bf16.msra.mxu1 %v437_v19  ;;  %v440_v39 = vld [vmem:[%s616_s5] sm:$0xff]   ;;  %v443_v52 = vld [vmem:[%s618_s7 + $0x8] sm:$0xff]  }
   0xd   :  { %406 = vmatprep.subr.bf16.mxu1 %v471_v15  ;;  %v359_v41 = vld [vmem:[%s615_s4] ss:$0 sm:$0xff] }
   0xe   :  { %395 = vmatpush3.bf16.msra.mxu0 %v434_v16  ;;  %v444_v53 = vld [vmem:[%s618_s7] sm:$0xff]   ;;  %s473_s7 = smov [#allocation2]  }
   0xf   :  { %396 = vmatprep.subr.bf16.mxu0 %v471_v15  ;;  %v365_v54 = vld [vmem:[%s617_s6] ss:$0 sm:$0xff]  ;;  %s346_s6 = sshll.u32 %s473_s7, 4  ;;  %s347_s6 = int_to_ptr.vmem [resolvable:$true] %s346_s6 }
  0x10   :  { %407 = vmatpush3.bf16.msra.mxu1 %v438_v37  ;;  %s449_s19 = scalar_lea.vmem %s347_s6, 256  ;;  %p454_p1 = scmp.lt.s32.totalorder %s347_s6, %s347_s6 }
  0x11   :  { %408 = vmatprep.subr.bf16.mxu1 %v471_v15  ;;  %p450_p0 = scmp.ne.s32.totalorder %s347_s6, %s449_s19  ;;  %p455_p2 = scmp.lt.s32.totalorder %s449_s19, %s449_s19 }
  0x12   :  { %397 = vmatpush3.bf16.msra.mxu0 %v435_v17 }
  0x13   :  { %398 = vmatprep.subr.bf16.mxu0 %v471_v15  ;;  %p456_p3 = por %p455_p2, %p454_p1 }
  0x14   :  { %409 = vmatpush3.bf16.msra.mxu1 %v439_v38 }
  0x15   :  { %410 = vmatprep.subr.bf16.mxu1 %v471_v15  ;;  %p457_p4 = pnand %p456_p3, %p450_p0 }
  0x16   :  { %399 = vmatpush3.bf16.msra.mxu0 %v436_v18 }
  0x17   :  { %416 = vmatprep.subr.bf16.mxu0 %v471_v15 }
  0x18   :  { %411 = vmatpush3.bf16.msra.mxu1 %v440_v39 }
  0x8c   :  { %v41_v4 = vpop.xlane.xlu0 %40 }
  0x8d   :  { %v46_v5 = vmul.f32 0.015625, %v41_v4 }
  0x8f   :  { %v48_v6 = vsub.f32 %v34_v0, %v46_v5  ;;  %v371_v0 = vld [vmem:[%s619_s8] ss:$0 sm:$0xff] }
  0x90   :  { %v44_v7 = vpop.xlane.xlu0 %43 }
  0x91   :  { %v47_v8 = vmul.f32 0.015625, %v44_v7  ;;  %v50_v9 = vmul.f32 %v48_v6, %v48_v6 }
  0x93   :  { %v49_v10 = vsub.f32 %v35_v1, %v47_v8  ;;  %v52_v11 = vsel %vm38_vm0, %v50_v9, 0.0 }
  0x94   :  { %53 = vadd.xlane.f32.xlu1 %v52_v11 }
  0x95   :  { %v51_v12 = vmul.f32 %v49_v10, %v49_v10 }
  0x97   :  { %v55_v13 = vsel %vm38_vm0, %v51_v12, 0.0 }
  0x98   :  { %56 = vadd.xlane.f32.xlu1 %v55_v13 }
 0x11d   :  { %v54_v20 = vpop.xlane.xlu1 %53 }
 0x11e   :  { %v58_v21 = vmul.f32 0.015625, %v54_v20 }
 0x120   :  { %v60_v22 = vadd.f32 1e-05, %v58_v21 }
 0x121   :  { %v57_v23 = vpop.xlane.xlu1 %56 }
 0x122   :  { %445 = vrsqrt.f32 %v60_v22  ;;  %v59_v24 = vmul.f32 0.015625, %v57_v23 }
 0x124   :  { %v61_v25 = vadd.f32 1e-05, %v59_v24 }
 0x126   :  { %447 = vrsqrt.f32 %v61_v25 }
 0x12f   :  { %v446_v26 = vpop.eup %445 }
 0x130   :  { %v64_v27 = vmul.f32 %v446_v26, %v48_v6 }
 0x132   :  { %v72_v31 = vmul.f32 %v357_v28, %v64_v27 }
 0x133   :  { %v448_v29 = vpop.eup %447 }
 0x134   :  { %v65_v30 = vmul.f32 %v448_v29, %v49_v10  ;;  %v80_v34 = vadd.f32 %v358_v32, %v72_v31 }
 0x136   :  { %v73_v33 = vmul.f32 %v357_v28, %v65_v30 }
 0x138   :  { %v81_v35 = vadd.f32 %v358_v32, %v73_v33 }
 0x13a   :  { %v82_v36 = vpack.c.bf16 %v81_v35, %v80_v34 }
 0x13c   :  { %401 = vmatmul.mubr.msk.bf16.vlgmr.msra.gmra.mxu0 %vm38_vm0, %v82_v36 }
 0x13d   :  { %424 = vmatprep.mubr.msk.bf16.mxu0 %vm472_vm1, %v471_v15  ;;  %417 = vmatpush3.bf16.msra.mxu0 %v441_v40 }
 0x13e   :  { %418 = vmatprep.subr.bf16.mxu0 %v471_v15 }
 0x141   :  { %419 = vmatpush3.bf16.msra.mxu0 %v442_v51 }
 0x142   :  { %420 = vmatprep.subr.bf16.mxu0 %v471_v15 }
 0x145   :  { %421 = vmatpush3.bf16.msra.mxu0 %v443_v52 }
 0x146   :  { %422 = vmatprep.subr.bf16.mxu0 %v471_v15 }
 0x149   :  { %423 = vmatpush3.bf16.msra.mxu0 %v444_v53 }
 0x1fc   :  { %v159_v42 = vpop.f32.mrf.mxu0 }
 0x1fd   :  { %v160_v44 = vadd.f32 %v359_v41, %v159_v42 }
 0x1fe   :  { %v402_v43 = vpop.f32.mrf.mxu0 }
 0x1ff   :  { %v166_v48 = vmax.f32 %v160_v44, 0.0 }
 0x200   :  { %v162_v45 = vpop.f32.mrf.mxu0 }
 0x201   :  { %v163_v46 = vadd.f32 %v359_v41, %v162_v45 }
 0x202   :  { %v403_v47 = vpop.f32.mrf.mxu0 }
 0x203   :  { %v167_v49 = vmax.f32 %v163_v46, 0.0 }
 0x205   :  { %v168_v50 = vpack.c.bf16 %v167_v49, %v166_v48 }
 0x207   :  { %413 = vmatmul.mubr.msk.bf16.vlgmr.msra.gmra.mxu1 %vm38_vm0, %v168_v50 }
 0x2c7   :  { %v245_v55 = vpop.f32.mrf.mxu1 }
 0x2c8   :  { %v246_v57 = vadd.f32 %v365_v54, %v245_v55 }
 0x2c9   :  { %v414_v56 = vpop.f32.mrf.mxu1 }
 0x2ca   :  { %v252_v61 = vmax.f32 %v246_v57, 0.0 }
 0x2cb   :  { %v248_v58 = vpop.f32.mrf.mxu1 }
 0x2cc   :  { %v249_v59 = vadd.f32 %v365_v54, %v248_v58 }
 0x2cd   :  { %v415_v60 = vpop.f32.mrf.mxu1 }
 0x2ce   :  { %v253_v62 = vmax.f32 %v249_v59, 0.0 }
 0x2d0   :  { %v254_v63 = vpack.c.bf16 %v253_v62, %v252_v61 }
 0x2d2   :  { %425 = vmatmul.mubr.msk.bf16.vlgmr.msra.gmra.mxu0 %vm38_vm0, %v254_v63 }
 0x392   :  { %v331_v1 = vpop.f32.mrf.mxu0 }
 0x393   :  { %v332_v2 = vadd.f32 %v371_v0, %v331_v1 }
 0x394   :  { %v426_v3 = vpop.f32.mrf.mxu0 }
 0x395   :  { %339 = vst.msk [vmem:[#allocation2] sm:$0xff] %vm338_vm2, %v332_v2 }
 0x396   :  { %v334_v4 = vpop.f32.mrf.mxu0 }
 0x397   :  { %v335_v5 = vadd.f32 %v371_v0, %v334_v4 }
 0x398   :  { %v427_v6 = vpop.f32.mrf.mxu0 }
 0x399   :  { %340 = vst.msk [vmem:[#allocation2 + $0x8] sm:$0xff] %vm338_vm2, %v335_v5 }
 0x39a   :  { %460 = shalt.err (!%p457_p4)
}
 0x39b   :  { %s474_s8 = smov 128   ;;  %s475_s20 = smov 8  }
 0x39c   :  { %352 = dma.vmem_to_hbm [thread:$0]  %s347_s6, 256, %s620_s9, [#allocation3], %s474_s8, %s474_s8, %s475_s20  }
 0x39d   :  { %469 = dma.done.wait [#allocation3], 256  }
 0x39e   :  { %470 = vsyncadd [#allocation3], 4294967040 }
 0x39f   :  { %356 = vsyncpa [#allocation3], 1 }

</bundles_post_ra>
